<compile_context>
chip_gen: v6e
topology: v6e:2x2x1
jax: 0.10.0
libtpu: 0.0.40
codegen_flags: <defaults>
</compile_context>

<pallas_src>
import functools

import jax
import jax.numpy as jnp
import numpy as np
from jax.experimental import pallas as pl
from jax.experimental.pallas import tpu as pltpu


def _round_up(x, m):
    return (x + m - 1) // m * m


def _vmem_capacity_bytes():
    """Per-core VMEM capacity (generation aware); conservative fallback."""
    try:
        return int(pltpu.get_tpu_info().vmem_capacity_bytes)
    except Exception:
        return 64 * 1024 * 1024          # v7x per-TensorCore VMEM (smallest)


def _weight_spec(block_shape, index_map):
    """BlockSpec for a grid-invariant weight operand.

    The block index never changes across the grid, so default 2-deep
    pipelining would only double the resident-weight VMEM footprint.
    Falls back to a plain BlockSpec if per-operand pipeline control is
    unavailable in this jax version.
    """
    try:
        return pl.BlockSpec(block_shape, index_map, pipeline_mode=pl.Buffered(1))
    except Exception:
        return pl.BlockSpec(block_shape, index_map)


# --------------------------------------------------------------------------
# Kernels
# --------------------------------------------------------------------------
def _attn_gru_kernel(enc_ref, hid_ref, emb_ref,
                     w1_ref, w2_ref, b12_ref, vw_ref,
                     gwc_ref, gwe_ref, gb_ref, gbhn_ref,
                     h32_ref, hbf_ref, attn_ref, *, l_valid):
    TB, Lp, Ep = enc_ref.shape
    Dp = w1_ref.shape[1]

    enc = enc_ref[...]                                           # (TB, Lp, Ep) bf16

    # ---- Bahdanau attention: one 2-D MXU GEMM for the score ---------------
    s1 = jnp.dot(enc.reshape(TB * Lp, Ep), w1_ref[...],
                 preferred_element_type=jnp.float32).reshape(TB, Lp, Dp)
    s2 = (jnp.dot(hid_ref[...], w2_ref[...],
                  preferred_element_type=jnp.float32)
          + b12_ref[...])                                        # (TB, Dp), b1+b2 folded
    score = jnp.tanh(s1 + s2[:, None, :])                        # (TB, Lp, Dp) f32

    # e = score @ v_w  (V bias omitted: softmax over L is shift invariant)
    e = jnp.sum(score * vw_ref[...], axis=-1)                    # (TB, Lp) f32
    if l_valid < Lp:                                             # mask L padding
        l_idx = jax.lax.broadcasted_iota(jnp.int32, (TB, Lp), 1)
        e = jnp.where(l_idx < l_valid, e, -jnp.inf)

    m = jnp.max(e, axis=1, keepdims=True)
    p = jnp.exp(e - m)
    attn = p / jnp.sum(p, axis=1, keepdims=True)                 # exact normalization
    attn_ref[...] = attn

    # context vector on the MXU: (TB,1,Lp) x (TB,Lp,Ep) -> (TB,Ep)
    ctx = jnp.einsum('bql,ble->bqe',
                     attn[:, None, :].astype(jnp.bfloat16), enc,
                     preferred_element_type=jnp.float32)[:, 0, :]

    # ---- single-step GRU, h0 == 0 (weight_hh contributes nothing) ---------
    # split input matmul (ctx part + emb part) -> no lane-axis concat.
    gi = (jnp.dot(ctx.astype(jnp.bfloat16), gwc_ref[...],
                  preferred_element_type=jnp.float32)
          + jnp.dot(emb_ref[...], gwe_ref[...],
                    preferred_element_type=jnp.float32)
          + gb_ref[...])                                         # (TB, 3*Dp)
    # gate order matches torch: reset | update | new; Dp is a 128 multiple so
    # every slice is lane-tile aligned.  b_hh already folded into gb for r/z.
    r = jax.nn.sigmoid(gi[:, 0:Dp])
    z = jax.nn.sigmoid(gi[:, Dp:2 * Dp])
    n = jnp.tanh(gi[:, 2 * Dp:3 * Dp] + r * gbhn_ref[...])
    h = (1.0 - z) * n                                            # (TB, Dp) f32

    h32_ref[...] = h
    hbf_ref[...] = h.astype(jnp.bfloat16)


def _fc_kernel(h_ref, fcw_ref, fcb_ref, out_ref):
    out_ref[...] = (jnp.dot(h_ref[...], fcw_ref[...],
                            preferred_element_type=jnp.float32)
                    + fcb_ref[...])


# --------------------------------------------------------------------------
# One-time parameter preparation (hoisted out of the per-step forward)
# --------------------------------------------------------------------------
def prepare_params(params):
    E, D = params['w1'].shape
    EMB = params['embedding'].shape[1]
    V = params['fc_w'].shape[1]
    assert params['fc_w'].shape[0] == D, "fc consumes the GRU output (D == encoder_units)"

    Ep, EMBp, Dp = _round_up(E, 128), _round_up(EMB, 128), _round_up(D, 128)

    vmem_cap = _vmem_capacity_bytes()
    vmem_limit = min(vmem_cap // 2, 64 * 1024 * 1024)    # 64 MiB on v5e/v6e, 32 MiB on v7x
    tv = 1024 if vmem_cap >= 96 * 1024 * 1024 else 512   # vocab tile (lane-dense, MXU-wide)
    tv = min(tv, _round_up(V, 128))
    while tv > 128 and 2 * Dp * tv * 2 > vmem_limit // 2:
        tv //= 2
    Vp = _round_up(V, tv)

    bf, f32 = jnp.bfloat16, jnp.float32

    def pad2(a, r, c, dt):
        return jnp.pad(a, ((0, r - a.shape[0]), (0, c - a.shape[1]))).astype(dt)

    def pad_gates(w, rp, dt):
        # (rows, 3*D) -> (rp, 3*Dp), padding each r|z|n gate block separately
        rows, three_d = w.shape
        d = three_d // 3
        w3 = jnp.pad(w.reshape(rows, 3, d), ((0, rp - rows), (0, 0), (0, Dp - d)))
        return w3.reshape(rp, 3 * Dp).astype(dt)

    # Fold b_hh into b_ih for the r/z gates (h0 == 0); keep b_hh of the n gate
    # separate (torch applies it inside the r* term).
    bi = params['gru_bi'].reshape(3, D)
    bh = params['gru_bh'].reshape(3, D)
    b_gates = jnp.concatenate([bi[0:2] + bh[0:2], bi[2:3]], axis=0).reshape(1, 3 * D)

    return {
        'embedding': pad2(params['embedding'], params['embedding'].shape[0], EMBp, bf),
        'w1':       pad2(params['w1'], Ep, Dp, bf),
        'w2':       pad2(params['w2'], Ep, Dp, bf),
        'b12':      pad2(params['b1'] + params['b2'], 1, Dp, f32),   # folded bias
        'v_w':      pad2(params['v_w'], 1, Dp, f32),
        # v_b omitted: softmax over L is shift invariant, so it cancels exactly.
        'gru_wc':   pad_gates(params['gru_wc'], Ep, bf),
        'gru_we':   pad_gates(params['gru_we'], EMBp, bf),
        'gru_b':    pad_gates(b_gates, 1, f32),
        'gru_bh_n': pad2(bh[2:3], 1, Dp, f32),
        'fc_w':     pad2(params['fc_w'], Dp, Vp, bf),
        'fc_b':     pad2(params['fc_b'], 1, Vp, f32),
        'dims': dict(E=E, D=D, EMB=EMB, V=V, Ep=Ep, EMBp=EMBp, Dp=Dp, Vp=Vp,
                     tv=tv, vmem_limit=vmem_limit),
    }


# --------------------------------------------------------------------------
# pallas_call wrappers
# --------------------------------------------------------------------------
def _attention_gru(enc_p, hid_p, emb_p, prep, tb, Lp, l_valid):
    d = prep['dims']
    Ep, EMBp, Dp = d['Ep'], d['EMBp'], d['Dp']
    Bp = enc_p.shape[0]

    def build(wspec):
        in_specs = [
            pl.BlockSpec((tb, Lp, Ep),   lambda b: (b, 0, 0)),   # encoder output
            pl.BlockSpec((tb, Ep),       lambda b: (b, 0)),      # hidden
            pl.BlockSpec((tb, EMBp),     lambda b: (b, 0)),      # embedded token
            wspec((Ep, Dp),              lambda b: (0, 0)),      # W1
            wspec((Ep, Dp),              lambda b: (0, 0)),      # W2
            wspec((1, Dp),               lambda b: (0, 0)),      # b1 + b2 (folded)
            wspec((1, Dp),               lambda b: (0, 0)),      # V weight
            wspec((Ep, 3 * Dp),          lambda b: (0, 0)),      # GRU W_ih (ctx part)
            wspec((EMBp, 3 * Dp),        lambda b: (0, 0)),      # GRU W_ih (emb part)
            wspec((1, 3 * Dp),           lambda b: (0, 0)),      # GRU bias (b_hh folded r/z)
            wspec((1, Dp),               lambda b: (0, 0)),      # GRU b_hh (n gate)
        ]
        out_specs = (
            pl.BlockSpec((tb, Dp), lambda b: (b, 0)),            # new hidden (f32)
            pl.BlockSpec((tb, Dp), lambda b: (b, 0)),            # new hidden (bf16, -> fc)
            pl.BlockSpec((tb, Lp), lambda b: (b, 0)),            # attention weights
        )
        out_shape = (
            jax.ShapeDtypeStruct((Bp, Dp), jnp.float32),
            jax.ShapeDtypeStruct((Bp, Dp), jnp.bfloat16),
            jax.ShapeDtypeStruct((Bp, Lp), jnp.float32),
        )
        return pl.pallas_call(
            functools.partial(_attn_gru_kernel, l_valid=l_valid),
            out_shape=out_shape,
            grid_spec=pltpu.PrefetchScalarGridSpec(
                num_scalar_prefetch=0, grid=(Bp // tb,),
                in_specs=in_specs, out_specs=out_specs),
            compiler_params=pltpu.CompilerParams(
                dimension_semantics=("parallel",),
                vmem_limit_bytes=d['vmem_limit']),
        )

    args = (enc_p, hid_p, emb_p, prep['w1'], prep['w2'], prep['b12'], prep['v_w'],
            prep['gru_wc'], prep['gru_we'], prep['gru_b'], prep['gru_bh_n'])
    try:
        return build(_weight_spec)(*args)          # single-buffered invariant weights
    except Exception:
        return build(pl.BlockSpec)(*args)          # safe fallback: default buffering


def _fc_projection(h_bf, prep, tb):
    d = prep['dims']
    Dp, Vp, tv = d['Dp'], d['Vp'], d['tv']
    Bp = h_bf.shape[0]
    # vocab outer / batch inner: each fc_w tile is streamed from HBM exactly once
    # and reused across all batch tiles; both axes are "parallel" (v7x megacore).
    grid = (Vp // tv, Bp // tb)
    return pl.pallas_call(
        _fc_kernel,
        out_shape=jax.ShapeDtypeStruct((Bp, Vp), jnp.float32),
        grid_spec=pltpu.PrefetchScalarGridSpec(
            num_scalar_prefetch=0, grid=grid,
            in_specs=[
                pl.BlockSpec((tb, Dp), lambda j, b: (b, 0)),     # GRU output (bf16)
                pl.BlockSpec((Dp, tv), lambda j, b: (0, j)),     # fc weight (vocab tiled)
                pl.BlockSpec((1, tv),  lambda j, b: (0, j)),     # fc bias   (vocab tiled)
            ],
            out_specs=pl.BlockSpec((tb, tv), lambda j, b: (b, j))),
        compiler_params=pltpu.CompilerParams(
            dimension_semantics=("parallel", "parallel"),
            vmem_limit_bytes=d['vmem_limit']),
    )(h_bf, prep['fc_w'], prep['fc_b'])


def decoder_forward(x_tok, hidden, encoder_output, prep):
    """x_tok: (B, 1) int32; hidden: (1, B, E); encoder_output: (L, B, E).

    `prep` is the output of prepare_params (weights already padded / cast).
    Returns (logits (B, V), hidden (1, B, D), attention (B, L, 1)).
    """
    d = prep['dims']
    Ep, D, V = d['Ep'], d['D'], d['V']

    L, B, E = encoder_output.shape
    enc = jnp.transpose(encoder_output, (1, 0, 2))               # (B, L, E)
    hid = hidden[0]                                              # (B, E)
    emb = jnp.take(prep['embedding'], x_tok[:, 0], axis=0)       # (B, EMBp) gather (glue)

    # L sits on a sublane axis -> only needs 16-alignment (bf16), not 128.
    Lp = _round_up(L, 16)
    # Batch tile: >=16 (bf16 sublane packing), up to 256 to fill MXU rows and
    # keep Bp//tb small; shrink only if the double-buffered encoder block is big.
    tb = min(256, _round_up(B, 16))
    while tb > 16 and 2 * tb * Lp * Ep * 2 > d['vmem_limit'] // 2:
        tb //= 2
    Bp = _round_up(B, tb)

    bf = jnp.bfloat16
    enc_p = jnp.pad(enc, ((0, Bp - B), (0, Lp - L), (0, Ep - E))).astype(bf)
    hid_p = jnp.pad(hid, ((0, Bp - B), (0, Ep - E))).astype(bf)
    emb_p = jnp.pad(emb, ((0, Bp - B), (0, 0)))                  # already bf16 / EMBp cols

    h32_p, hbf_p, attn_p = _attention_gru(enc_p, hid_p, emb_p, prep, tb, Lp, L)
    logits_p = _fc_projection(hbf_p, prep, tb)

    logits = logits_p[:B, :V]
    h = h32_p[:B, :D]
    attn = attn_p[:B, :L]
    # match torch return shapes: (B, vocab), (1, B, D), (B, L, 1)
    return logits, h[None, :, :], attn[:, :, None]


# --------------------------------------------------------------------------
# Pure-JAX (f32) reference mirroring the PyTorch forward
# --------------------------------------------------------------------------
def reference_forward(x_tok, hidden, encoder_output, params):
    enc = jnp.transpose(encoder_output, (1, 0, 2))               # (B, L, E)
    hid = jnp.transpose(hidden, (1, 0, 2))                       # (B, 1, E)
    score = jnp.tanh(enc @ params['w1'] + params['b1'] + hid @ params['w2'] + params['b2'])
    e = jnp.einsum('bld,d->bl', score, params['v_w'][0]) + params['v_b'][0, 0]
    attn = jax.nn.softmax(e, axis=1)                             # (B, L)
    ctx = jnp.einsum('bl,ble->be', attn, enc)                    # (B, E)
    emb = params['embedding'][x_tok[:, 0]]
    D = params['w1'].shape[1]
    gi = ctx @ params['gru_wc'] + emb @ params['gru_we'] + params['gru_bi']
    bh = params['gru_bh']
    r = jax.nn.sigmoid(gi[:, 0:D] + bh[:, 0:D])
    z = jax.nn.sigmoid(gi[:, D:2 * D] + bh[:, D:2 * D])
    n = jnp.tanh(gi[:, 2 * D:3 * D] + r * bh[:, 2 * D:3 * D])
    h = (1.0 - z) * n
    logits = h @ params['fc_w'] + params['fc_b']
    return logits, h[None, :, :], attn[:, :, None]


def init_params(key, vocab_size, embedding_dim, decoder_units, encoder_units):
    ks = jax.random.split(key, 12)
    s = 0.1
    D = decoder_units
    return {
        'embedding': s * jax.random.normal(ks[0], (vocab_size, embedding_dim), jnp.float32),
        'w1':     s * jax.random.normal(ks[1], (encoder_units, D), jnp.float32),
        'b1':     s * jax.random.normal(ks[2], (1, D), jnp.float32),
        'w2':     s * jax.random.normal(ks[3], (encoder_units, D), jnp.float32),
        'b2':     s * jax.random.normal(ks[4], (1, D), jnp.float32),
        'v_w':    s * jax.random.normal(ks[5], (1, D), jnp.float32),
        'v_b':    s * jax.random.normal(ks[6], (1, 1), jnp.float32),
        # GRU weight_ih^T split into ctx / emb parts, gate order r|z|n.
        # weight_hh omitted: torch gru is called without a hidden state (h0 == 0).
        'gru_wc': s * jax.random.normal(ks[7], (encoder_units, 3 * D), jnp.float32),
        'gru_we': s * jax.random.normal(ks[8], (embedding_dim, 3 * D), jnp.float32),
        'gru_bi': s * jax.random.normal(ks[9], (1, 3 * D), jnp.float32),
        'gru_bh': s * jax.random.normal(ks[10], (1, 3 * D), jnp.float32),
        'fc_w':   s * jax.random.normal(ks[11], (encoder_units, vocab_size), jnp.float32),
        'fc_b':   s * jax.random.normal(jax.random.fold_in(key, 99), (1, vocab_size), jnp.float32),
    }


if __name__ == "__main__":
    vocab_size, embedding_dim = 32, 16
    encoder_units = decoder_units = 32   # forward only type-checks when equal (fc on GRU output)
    batch_size, max_length = 2, 8

    key = jax.random.PRNGKey(0)
    kp, kx, kh, ke = jax.random.split(key, 4)
    params = init_params(kp, vocab_size, embedding_dim, decoder_units, encoder_units)
    prep = prepare_params(params)        # one-time weight padding/casting (hoisted)

    x_tok = jax.random.randint(kx, (batch_size, 1), 0, vocab_size, dtype=jnp.int32)
    hidden = jax.random.normal(kh, (1, batch_size, encoder_units), jnp.float32)
    encoder_output = jax.random.normal(ke, (max_length, batch_size, encoder_units), jnp.float32)

    logits, h_out, attn = decoder_forward(x_tok, hidden, encoder_output, prep)
    jax.block_until_ready((logits, h_out, attn))

    ref_logits, ref_h, ref_attn = reference_forward(x_tok, hidden, encoder_output, params)
    assert logits.shape == (batch_size, vocab_size)
    assert h_out.shape == (1, batch_size, decoder_units)
    assert attn.shape == (batch_size, max_length, 1)
    # bf16 MXU operands (f32 accumulation) -> relaxed tolerances vs the f32 reference
    np.testing.assert_allclose(np.asarray(logits), np.asarray(ref_logits), rtol=2e-2, atol=2e-2)
    np.testing.assert_allclose(np.asarray(h_out), np.asarray(ref_h), rtol=2e-2, atol=2e-2)
    np.testing.assert_allclose(np.asarray(attn), np.asarray(ref_attn), rtol=2e-2, atol=2e-2)

    print("KERNEL_OK")
</pallas_src>

<mosaic_0001>
module attributes {stable_mosaic.version = 11 : i64} {
  func.func @_attn_gru_kernel(%arg0: i32, %arg1: memref<16x16x128xbf16, #tpu.memory_space<vmem>>, %arg2: memref<16x128xbf16, #tpu.memory_space<vmem>>, %arg3: memref<16x128xbf16, #tpu.memory_space<vmem>>, %arg4: memref<128x128xbf16, #tpu.memory_space<vmem>>, %arg5: memref<128x128xbf16, #tpu.memory_space<vmem>>, %arg6: memref<1x128xf32, #tpu.memory_space<vmem>>, %arg7: memref<1x128xf32, #tpu.memory_space<vmem>>, %arg8: memref<128x384xbf16, #tpu.memory_space<vmem>>, %arg9: memref<128x384xbf16, #tpu.memory_space<vmem>>, %arg10: memref<1x384xf32, #tpu.memory_space<vmem>>, %arg11: memref<1x128xf32, #tpu.memory_space<vmem>>, %arg12: memref<16x128xf32, #tpu.memory_space<vmem>>, %arg13: memref<16x128xbf16, #tpu.memory_space<vmem>>, %arg14: memref<16x16xf32, #tpu.memory_space<vmem>>) attributes {dimension_semantics = [#tpu.dimension_semantics<parallel>], iteration_bounds = array<i64: 1>, scalar_prefetch = 0 : i64, scratch_operands = 0 : i64, tpu.core_type = #tpu.core_type<tc>, window_params = [{transform_indices = @transform_0, window_bounds = array<i64: 16, 16, 128>}, {transform_indices = @transform_1, window_bounds = array<i64: 16, 128>}, {transform_indices = @transform_2, window_bounds = array<i64: 16, 128>}, {pipeline_mode = #tpu.pipeline_mode<synchronous>, transform_indices = @transform_3, window_bounds = array<i64: 128, 128>}, {pipeline_mode = #tpu.pipeline_mode<synchronous>, transform_indices = @transform_4, window_bounds = array<i64: 128, 128>}, {pipeline_mode = #tpu.pipeline_mode<synchronous>, transform_indices = @transform_5, window_bounds = array<i64: 1, 128>}, {pipeline_mode = #tpu.pipeline_mode<synchronous>, transform_indices = @transform_6, window_bounds = array<i64: 1, 128>}, {pipeline_mode = #tpu.pipeline_mode<synchronous>, transform_indices = @transform_7, window_bounds = array<i64: 128, 384>}, {pipeline_mode = #tpu.pipeline_mode<synchronous>, transform_indices = @transform_8, window_bounds = array<i64: 128, 384>}, {pipeline_mode = #tpu.pipeline_mode<synchronous>, transform_indices = @transform_9, window_bounds = array<i64: 1, 384>}, {pipeline_mode = #tpu.pipeline_mode<synchronous>, transform_indices = @transform_10, window_bounds = array<i64: 1, 128>}, {transform_indices = @transform_11, window_bounds = array<i64: 16, 128>}, {transform_indices = @transform_12, window_bounds = array<i64: 16, 128>}, {transform_indices = @transform_13, window_bounds = array<i64: 16, 16>}]} {
    %c0 = arith.constant 0 : index
    %c0_0 = arith.constant 0 : index
    %c0_1 = arith.constant 0 : index
    %0 = vector.load %arg1[%c0, %c0_0, %c0_1] : memref<16x16x128xbf16, #tpu.memory_space<vmem>>, vector<16x16x128xbf16>
    %1 = vector.shape_cast %0 : vector<16x16x128xbf16> to vector<256x128xbf16>
    %c0_2 = arith.constant 0 : index
    %c0_3 = arith.constant 0 : index
    %2 = vector.load %arg4[%c0_2, %c0_3] : memref<128x128xbf16, #tpu.memory_space<vmem>>, vector<128x128xbf16>
    %cst = arith.constant dense<0.000000e+00> : vector<256x128xf32>
    %3 = tpu.matmul %1, %2, %cst {dimension_numbers = #tpu.dot_dimension_numbers<[1], [0], [0], [1], [0, 0, 1, 1], [], []>} : vector<256x128xbf16>, vector<128x128xbf16>, vector<256x128xf32> -> vector<256x128xf32>
    %4 = vector.shape_cast %3 : vector<256x128xf32> to vector<16x16x128xf32>
    %c0_4 = arith.constant 0 : index
    %c0_5 = arith.constant 0 : index
    %5 = vector.load %arg2[%c0_4, %c0_5] : memref<16x128xbf16, #tpu.memory_space<vmem>>, vector<16x128xbf16>
    %c0_6 = arith.constant 0 : index
    %c0_7 = arith.constant 0 : index
    %6 = vector.load %arg5[%c0_6, %c0_7] : memref<128x128xbf16, #tpu.memory_space<vmem>>, vector<128x128xbf16>
    %cst_8 = arith.constant dense<0.000000e+00> : vector<16x128xf32>
    %7 = tpu.matmul %5, %6, %cst_8 {dimension_numbers = #tpu.dot_dimension_numbers<[1], [0], [0], [1], [0, 0, 1, 1], [], []>} : vector<16x128xbf16>, vector<128x128xbf16>, vector<16x128xf32> -> vector<16x128xf32>
    %c0_9 = arith.constant 0 : index
    %c0_10 = arith.constant 0 : index
    %8 = vector.load %arg6[%c0_9, %c0_10] : memref<1x128xf32, #tpu.memory_space<vmem>>, vector<1x128xf32>
    %9 = vector.broadcast %8 : vector<1x128xf32> to vector<16x128xf32>
    %10 = arith.addf %7, %9 : vector<16x128xf32>
    %11 = vector.shape_cast %10 : vector<16x128xf32> to vector<16x1x128xf32>
    %12 = vector.broadcast %11 : vector<16x1x128xf32> to vector<16x16x128xf32>
    %13 = arith.addf %4, %12 : vector<16x16x128xf32>
    %14 = math.tanh %13 : vector<16x16x128xf32>
    %c0_11 = arith.constant 0 : index
    %c0_12 = arith.constant 0 : index
    %15 = vector.load %arg7[%c0_11, %c0_12] : memref<1x128xf32, #tpu.memory_space<vmem>>, vector<1x128xf32>
    %16 = vector.shape_cast %15 : vector<1x128xf32> to vector<1x1x128xf32>
    %17 = vector.broadcast %16 : vector<1x1x128xf32> to vector<16x16x128xf32>
    %18 = arith.mulf %14, %17 : vector<16x16x128xf32>
    %cst_13 = arith.constant dense<0.000000e+00> : vector<16x16xf32>
    %19 = vector.multi_reduction <add>, %18, %cst_13 [2] : vector<16x16x128xf32> to vector<16x16xf32>
    %20 = tpu.iota {dimensions = array<i32: 1>} : vector<16x16xi32>
    %c8_i32 = arith.constant 8 : i32
    %21 = vector.broadcast %c8_i32 : i32 to vector<16x16xi32>
    %22 = arith.cmpi slt, %20, %21 : vector<16x16xi32>
    %cst_14 = arith.constant 0xFF800000 : f32
    %23 = vector.broadcast %cst_14 : f32 to vector<16x16xf32>
    %24 = arith.select %22, %19, %23 : vector<16x16xi1>, vector<16x16xf32>
    %cst_15 = arith.constant dense<0xFF800000> : vector<16xf32>
    %25 = vector.multi_reduction <maximumf>, %24, %cst_15 [1] : vector<16x16xf32> to vector<16xf32>
    %26 = vector.shape_cast %25 : vector<16xf32> to vector<16x1xf32>
    %27 = vector.broadcast %26 : vector<16x1xf32> to vector<16x16xf32>
    %28 = arith.subf %24, %27 : vector<16x16xf32>
    %29 = math.exp %28 : vector<16x16xf32>
    %cst_16 = arith.constant dense<0.000000e+00> : vector<16xf32>
    %30 = vector.multi_reduction <add>, %29, %cst_16 [1] : vector<16x16xf32> to vector<16xf32>
    %31 = vector.shape_cast %30 : vector<16xf32> to vector<16x1xf32>
    %32 = vector.broadcast %31 : vector<16x1xf32> to vector<16x16xf32>
    %33 = arith.divf %29, %32 : vector<16x16xf32>
    %c0_17 = arith.constant 0 : index
    %c0_18 = arith.constant 0 : index
    %34 = vector.load %arg14[%c0_17, %c0_18] : memref<16x16xf32, #tpu.memory_space<vmem>>, vector<16x16xf32>
    tpu.vector_store %arg14[%c0_17, %c0_18], %33 {strides = array<i32>} : memref<16x16xf32, #tpu.memory_space<vmem>>, vector<16x16xf32>,
    %35 = vector.shape_cast %33 : vector<16x16xf32> to vector<16x1x16xf32>
    %36 = arith.truncf %35 : vector<16x1x16xf32> to vector<16x1x16xbf16>
    "tpu.trace_start"() <{level = 10 : i32, message = "bql,ble->bqe"}> : () -> ()
    %cst_19 = arith.constant dense<0.000000e+00> : vector<16x1x128xf32>
    %37 = tpu.matmul %36, %0, %cst_19 {dimension_numbers = #tpu.dot_dimension_numbers<[2], [1], [1], [2], [0, 0, 0, 1, 1, 2], [0], [0]>} : vector<16x1x16xbf16>, vector<16x16x128xbf16>, vector<16x1x128xf32> -> vector<16x1x128xf32>
    "tpu.trace_stop"() : () -> ()
    %38 = vector.shape_cast %37 : vector<16x1x128xf32> to vector<16x128xf32>
    %39 = arith.truncf %38 : vector<16x128xf32> to vector<16x128xbf16>
    %c0_20 = arith.constant 0 : index
    %c0_21 = arith.constant 0 : index
    %40 = vector.load %arg8[%c0_20, %c0_21] : memref<128x384xbf16, #tpu.memory_space<vmem>>, vector<128x384xbf16>
    %cst_22 = arith.constant dense<0.000000e+00> : vector<16x384xf32>
    %41 = tpu.matmul %39, %40, %cst_22 {dimension_numbers = #tpu.dot_dimension_numbers<[1], [0], [0], [1], [0, 0, 1, 1], [], []>} : vector<16x128xbf16>, vector<128x384xbf16>, vector<16x384xf32> -> vector<16x384xf32>
    %c0_23 = arith.constant 0 : index
    %c0_24 = arith.constant 0 : index
    %42 = vector.load %arg3[%c0_23, %c0_24] : memref<16x128xbf16, #tpu.memory_space<vmem>>, vector<16x128xbf16>
    %c0_25 = arith.constant 0 : index
    %c0_26 = arith.constant 0 : index
    %43 = vector.load %arg9[%c0_25, %c0_26] : memref<128x384xbf16, #tpu.memory_space<vmem>>, vector<128x384xbf16>
    %cst_27 = arith.constant dense<0.000000e+00> : vector<16x384xf32>
    %44 = tpu.matmul %42, %43, %cst_27 {dimension_numbers = #tpu.dot_dimension_numbers<[1], [0], [0], [1], [0, 0, 1, 1], [], []>} : vector<16x128xbf16>, vector<128x384xbf16>, vector<16x384xf32> -> vector<16x384xf32>
    %45 = arith.addf %41, %44 : vector<16x384xf32>
    %c0_28 = arith.constant 0 : index
    %c0_29 = arith.constant 0 : index
    %46 = vector.load %arg10[%c0_28, %c0_29] : memref<1x384xf32, #tpu.memory_space<vmem>>, vector<1x384xf32>
    %47 = vector.broadcast %46 : vector<1x384xf32> to vector<16x384xf32>
    %48 = arith.addf %45, %47 : vector<16x384xf32>
    %49 = vector.extract_strided_slice %48 {offsets = [0, 0], sizes = [16, 128], strides = [1, 1]} : vector<16x384xf32> to vector<16x128xf32>
    %50 = arith.negf %49 : vector<16x128xf32>
    %51 = math.exp %50 : vector<16x128xf32>
    %cst_30 = arith.constant 1.000000e+00 : f32
    %52 = vector.broadcast %cst_30 : f32 to vector<16x128xf32>
    %53 = arith.addf %52, %51 : vector<16x128xf32>
    %54 = arith.divf %52, %53 : vector<16x128xf32>
    %55 = vector.extract_strided_slice %48 {offsets = [0, 128], sizes = [16, 128], strides = [1, 1]} : vector<16x384xf32> to vector<16x128xf32>
    %56 = arith.negf %55 : vector<16x128xf32>
    %57 = math.exp %56 : vector<16x128xf32>
    %cst_31 = arith.constant 1.000000e+00 : f32
    %58 = vector.broadcast %cst_31 : f32 to vector<16x128xf32>
    %59 = arith.addf %58, %57 : vector<16x128xf32>
    %60 = arith.divf %58, %59 : vector<16x128xf32>
    %61 = vector.extract_strided_slice %48 {offsets = [0, 256], sizes = [16, 128], strides = [1, 1]} : vector<16x384xf32> to vector<16x128xf32>
    %c0_32 = arith.constant 0 : index
    %c0_33 = arith.constant 0 : index
    %62 = vector.load %arg11[%c0_32, %c0_33] : memref<1x128xf32, #tpu.memory_space<vmem>>, vector<1x128xf32>
    %63 = vector.broadcast %62 : vector<1x128xf32> to vector<16x128xf32>
    %64 = arith.mulf %54, %63 : vector<16x128xf32>
    %65 = arith.addf %61, %64 : vector<16x128xf32>
    %66 = math.tanh %65 : vector<16x128xf32>
    %cst_34 = arith.constant 1.000000e+00 : f32
    %67 = vector.broadcast %cst_34 : f32 to vector<16x128xf32>
    %68 = arith.subf %67, %60 : vector<16x128xf32>
    %69 = arith.mulf %68, %66 : vector<16x128xf32>
    %c0_35 = arith.constant 0 : index
    %c0_36 = arith.constant 0 : index
    %70 = vector.load %arg12[%c0_35, %c0_36] : memref<16x128xf32, #tpu.memory_space<vmem>>, vector<16x128xf32>
    tpu.vector_store %arg12[%c0_35, %c0_36], %69 {strides = array<i32>} : memref<16x128xf32, #tpu.memory_space<vmem>>, vector<16x128xf32>,
    %71 = arith.truncf %69 : vector<16x128xf32> to vector<16x128xbf16>
    %c0_37 = arith.constant 0 : index
    %c0_38 = arith.constant 0 : index
    %72 = vector.load %arg13[%c0_37, %c0_38] : memref<16x128xbf16, #tpu.memory_space<vmem>>, vector<16x128xbf16>
    tpu.vector_store %arg13[%c0_37, %c0_38], %71 {strides = array<i32>} : memref<16x128xbf16, #tpu.memory_space<vmem>>, vector<16x128xbf16>,
    return
  }
  func.func @transform_0(%arg0: i32) -> (i32, i32, i32) {
    %c0_i32 = arith.constant 0 : i32
    %c0_i32_0 = arith.constant 0 : i32
    %c0_i32_1 = arith.constant 0 : i32
    return %arg0, %c0_i32, %c0_i32_0 : i32, i32, i32
  }
  func.func @transform_1(%arg0: i32) -> (i32, i32) {
    %c0_i32 = arith.constant 0 : i32
    %c0_i32_0 = arith.constant 0 : i32
    return %arg0, %c0_i32 : i32, i32
  }
  func.func @transform_2(%arg0: i32) -> (i32, i32) {
    %c0_i32 = arith.constant 0 : i32
    %c0_i32_0 = arith.constant 0 : i32
    return %arg0, %c0_i32 : i32, i32
  }
  func.func @transform_3(%arg0: i32) -> (i32, i32) {
    %c0_i32 = arith.constant 0 : i32
    %c0_i32_0 = arith.constant 0 : i32
    %c0_i32_1 = arith.constant 0 : i32
    return %c0_i32, %c0_i32_0 : i32, i32
  }
  func.func @transform_4(%arg0: i32) -> (i32, i32) {
    %c0_i32 = arith.constant 0 : i32
    %c0_i32_0 = arith.constant 0 : i32
    %c0_i32_1 = arith.constant 0 : i32
    return %c0_i32, %c0_i32_0 : i32, i32
  }
  func.func @transform_5(%arg0: i32) -> (i32, i32) {
    %c0_i32 = arith.constant 0 : i32
    %c0_i32_0 = arith.constant 0 : i32
    %c0_i32_1 = arith.constant 0 : i32
    return %c0_i32, %c0_i32_0 : i32, i32
  }
  func.func @transform_6(%arg0: i32) -> (i32, i32) {
    %c0_i32 = arith.constant 0 : i32
    %c0_i32_0 = arith.constant 0 : i32
    %c0_i32_1 = arith.constant 0 : i32
    return %c0_i32, %c0_i32_0 : i32, i32
  }
  func.func @transform_7(%arg0: i32) -> (i32, i32) {
    %c0_i32 = arith.constant 0 : i32
    %c0_i32_0 = arith.constant 0 : i32
    %c0_i32_1 = arith.constant 0 : i32
    return %c0_i32, %c0_i32_0 : i32, i32
  }
  func.func @transform_8(%arg0: i32) -> (i32, i32) {
    %c0_i32 = arith.constant 0 : i32
    %c0_i32_0 = arith.constant 0 : i32
    %c0_i32_1 = arith.constant 0 : i32
    return %c0_i32, %c0_i32_0 : i32, i32
  }
  func.func @transform_9(%arg0: i32) -> (i32, i32) {
    %c0_i32 = arith.constant 0 : i32
    %c0_i32_0 = arith.constant 0 : i32
    %c0_i32_1 = arith.constant 0 : i32
    return %c0_i32, %c0_i32_0 : i32, i32
  }
  func.func @transform_10(%arg0: i32) -> (i32, i32) {
    %c0_i32 = arith.constant 0 : i32
    %c0_i32_0 = arith.constant 0 : i32
    %c0_i32_1 = arith.constant 0 : i32
    return %c0_i32, %c0_i32_0 : i32, i32
  }
  func.func @transform_11(%arg0: i32) -> (i32, i32) {
    %c0_i32 = arith.constant 0 : i32
    %c0_i32_0 = arith.constant 0 : i32
    return %arg0, %c0_i32 : i32, i32
  }
  func.func @transform_12(%arg0: i32) -> (i32, i32) {
    %c0_i32 = arith.constant 0 : i32
    %c0_i32_0 = arith.constant 0 : i32
    return %arg0, %c0_i32 : i32, i32
  }
  func.func @transform_13(%arg0: i32) -> (i32, i32) {
    %c0_i32 = arith.constant 0 : i32
    %c0_i32_0 = arith.constant 0 : i32
    return %arg0, %c0_i32 : i32, i32
  }
}

module attributes {stable_mosaic.version = 11 : i64} {
  func.func @_attn_gru_kernel(%arg0: i32, %arg1: memref<16x16x128xbf16, #tpu.memory_space<vmem>>, %arg2: memref<16x128xbf16, #tpu.memory_space<vmem>>, %arg3: memref<16x128xbf16, #tpu.memory_space<vmem>>, %arg4: memref<128x128xbf16, #tpu.memory_space<vmem>>, %arg5: memref<128x128xbf16, #tpu.memory_space<vmem>>, %arg6: memref<1x128xf32, #tpu.memory_space<vmem>>, %arg7: memref<1x128xf32, #tpu.memory_space<vmem>>, %arg8: memref<128x384xbf16, #tpu.memory_space<vmem>>, %arg9: memref<128x384xbf16, #tpu.memory_space<vmem>>, %arg10: memref<1x384xf32, #tpu.memory_space<vmem>>, %arg11: memref<1x128xf32, #tpu.memory_space<vmem>>, %arg12: memref<16x128xf32, #tpu.memory_space<vmem>>, %arg13: memref<16x128xbf16, #tpu.memory_space<vmem>>, %arg14: memref<16x16xf32, #tpu.memory_space<vmem>>) attributes {dimension_semantics = [#tpu.dimension_semantics<parallel>], iteration_bounds = array<i64: 1>, scalar_prefetch = 0 : i64, scratch_operands = 0 : i64, tpu.core_type = #tpu.core_type<tc>, window_params = [{transform_indices = @transform_0, window_bounds = array<i64: 16, 16, 128>}, {transform_indices = @transform_1, window_bounds = array<i64: 16, 128>}, {transform_indices = @transform_2, window_bounds = array<i64: 16, 128>}, {pipeline_mode = #tpu.pipeline_mode<synchronous>, transform_indices = @transform_3, window_bounds = array<i64: 128, 128>}, {pipeline_mode = #tpu.pipeline_mode<synchronous>, transform_indices = @transform_4, window_bounds = array<i64: 128, 128>}, {pipeline_mode = #tpu.pipeline_mode<synchronous>, transform_indices = @transform_5, window_bounds = array<i64: 1, 128>}, {pipeline_mode = #tpu.pipeline_mode<synchronous>, transform_indices = @transform_6, window_bounds = array<i64: 1, 128>}, {pipeline_mode = #tpu.pipeline_mode<synchronous>, transform_indices = @transform_7, window_bounds = array<i64: 128, 384>}, {pipeline_mode = #tpu.pipeline_mode<synchronous>, transform_indices = @transform_8, window_bounds = array<i64: 128, 384>}, {pipeline_mode = #tpu.pipeline_mode<synchronous>, transform_indices = @transform_9, window_bounds = array<i64: 1, 384>}, {pipeline_mode = #tpu.pipeline_mode<synchronous>, transform_indices = @transform_10, window_bounds = array<i64: 1, 128>}, {transform_indices = @transform_11, window_bounds = array<i64: 16, 128>}, {transform_indices = @transform_12, window_bounds = array<i64: 16, 128>}, {transform_indices = @transform_13, window_bounds = array<i64: 16, 16>}]} {
    %c0 = arith.constant 0 : index
    %c0_0 = arith.constant 0 : index
    %c0_1 = arith.constant 0 : index
    %0 = vector.load %arg1[%c0, %c0_0, %c0_1] : memref<16x16x128xbf16, #tpu.memory_space<vmem>>, vector<16x16x128xbf16>
    %1 = vector.shape_cast %0 : vector<16x16x128xbf16> to vector<256x128xbf16>
    %c0_2 = arith.constant 0 : index
    %c0_3 = arith.constant 0 : index
    %2 = vector.load %arg4[%c0_2, %c0_3] : memref<128x128xbf16, #tpu.memory_space<vmem>>, vector<128x128xbf16>
    %cst = arith.constant dense<0.000000e+00> : vector<256x128xf32>
    %3 = tpu.matmul %1, %2, %cst {dimension_numbers = #tpu.dot_dimension_numbers<[1], [0], [0], [1], [0, 0, 1, 1], [], []>} : vector<256x128xbf16>, vector<128x128xbf16>, vector<256x128xf32> -> vector<256x128xf32>
    %4 = vector.shape_cast %3 : vector<256x128xf32> to vector<16x16x128xf32>
    %c0_4 = arith.constant 0 : index
    %c0_5 = arith.constant 0 : index
    %5 = vector.load %arg2[%c0_4, %c0_5] : memref<16x128xbf16, #tpu.memory_space<vmem>>, vector<16x128xbf16>
    %c0_6 = arith.constant 0 : index
    %c0_7 = arith.constant 0 : index
    %6 = vector.load %arg5[%c0_6, %c0_7] : memref<128x128xbf16, #tpu.memory_space<vmem>>, vector<128x128xbf16>
    %cst_8 = arith.constant dense<0.000000e+00> : vector<16x128xf32>
    %7 = tpu.matmul %5, %6, %cst_8 {dimension_numbers = #tpu.dot_dimension_numbers<[1], [0], [0], [1], [0, 0, 1, 1], [], []>} : vector<16x128xbf16>, vector<128x128xbf16>, vector<16x128xf32> -> vector<16x128xf32>
    %c0_9 = arith.constant 0 : index
    %c0_10 = arith.constant 0 : index
    %8 = vector.load %arg6[%c0_9, %c0_10] : memref<1x128xf32, #tpu.memory_space<vmem>>, vector<1x128xf32>
    %9 = vector.broadcast %8 : vector<1x128xf32> to vector<16x128xf32>
    %10 = arith.addf %7, %9 : vector<16x128xf32>
    %11 = vector.shape_cast %10 : vector<16x128xf32> to vector<16x1x128xf32>
    %12 = vector.broadcast %11 : vector<16x1x128xf32> to vector<16x16x128xf32>
    %13 = arith.addf %4, %12 : vector<16x16x128xf32>
    %14 = math.tanh %13 : vector<16x16x128xf32>
    %c0_11 = arith.constant 0 : index
    %c0_12 = arith.constant 0 : index
    %15 = vector.load %arg7[%c0_11, %c0_12] : memref<1x128xf32, #tpu.memory_space<vmem>>, vector<1x128xf32>
    %16 = vector.shape_cast %15 : vector<1x128xf32> to vector<1x1x128xf32>
    %17 = vector.broadcast %16 : vector<1x1x128xf32> to vector<16x16x128xf32>
    %18 = arith.mulf %14, %17 : vector<16x16x128xf32>
    %cst_13 = arith.constant dense<0.000000e+00> : vector<16x16xf32>
    %19 = vector.multi_reduction <add>, %18, %cst_13 [2] : vector<16x16x128xf32> to vector<16x16xf32>
    %20 = tpu.iota {dimensions = array<i32: 1>} : vector<16x16xi32>
    %c8_i32 = arith.constant 8 : i32
    %21 = vector.broadcast %c8_i32 : i32 to vector<16x16xi32>
    %22 = arith.cmpi slt, %20, %21 : vector<16x16xi32>
    %cst_14 = arith.constant 0xFF800000 : f32
    %23 = vector.broadcast %cst_14 : f32 to vector<16x16xf32>
    %24 = arith.select %22, %19, %23 : vector<16x16xi1>, vector<16x16xf32>
    %cst_15 = arith.constant dense<0xFF800000> : vector<16xf32>
    %25 = vector.multi_reduction <maximumf>, %24, %cst_15 [1] : vector<16x16xf32> to vector<16xf32>
    %26 = vector.shape_cast %25 : vector<16xf32> to vector<16x1xf32>
    %27 = vector.broadcast %26 : vector<16x1xf32> to vector<16x16xf32>
    %28 = arith.subf %24, %27 : vector<16x16xf32>
    %29 = math.exp %28 : vector<16x16xf32>
    %cst_16 = arith.constant dense<0.000000e+00> : vector<16xf32>
    %30 = vector.multi_reduction <add>, %29, %cst_16 [1] : vector<16x16xf32> to vector<16xf32>
    %31 = vector.shape_cast %30 : vector<16xf32> to vector<16x1xf32>
    %32 = vector.broadcast %31 : vector<16x1xf32> to vector<16x16xf32>
    %33 = arith.divf %29, %32 : vector<16x16xf32>
    %c0_17 = arith.constant 0 : index
    %c0_18 = arith.constant 0 : index
    %34 = vector.load %arg14[%c0_17, %c0_18] : memref<16x16xf32, #tpu.memory_space<vmem>>, vector<16x16xf32>
    tpu.vector_store %arg14[%c0_17, %c0_18], %33 {strides = array<i32>} : memref<16x16xf32, #tpu.memory_space<vmem>>, vector<16x16xf32>,
    %35 = vector.shape_cast %33 : vector<16x16xf32> to vector<16x1x16xf32>
    %36 = arith.truncf %35 : vector<16x1x16xf32> to vector<16x1x16xbf16>
    "tpu.trace_start"() <{level = 10 : i32, message = "bql,ble->bqe"}> : () -> ()
    %cst_19 = arith.constant dense<0.000000e+00> : vector<16x1x128xf32>
    %37 = tpu.matmul %36, %0, %cst_19 {dimension_numbers = #tpu.dot_dimension_numbers<[2], [1], [1], [2], [0, 0, 0, 1, 1, 2], [0], [0]>} : vector<16x1x16xbf16>, vector<16x16x128xbf16>, vector<16x1x128xf32> -> vector<16x1x128xf32>
    "tpu.trace_stop"() : () -> ()
    %38 = vector.shape_cast %37 : vector<16x1x128xf32> to vector<16x128xf32>
    %39 = arith.truncf %38 : vector<16x128xf32> to vector<16x128xbf16>
    %c0_20 = arith.constant 0 : index
    %c0_21 = arith.constant 0 : index
    %40 = vector.load %arg8[%c0_20, %c0_21] : memref<128x384xbf16, #tpu.memory_space<vmem>>, vector<128x384xbf16>
    %cst_22 = arith.constant dense<0.000000e+00> : vector<16x384xf32>
    %41 = tpu.matmul %39, %40, %cst_22 {dimension_numbers = #tpu.dot_dimension_numbers<[1], [0], [0], [1], [0, 0, 1, 1], [], []>} : vector<16x128xbf16>, vector<128x384xbf16>, vector<16x384xf32> -> vector<16x384xf32>
    %c0_23 = arith.constant 0 : index
    %c0_24 = arith.constant 0 : index
    %42 = vector.load %arg3[%c0_23, %c0_24] : memref<16x128xbf16, #tpu.memory_space<vmem>>, vector<16x128xbf16>
    %c0_25 = arith.constant 0 : index
    %c0_26 = arith.constant 0 : index
    %43 = vector.load %arg9[%c0_25, %c0_26] : memref<128x384xbf16, #tpu.memory_space<vmem>>, vector<128x384xbf16>
    %cst_27 = arith.constant dense<0.000000e+00> : vector<16x384xf32>
    %44 = tpu.matmul %42, %43, %cst_27 {dimension_numbers = #tpu.dot_dimension_numbers<[1], [0], [0], [1], [0, 0, 1, 1], [], []>} : vector<16x128xbf16>, vector<128x384xbf16>, vector<16x384xf32> -> vector<16x384xf32>
    %45 = arith.addf %41, %44 : vector<16x384xf32>
    %c0_28 = arith.constant 0 : index
    %c0_29 = arith.constant 0 : index
    %46 = vector.load %arg10[%c0_28, %c0_29] : memref<1x384xf32, #tpu.memory_space<vmem>>, vector<1x384xf32>
    %47 = vector.broadcast %46 : vector<1x384xf32> to vector<16x384xf32>
    %48 = arith.addf %45, %47 : vector<16x384xf32>
    %49 = vector.extract_strided_slice %48 {offsets = [0, 0], sizes = [16, 128], strides = [1, 1]} : vector<16x384xf32> to vector<16x128xf32>
    %50 = arith.negf %49 : vector<16x128xf32>
    %51 = math.exp %50 : vector<16x128xf32>
    %cst_30 = arith.constant 1.000000e+00 : f32
    %52 = vector.broadcast %cst_30 : f32 to vector<16x128xf32>
    %53 = arith.addf %52, %51 : vector<16x128xf32>
    %54 = arith.divf %52, %53 : vector<16x128xf32>
    %55 = vector.extract_strided_slice %48 {offsets = [0, 128], sizes = [16, 128], strides = [1, 1]} : vector<16x384xf32> to vector<16x128xf32>
    %56 = arith.negf %55 : vector<16x128xf32>
    %57 = math.exp %56 : vector<16x128xf32>
    %cst_31 = arith.constant 1.000000e+00 : f32
    %58 = vector.broadcast %cst_31 : f32 to vector<16x128xf32>
    %59 = arith.addf %58, %57 : vector<16x128xf32>
    %60 = arith.divf %58, %59 : vector<16x128xf32>
    %61 = vector.extract_strided_slice %48 {offsets = [0, 256], sizes = [16, 128], strides = [1, 1]} : vector<16x384xf32> to vector<16x128xf32>
    %c0_32 = arith.constant 0 : index
    %c0_33 = arith.constant 0 : index
    %62 = vector.load %arg11[%c0_32, %c0_33] : memref<1x128xf32, #tpu.memory_space<vmem>>, vector<1x128xf32>
    %63 = vector.broadcast %62 : vector<1x128xf32> to vector<16x128xf32>
    %64 = arith.mulf %54, %63 : vector<16x128xf32>
    %65 = arith.addf %61, %64 : vector<16x128xf32>
    %66 = math.tanh %65 : vector<16x128xf32>
    %cst_34 = arith.constant 1.000000e+00 : f32
    %67 = vector.broadcast %cst_34 : f32 to vector<16x128xf32>
    %68 = arith.subf %67, %60 : vector<16x128xf32>
    %69 = arith.mulf %68, %66 : vector<16x128xf32>
    %c0_35 = arith.constant 0 : index
    %c0_36 = arith.constant 0 : index
    %70 = vector.load %arg12[%c0_35, %c0_36] : memref<16x128xf32, #tpu.memory_space<vmem>>, vector<16x128xf32>
    tpu.vector_store %arg12[%c0_35, %c0_36], %69 {strides = array<i32>} : memref<16x128xf32, #tpu.memory_space<vmem>>, vector<16x128xf32>,
    %71 = arith.truncf %69 : vector<16x128xf32> to vector<16x128xbf16>
    %c0_37 = arith.constant 0 : index
    %c0_38 = arith.constant 0 : index
    %72 = vector.load %arg13[%c0_37, %c0_38] : memref<16x128xbf16, #tpu.memory_space<vmem>>, vector<16x128xbf16>
    tpu.vector_store %arg13[%c0_37, %c0_38], %71 {strides = array<i32>} : memref<16x128xbf16, #tpu.memory_space<vmem>>, vector<16x128xbf16>,
    return
  }
  func.func @transform_0(%arg0: i32) -> (i32, i32, i32) {
    %c0_i32 = arith.constant 0 : i32
    %c0_i32_0 = arith.constant 0 : i32
    %c0_i32_1 = arith.constant 0 : i32
    return %arg0, %c0_i32, %c0_i32_0 : i32, i32, i32
  }
  func.func @transform_1(%arg0: i32) -> (i32, i32) {
    %c0_i32 = arith.constant 0 : i32
    %c0_i32_0 = arith.constant 0 : i32
    return %arg0, %c0_i32 : i32, i32
  }
  func.func @transform_2(%arg0: i32) -> (i32, i32) {
    %c0_i32 = arith.constant 0 : i32
    %c0_i32_0 = arith.constant 0 : i32
    return %arg0, %c0_i32 : i32, i32
  }
  func.func @transform_3(%arg0: i32) -> (i32, i32) {
    %c0_i32 = arith.constant 0 : i32
    %c0_i32_0 = arith.constant 0 : i32
    %c0_i32_1 = arith.constant 0 : i32
    return %c0_i32, %c0_i32_0 : i32, i32
  }
  func.func @transform_4(%arg0: i32) -> (i32, i32) {
    %c0_i32 = arith.constant 0 : i32
    %c0_i32_0 = arith.constant 0 : i32
    %c0_i32_1 = arith.constant 0 : i32
    return %c0_i32, %c0_i32_0 : i32, i32
  }
  func.func @transform_5(%arg0: i32) -> (i32, i32) {
    %c0_i32 = arith.constant 0 : i32
    %c0_i32_0 = arith.constant 0 : i32
    %c0_i32_1 = arith.constant 0 : i32
    return %c0_i32, %c0_i32_0 : i32, i32
  }
  func.func @transform_6(%arg0: i32) -> (i32, i32) {
    %c0_i32 = arith.constant 0 : i32
    %c0_i32_0 = arith.constant 0 : i32
    %c0_i32_1 = arith.constant 0 : i32
    return %c0_i32, %c0_i32_0 : i32, i32
  }
  func.func @transform_7(%arg0: i32) -> (i32, i32) {
    %c0_i32 = arith.constant 0 : i32
    %c0_i32_0 = arith.constant 0 : i32
    %c0_i32_1 = arith.constant 0 : i32
    return %c0_i32, %c0_i32_0 : i32, i32
  }
  func.func @transform_8(%arg0: i32) -> (i32, i32) {
    %c0_i32 = arith.constant 0 : i32
    %c0_i32_0 = arith.constant 0 : i32
    %c0_i32_1 = arith.constant 0 : i32
    return %c0_i32, %c0_i32_0 : i32, i32
  }
  func.func @transform_9(%arg0: i32) -> (i32, i32) {
    %c0_i32 = arith.constant 0 : i32
    %c0_i32_0 = arith.constant 0 : i32
    %c0_i32_1 = arith.constant 0 : i32
    return %c0_i32, %c0_i32_0 : i32, i32
  }
  func.func @transform_10(%arg0: i32) -> (i32, i32) {
    %c0_i32 = arith.constant 0 : i32
    %c0_i32_0 = arith.constant 0 : i32
    %c0_i32_1 = arith.constant 0 : i32
    return %c0_i32, %c0_i32_0 : i32, i32
  }
  func.func @transform_11(%arg0: i32) -> (i32, i32) {
    %c0_i32 = arith.constant 0 : i32
    %c0_i32_0 = arith.constant 0 : i32
    return %arg0, %c0_i32 : i32, i32
  }
  func.func @transform_12(%arg0: i32) -> (i32, i32) {
    %c0_i32 = arith.constant 0 : i32
    %c0_i32_0 = arith.constant 0 : i32
    return %arg0, %c0_i32 : i32, i32
  }
  func.func @transform_13(%arg0: i32) -> (i32, i32) {
    %c0_i32 = arith.constant 0 : i32
    %c0_i32_0 = arith.constant 0 : i32
    return %arg0, %c0_i32 : i32, i32
  }
}

</mosaic_0001>

<bundles_post_ra>
// kernel: tpu_custom_call.1
= control target key start
LH: loop header
LB: loop body
LE: loop exit
PB: predicated region body
PF: predicated region fallthrough
CT: control target
= control target key end

     0   :  { %19 = vsyncpa [#allocation3], 0  ;;  %s4036_s0 = inlined_call_operand.hbm [shape: bf16[16,16,128], index: 0, kind: input, shape index: {}]   ;;  %s4037_s1 = inlined_call_operand.hbm [shape: bf16[16,128], index: 1, kind: input, shape index: {}]   ;;  %s4038_s2 = inlined_call_operand.hbm [shape: bf16[16,128], index: 2, kind: input, shape index: {}]   ;;  %s4039_s3 = inlined_call_operand.hbm [shape: bf16[128,128], index: 3, kind: input, shape index: {}]   ;;  %s4040_s4 = inlined_call_operand.hbm [shape: bf16[128,128], index: 4, kind: input, shape index: {}]   ;;  %s4041_s5 = inlined_call_operand.vmem [shape: f32[1,128], index: 5, kind: input, shape index: {}]   ;;  %s4042_s6 = inlined_call_operand.vmem [shape: f32[1,128], index: 6, kind: input, shape index: {}]   ;;  %s4043_s7 = inlined_call_operand.hbm [shape: bf16[128,384], index: 7, kind: input, shape index: {}]   ;;  %s4044_s8 = inlined_call_operand.hbm [shape: bf16[128,384], index: 8, kind: input, shape index: {}]   ;;  %s4045_s9 = inlined_call_operand.vmem [shape: f32[1,384], index: 9, kind: input, shape index: {}]   ;;  %s4046_s10 = inlined_call_operand.vmem [shape: f32[1,128], index: 10, kind: input, shape index: {}]   ;;  %s4047_s11 = inlined_call_operand.hbm [shape: f32[16,128], index: 11, kind: output, shape index: {0}]   ;;  %s4048_s12 = inlined_call_operand.hbm [shape: bf16[16,128], index: 12, kind: output, shape index: {1}]   ;;  %s4049_s13 = inlined_call_operand.hbm [shape: f32[16,16], index: 13, kind: output, shape index: {2}]  }
   0x1   :  { %20 = vsyncpa [#allocation6], 0 }
   0x2   :  { %21 = vsyncpa [#allocation9], 0 }
   0x3   :  { %22 = vsyncpa [#allocation12], 0 }
   0x4   :  { %23 = vsyncpa [#allocation4], 0 }
   0x5   :  { %24 = vsyncpa [#allocation16], 0  ;;  %s3534_s25 = smov [#allocation5]   ;;  %s3535_s27 = smov [#allocation8]  }
   0x6   :  { %s42_s26 = sshll.u32 %s3534_s25, 4  ;;  %s66_s28 = sshll.u32 %s3535_s27, 4  ;;  %s43_s26 = int_to_ptr.vmem [resolvable:$true] %s42_s26  ;;  %s67_s28 = int_to_ptr.vmem [resolvable:$true] %s66_s28 }
   0x7   :  { %s3330_s29 = scalar_lea.vmem %s43_s26, 128  ;;  %p3335_p1 = scmp.lt.s32.totalorder %s43_s26, %s43_s26 }
   0x8   :  { %p3331_p0 = scmp.ne.s32.totalorder %s43_s26, %s3330_s29  ;;  %p3336_p2 = scmp.lt.s32.totalorder %s3330_s29, %s3330_s29 }
   0xa   :  { %p3337_p3 = por %p3336_p2, %p3335_p1 }
   0xc   :  { %p3338_p4 = pnand %p3337_p3, %p3331_p0 }
   0xe   :  { %3341 = shalt.err (!%p3338_p4)
}
   0xf   :  { %s3536_s30 = smov 64   ;;  %s3537_s14 = smov 4  }
  0x10   :  { %48 = dma.hbm_to_vmem [thread:$0]  %s4037_s1, 128, %s43_s26, [#allocation6], %s3536_s30, %s3536_s30, %s3537_s14  }
  0x11   :  { %s3350_s17 = scalar_lea.vmem %s67_s28, 1024  ;;  %p3355_p6 = scmp.lt.s32.totalorder %s67_s28, %s67_s28 }
  0x12   :  { %p3351_p5 = scmp.ne.s32.totalorder %s67_s28, %s3350_s17  ;;  %p3356_p7 = scmp.lt.s32.totalorder %s3350_s17, %s3350_s17 }
  0x14   :  { %p3357_p8 = por %p3356_p7, %p3355_p6 }
  0x16   :  { %p3358_p9 = pnand %p3357_p8, %p3351_p5 }
  0x18   :  { %3361 = shalt.err (!%p3358_p9)
}
  0x19   :  { %72 = dma.hbm_to_vmem [thread:$0]  %s4039_s3, 1024, %s67_s28, [#allocation9], %s3536_s30, %s3536_s30, %s3537_s14  }
  0x1a   :  { %s3538_s20 = smov [#allocation11]  }
  0x1b   :  { %s94_s21 = sshll.u32 %s3538_s20, 4  ;;  %s95_s21 = int_to_ptr.vmem [resolvable:$true] %s94_s21 }
  0x1c   :  { %s3370_s22 = scalar_lea.vmem %s95_s21, 3072  ;;  %p3375_p11 = scmp.lt.s32.totalorder %s95_s21, %s95_s21 }
  0x1d   :  { %p3371_p10 = scmp.ne.s32.totalorder %s95_s21, %s3370_s22  ;;  %p3376_p12 = scmp.lt.s32.totalorder %s3370_s22, %s3370_s22 }
  0x1f   :  { %p3377_p13 = por %p3376_p12, %p3375_p11 }
  0x21   :  { %p3378_p0 = pnand %p3377_p13, %p3371_p10 }
  0x23   :  { %3381 = shalt.err (!%p3378_p0)
}
  0x24   :  { %s3539_s1 = smov 192   ;;  %s3540_s23 = smov 12  }
  0x25   :  { %100 = dma.hbm_to_vmem [thread:$0]  %s4043_s7, 3072, %s95_s21, [#allocation12], %s3539_s1, %s3539_s1, %s3540_s23  }
  0x26   :  { %s3541_s3 = smov [#allocation2]   ;;  %s3542_s27 = smov [#allocation7]  }
  0x27   :  { %s30_s26 = sshll.u32 %s3541_s3, 4  ;;  %s54_s28 = sshll.u32 %s3542_s27, 4  ;;  %s31_s26 = int_to_ptr.vmem [resolvable:$true] %s30_s26  ;;  %s55_s28 = int_to_ptr.vmem [resolvable:$true] %s54_s28 }
  0x28   :  { %s3390_s29 = scalar_lea.vmem %s31_s26, 2048  ;;  %p3395_p2 = scmp.lt.s32.totalorder %s31_s26, %s31_s26 }
  0x29   :  { %p3391_p1 = scmp.ne.s32.totalorder %s31_s26, %s3390_s29  ;;  %p3396_p3 = scmp.lt.s32.totalorder %s3390_s29, %s3390_s29 }
  0x2b   :  { %p3397_p4 = por %p3396_p3, %p3395_p2 }
  0x2d   :  { %p3398_p5 = pnand %p3397_p4, %p3391_p1 }
  0x2f   :  { %3401 = shalt.err (!%p3398_p5)
}
  0x30   :  { %36 = dma.hbm_to_vmem [thread:$0]  %s4036_s0, 2048, %s31_s26, [#allocation3], %s3536_s30, %s3536_s30, %s3537_s14  }
  0x31   :  { %s3410_s7 = scalar_lea.vmem %s55_s28, 128  ;;  %p3415_p7 = scmp.lt.s32.totalorder %s55_s28, %s55_s28 }
  0x32   :  { %p3411_p6 = scmp.ne.s32.totalorder %s55_s28, %s3410_s7  ;;  %p3416_p8 = scmp.lt.s32.totalorder %s3410_s7, %s3410_s7 }
  0x34   :  { %p3417_p9 = por %p3416_p8, %p3415_p7 }
  0x36   :  { %p3418_p10 = pnand %p3417_p9, %p3411_p6 }
  0x38   :  { %3421 = shalt.err (!%p3418_p10)
}
  0x39   :  { %60 = dma.hbm_to_vmem [thread:$0]  %s4038_s2, 128, %s55_s28, [#allocation6], %s3536_s30, %s3536_s30, %s3537_s14  }
  0x3a   :  { %s3543_s19 = smov [#allocation10]   ;;  %s3544_s21 = smov [#allocation13]  }
  0x3b   :  { %s78_s20 = sshll.u32 %s3543_s19, 4  ;;  %s106_s0 = sshll.u32 %s3544_s21, 4  ;;  %s79_s20 = int_to_ptr.vmem [resolvable:$true] %s78_s20  ;;  %s107_s0 = int_to_ptr.vmem [resolvable:$true] %s106_s0 }
  0x3c   :  { %s3430_s22 = scalar_lea.vmem %s79_s20, 1024  ;;  %p3435_p12 = scmp.lt.s32.totalorder %s79_s20, %s79_s20 }
  0x3d   :  { %p3431_p11 = scmp.ne.s32.totalorder %s79_s20, %s3430_s22  ;;  %p3436_p13 = scmp.lt.s32.totalorder %s3430_s22, %s3430_s22 }
  0x3f   :  { %p3437_p0 = por %p3436_p13, %p3435_p12 }
  0x41   :  { %p3438_p1 = pnand %p3437_p0, %p3431_p11 }
  0x43   :  { %3441 = shalt.err (!%p3438_p1)
}
  0x44   :  { %84 = dma.hbm_to_vmem [thread:$0]  %s4040_s4, 1024, %s79_s20, [#allocation9], %s3536_s30, %s3536_s30, %s3537_s14  }
  0x45   :  { %s3450_s2 = scalar_lea.vmem %s107_s0, 3072  ;;  %p3455_p3 = scmp.lt.s32.totalorder %s107_s0, %s107_s0 }
  0x46   :  { %p3451_p2 = scmp.ne.s32.totalorder %s107_s0, %s3450_s2  ;;  %p3456_p4 = scmp.lt.s32.totalorder %s3450_s2, %s3450_s2 }
  0x48   :  { %p3457_p5 = por %p3456_p4, %p3455_p3 }
  0x4a   :  { %p3458_p6 = pnand %p3457_p5, %p3451_p2 }
  0x4c   :  { %3461 = shalt.err (!%p3458_p6)
}
  0x4d   :  { %112 = dma.hbm_to_vmem [thread:$0]  %s4044_s8, 3072, %s107_s0, [#allocation12], %s3539_s1, %s3539_s1, %s3540_s23  }
  0x4e   :  { %3522 = dma.done.wait [#allocation3], 2048  }
  0x4f   :  { %3523 = vsyncadd [#allocation3], 4294965248 }
  0x50   :  { %3524 = dma.done.wait [#allocation6], 256  }
  0x51   :  { %3525 = vsyncadd [#allocation6], 4294967040 }
  0x52   :  { %3526 = dma.done.wait [#allocation9], 2048  }
  0x53   :  { %3527 = vsyncadd [#allocation9], 4294965248 }
  0x54   :  { %3528 = dma.done.wait [#allocation12], 6144  }
  0x55   :  { %3529 = vsyncadd [#allocation12], 4294961152  ;;  %v3545_v0 = vmov 0.0   ;;  %vm3546_vm0 = vmmov 0   ;;  %v3132_v1 = vld [vmem:[#allocation8 + $0x38] sm:$0xff]   ;;  %v3134_v3 = vld [vmem:[#allocation8 + $0x30] sm:$0xff]   ;;  %v618_v36 = vlaneseq }
  0x56   :  { %2956 = vmatprep.subr.bf16.mxu1 %v3545_v0  ;;  %2972 = vmatprep.mubr.msk.bf16.mxu1 %vm3546_vm0, %v3545_v0  ;;  %v3133_v2 = vld [vmem:[#allocation10 + $0x38] sm:$0xff]   ;;  %v3135_v4 = vld [vmem:[#allocation10 + $0x30] sm:$0xff]   ;;  %v3136_v5 = vld [vmem:[#allocation8 + $0x28] sm:$0xff]   ;;  %v3547_v34 = vmov 1966171168   ;;  %vm1003_vm1 = vcmask 130112  }
  0x57   :  { %2908 = vmatprep.subr.bf16.mxu0 %v3132_v1  ;;  %2957 = vmatpush3.bf16.msra.mxu1 %v3133_v2  ;;  %v3137_v6 = vld [vmem:[#allocation10 + $0x28] sm:$0xff]   ;;  %v3138_v7 = vld [vmem:[#allocation8 + $0x20] sm:$0xff]   ;;  %v3140_v9 = vld [vmem:[#allocation8 + $0x18] sm:$0xff]   ;;  %v616_v35 = vunpack.c.l.s4 %v3547_v34  ;;  %v3727_v38 = vshrl.u32 %v618_v36, 7  ;;  %vm1140_vm2 = vcmask 1041409   ;;  %vm1142_vm3 = vcmask 1042434  }
  0x58   :  { %2909 = vmatpush3.bf16.msra.mxu0 %v3132_v1  ;;  %2958 = vmatprep.subr.bf16.mxu1 %v3545_v0  ;;  %v3139_v8 = vld [vmem:[#allocation10 + $0x20] sm:$0xff]   ;;  %v3141_v10 = vld [vmem:[#allocation10 + $0x18] sm:$0xff]   ;;  %v3142_v11 = vld [vmem:[#allocation8 + $0x10] sm:$0xff]   ;;  %vm1144_vm4 = vcmask 1043459   ;;  %vm1146_vm5 = vcmask 1044484   ;;  %vm1148_vm6 = vcmask 1045509  }
  0x59   :  { %2910 = vmatprep.subr.bf16.mxu0 %v3134_v3  ;;  %v3148_v12 = vld [vmem:[#allocation2] sm:$0xff]   ;;  %v3144_v14 = vld [vmem:[#allocation8 + $0x8] sm:$0xff]   ;;  %v3146_v16 = vld [vmem:[#allocation8] sm:$0xff]   ;;  %v617_v37 = vunpack.c.0.s8 %v616_v35  ;;  %v3737_v48 = vsub.s32 0, %v3727_v38  ;;  %vm1150_vm7 = vcmask 1046534   ;;  %vm1152_vm8 = vcmask 1047559  }
  0x5a   :  { %2924 = vmatprep.mubr.bf16.mxu0 %v3148_v12  ;;  %v3143_v13 = vld [vmem:[#allocation10 + $0x10] sm:$0xff]   ;;  %v3145_v15 = vld [vmem:[#allocation10 + $0x8] sm:$0xff]   ;;  %v3147_v17 = vld [vmem:[#allocation10] sm:$0xff]   ;;  %vm1165_vm10 = vcmask 130048   ;;  %s3550_s29 = smov [#allocation15]   ;;  %s3551_s16 = smov [#allocation17]  }
  0x5b   :  { %2959 = vmatpush3.bf16.msra.mxu1 %v3135_v4  ;;  %v3149_v18 = vld [vmem:[#allocation5] sm:$0xff]   ;;  %v3676_v19 = vld [vmem:[#allocation2 + $0x8] sm:$0xff]   ;;  %v3678_v20 = vld [vmem:[#allocation2 + $0x10] sm:$0xff]   ;;  %v3733_v40 = vsub.s32 %v617_v37, %v3727_v38  ;;  %s2677_s15 = sshll.u32 %s3550_s29, 4  ;;  %s2689_s7 = sshll.u32 %s3551_s16, 4  ;;  %s2678_s15 = int_to_ptr.vmem [resolvable:$true] %s2677_s15  ;;  %s4017_s7 = int_to_ptr.vmem [resolvable:$true] %s2689_s7 }
  0x5c   :  { %2911 = vmatpush3.bf16.msra.mxu0 %v3134_v3  ;;  %2960 = vmatprep.subr.bf16.mxu1 %v3545_v0  ;;  %v3156_v21 = vld [vmem:[#allocation2 + $0x38] sm:$0xff]   ;;  %v3688_v23 = vld [vmem:[#allocation2 + $0x20] sm:$0xff]   ;;  %v3694_v24 = vld [vmem:[#allocation2 + $0x28] sm:$0xff]  }
  0x5d   :  { %2912 = vmatprep.subr.bf16.mxu0 %v3136_v5  ;;  %v3684_v22 = vld [vmem:[#allocation2 + $0x18] sm:$0xff]   ;;  %v3696_v25 = vld [vmem:[#allocation2 + $0x30] sm:$0xff]   ;;  %v3700_v26 = vld [vmem:[#allocation2 + $0x40] sm:$0xff]  }
  0x5e   :  { %v3703_v27 = vld [vmem:[#allocation2 + $0x48] sm:$0xff]   ;;  %v3705_v28 = vld [vmem:[#allocation2 + $0x50] sm:$0xff]   ;;  %v3709_v29 = vld [vmem:[#allocation2 + $0x58] sm:$0xff]  }
  0x5f   :  { %2961 = vmatpush3.bf16.msra.mxu1 %v3137_v6  ;;  %v3711_v30 = vld [vmem:[#allocation2 + $0x60] sm:$0xff]   ;;  %v3715_v31 = vld [vmem:[#allocation2 + $0x68] sm:$0xff]   ;;  %v3717_v32 = vld [vmem:[#allocation2 + $0x70] sm:$0xff]  }
  0x60   :  { %2913 = vmatpush3.bf16.msra.mxu0 %v3136_v5  ;;  %2962 = vmatprep.subr.bf16.mxu1 %v3545_v0  ;;  %v3721_v33 = vld [vmem:[#allocation2 + $0x78] sm:$0xff]   ;;  %v2735_v39 = vld [vmem:[%s4041_s5] ss:$0 sm:$0xff] }
  0x61   :  { %2914 = vmatprep.subr.bf16.mxu0 %v3138_v7 }
  0x63   :  { %2963 = vmatpush3.bf16.msra.mxu1 %v3139_v8 }
  0x64   :  { %2915 = vmatpush3.bf16.msra.mxu0 %v3138_v7  ;;  %2964 = vmatprep.subr.bf16.mxu1 %v3545_v0 }
  0x65   :  { %2916 = vmatprep.subr.bf16.mxu0 %v3140_v9 }
  0x67   :  { %2965 = vmatpush3.bf16.msra.mxu1 %v3141_v10 }
  0x68   :  { %2917 = vmatpush3.bf16.msra.mxu0 %v3140_v9  ;;  %2966 = vmatprep.subr.bf16.mxu1 %v3545_v0 }
  0x69   :  { %2918 = vmatprep.subr.bf16.mxu0 %v3142_v11 }
  0x6b   :  { %2967 = vmatpush3.bf16.msra.mxu1 %v3143_v13 }
  0x6c   :  { %2919 = vmatpush3.bf16.msra.mxu0 %v3142_v11  ;;  %2968 = vmatprep.subr.bf16.mxu1 %v3545_v0 }
  0x6d   :  { %2920 = vmatprep.subr.bf16.mxu0 %v3144_v14 }
  0x6f   :  { %2969 = vmatpush3.bf16.msra.mxu1 %v3145_v15 }
  0x70   :  { %2921 = vmatpush3.bf16.msra.mxu0 %v3144_v14  ;;  %2970 = vmatprep.subr.bf16.mxu1 %v3545_v0 }
  0x71   :  { %2922 = vmatprep.subr.bf16.mxu0 %v3146_v16 }
  0x73   :  { %2971 = vmatpush3.bf16.msra.mxu1 %v3147_v17 }
  0x74   :  { %2923 = vmatpush3.bf16.msra.mxu0 %v3146_v16  ;;  %2976 = vmatprep.subr.bf16.mxu1 %v3545_v0 }
  0x75   :  { %3018 = vmatprep.subr.bf16.mxu0 %v3545_v0 }
  0x76   :  { %2973 = vmatmul.mubr.bf16.vlgmr.msra.gmra.mxu1 %v3149_v18 }
  0x77   :  { %2925 = vmatmul.mubr.bf16.vlgmr.msra.gmra.mxu0 %v3676_v19  ;;  %2977 = vmatpush3.bf16.msra.mxu1 %v3148_v12 }
  0x78   :  { %2928 = vmatprep.mubr.bf16.mxu0 %v3678_v20  ;;  %3019 = vmatpush3.bf16.msra.mxu0 %v3156_v21 }
  0x79   :  { %2978 = vmatprep.mubr.msk.bf16.mxu1 %vm3546_vm0, %v3545_v0  ;;  %2982 = vmatprep.subr.bf16.mxu1 %v3545_v0 }
  0x7a   :  { %3030 = vmatprep.subr.bf16.mxu0 %v3545_v0 }
  0x7f   :  { %2929 = vmatmul.mubr.bf16.gmra.mxu0 %v3684_v22 }
  0x80   :  { %2932 = vmatprep.mubr.bf16.mxu0 %v3688_v23 }
  0x87   :  { %2933 = vmatmul.mubr.bf16.gmra.mxu0 %v3694_v24 }
  0x88   :  { %2936 = vmatprep.mubr.bf16.mxu0 %v3696_v25 }
  0x8f   :  { %2937 = vmatmul.mubr.bf16.gmra.mxu0 %v3156_v21 }
  0x90   :  { %2940 = vmatprep.mubr.bf16.mxu0 %v3700_v26 }
  0x97   :  { %2941 = vmatmul.mubr.bf16.gmra.mxu0 %v3703_v27 }
  0x98   :  { %2944 = vmatprep.mubr.bf16.mxu0 %v3705_v28 }
  0x9f   :  { %2945 = vmatmul.mubr.bf16.gmra.mxu0 %v3709_v29 }
  0xa0   :  { %2948 = vmatprep.mubr.bf16.mxu0 %v3711_v30 }
  0xa7   :  { %2949 = vmatmul.mubr.bf16.gmra.mxu0 %v3715_v31 }
  0xa8   :  { %2952 = vmatprep.mubr.bf16.mxu0 %v3717_v32 }
  0xaf   :  { %2953 = vmatmul.mubr.bf16.gmra.mxu0 %v3721_v33 }
  0xb0   :  { %3020 = vmatprep.mubr.msk.bf16.mxu0 %vm3546_vm0, %v3545_v0 }
 0x136   :  { %v605_v41 = vpop.f32.mrf.mxu1 }
 0x137   :  { %v2926_v42 = vpop.f32.mrf.mxu0  ;;  %v606_v43 = vadd.f32 %v2735_v39, %v605_v41  ;;  %v3756_v41 = vld [vmem:[%s4042_s6] ss:$0 sm:$0xff] }
 0x138   :  { %v2974_v44 = vpop.f32.mrf.mxu1 }
 0x139   :  { %v365_v45 = vpop.f32.mrf.mxu0  ;;  %v614_v46 = vcombine.high %v606_v43, %v606_v43  ;;  %v621_v47 = vrot.slane %v606_v43, %v3733_v40 }
 0x13a   :  { %v608_v49 = vpop.f32.mrf.mxu1 }
 0x13b   :  { %v2927_v50 = vpop.f32.mrf.mxu0  ;;  %v629_v51 = vcombine.high %v621_v47, %v621_v47  ;;  %v637_v52 = vrot.slane %v621_v47, %v3733_v40  ;;  %v628_v55 = vrot.slane %v614_v46, %v3733_v40  ;;  %v3747_v14 = vadd.f32 %v2735_v39, %v608_v49 }
 0x13c   :  { %v2975_v53 = vpop.f32.mrf.mxu1 }
 0x13d   :  { %v368_v54 = vpop.f32.mrf.mxu0  ;;  %v651_v56 = vrot.slane %v629_v51, %v3733_v40  ;;  %v715_v57 = vrot.slane %v637_v52, %v3737_v48  ;;  %v659_v59 = vcombine.high %v637_v52, %v637_v52  ;;  %v630_v5 = vcombine.high %v628_v55, %v628_v55 }
 0x13e   :  { %v644_v18 = vrot.slane %v628_v55, %v3733_v40  ;;  %v670_v35 = vrot.slane %v3747_v14, %v3733_v40 }
 0x13f   :  { %v2930_v58 = vpop.f32.mrf.mxu0  ;;  %v719_v60 = vrot.slane %v651_v56, %v3737_v48  ;;  %v792_v61 = vadd.f32 %v715_v57, %v365_v45  ;;  %v793_v62 = vadd.f32 %v715_v57, %v368_v54  ;;  %v661_v63 = vcombine.high %v651_v56, %v651_v56 }
 0x140   :  { %v723_v2 = vrot.slane %v659_v59, %v3737_v48  ;;  %v658_v11 = vrot.slane %v630_v5, %v3733_v40  ;;  %v731_v39 = vrot.slane %v644_v18, %v3737_v48  ;;  %v660_v43 = vcombine.high %v644_v18, %v644_v18 }
 0x141   :  { %v381_v1 = vpop.f32.mrf.mxu0  ;;  %v794_v3 = vadd.f32 %v2926_v42, %v719_v60  ;;  %3230 = vtanh.f32 %v792_v61  ;;  %v795_v4 = vadd.f32 %v2927_v50, %v719_v60  ;;  %v727_v6 = vrot.slane %v661_v63, %v3737_v48 }
 0x142   :  { %3232 = vtanh.f32 %v793_v62  ;;  %v796_v8 = vadd.f32 %v723_v2, %v381_v1  ;;  %v735_v17 = vrot.slane %v658_v11, %v3737_v48  ;;  %v678_v51 = vcombine.high %v670_v35, %v670_v35 }
 0x143   :  { %v2931_v7 = vpop.f32.mrf.mxu0  ;;  %3234 = vtanh.f32 %v794_v3  ;;  %v798_v13 = vadd.f32 %v2930_v58, %v727_v6  ;;  %v662_v52 = vcombine.high %v658_v11, %v658_v11  ;;  %v739_v55 = vrot.slane %v660_v43, %v3737_v48 }
 0x144   :  { %3236 = vtanh.f32 %v795_v4  ;;  %v799_v10 = vadd.f32 %v2931_v7, %v727_v6  ;;  %v700_v63 = vrot.slane %v678_v51, %v3733_v40  ;;  %v686_v11 = vrot.slane %v670_v35, %v3733_v40 }
 0x145   :  { %v384_v9 = vpop.f32.mrf.mxu0  ;;  %3238 = vtanh.f32 %v796_v8  ;;  %v743_v1 = vrot.slane %v662_v52, %v3737_v48 }
 0x146   :  { %3240 = vtanh.f32 %v799_v10  ;;  %v797_v16 = vadd.f32 %v723_v2, %v384_v9  ;;  %v663_v9 = vcombine.high %v3747_v14, %v3747_v14  ;;  %v710_v43 = vcombine.high %v700_v63, %v700_v63 }
 0x147   :  { %v2934_v12 = vpop.f32.mrf.mxu0  ;;  %3242 = vtanh.f32 %v798_v13  ;;  %v751_v13 = vrot.slane %v700_v63, %v3737_v48  ;;  %v708_v51 = vcombine.high %v686_v11, %v686_v11 }
 0x148   :  { %v802_v34 = vadd.f32 %v2934_v12, %v735_v17  ;;  %3244 = vtanh.f32 %v797_v16  ;;  %v677_v14 = vrot.slane %v663_v9, %v3733_v40 }
 0x149   :  { %v397_v15 = vpop.f32.mrf.mxu0 }
 0x14a   :  { %3246 = vtanh.f32 %v802_v34  ;;  %v800_v47 = vadd.f32 %v731_v39, %v397_v15  ;;  %v679_v52 = vcombine.high %v677_v14, %v677_v14  ;;  %v693_v9 = vrot.slane %v677_v14, %v3733_v40 }
 0x14b   :  { %v2935_v21 = vpop.f32.mrf.mxu0 }
 0x14c   :  { %v803_v42 = vadd.f32 %v2935_v21, %v735_v17 }
 0x14d   :  { %v400_v37 = vpop.f32.mrf.mxu0 }
 0x14e   :  { %v3231_v44 = vpop.eup %3230  ;;  %3248 = vtanh.f32 %v803_v42  ;;  %v801_v54 = vadd.f32 %v731_v39, %v400_v37  ;;  %v747_v37 = vrot.slane %v686_v11, %v3737_v48 }
 0x14f   :  { %v2938_v45 = vpop.f32.mrf.mxu0  ;;  %v3233_v46 = vpop.eup %3232  ;;  %v863_v49 = vmul.f32 %v3231_v44, %v3756_v41  ;;  %3250 = vtanh.f32 %v800_v47 }
 0x150   :  { %v3235_v50 = vpop.eup %3234  ;;  %v864_v60 = vmul.f32 %v3233_v46, %v3756_v41  ;;  %3252 = vtanh.f32 %v801_v54  ;;  %v806_v6 = vadd.f32 %v2938_v45, %v743_v1  ;;  %v759_v54 = vrot.slane %v710_v43, %v3737_v48 }
 0x151   :  { %v413_v53 = vpop.f32.mrf.mxu0  ;;  %895 = vadd.xlane.f32.xlu0 %v863_v49  ;;  %v865_v56 = vmul.f32 %v3235_v50, %v3756_v41  ;;  %v3237_v57 = vpop.eup %3236 }
 0x152   :  { %v804_v59 = vadd.f32 %v739_v55, %v413_v53  ;;  %v3239_v61 = vpop.eup %3238  ;;  %v866_v3 = vmul.f32 %v3237_v57, %v3756_v41 }
 0x153   :  { %v2939_v58 = vpop.f32.mrf.mxu0  ;;  %899 = vadd.xlane.f32.xlu1 %v865_v56  ;;  %v3241_v4 = vpop.eup %3240  ;;  %v867_v7 = vmul.f32 %v3239_v61, %v3756_v41  ;;  %v755_v61 = vrot.slane %v708_v51, %v3737_v48 }
 0x154   :  { %3254 = vtanh.f32 %v804_v59  ;;  %v3243_v8 = vpop.eup %3242  ;;  %v807_v12 = vadd.f32 %v2939_v58, %v743_v1  ;;  %v870_v15 = vmul.f32 %v3241_v4, %v3756_v41 }
 0x155   :  { %v416_v62 = vpop.f32.mrf.mxu0  ;;  %897 = vadd.xlane.f32.xlu0 %v864_v60  ;;  %v3245_v16 = vpop.eup %3244  ;;  %v869_v21 = vmul.f32 %v3243_v8, %v3756_v41 }
 0x156   :  { %v805_v2 = vadd.f32 %v739_v55, %v416_v62  ;;  %v868_v42 = vmul.f32 %v3245_v16, %v3756_v41 }
 0x157   :  { %v2942_v5 = vpop.f32.mrf.mxu0  ;;  %901 = vadd.xlane.f32.xlu1 %v866_v3  ;;  %v3247_v34 = vpop.eup %3246 }
 0x158   :  { %3256 = vtanh.f32 %v805_v2  ;;  %v810_v18 = vadd.f32 %v2942_v5, %v751_v13  ;;  %v873_v47 = vmul.f32 %v3247_v34, %v3756_v41  ;;  %v707_v2 = vrot.slane %v679_v52, %v3733_v40 }
 0x159   :  { %v429_v10 = vpop.f32.mrf.mxu0  ;;  %903 = vadd.xlane.f32.xlu0 %v867_v7  ;;  %3258 = vtanh.f32 %v806_v6 }
 0x15a   :  { %3260 = vtanh.f32 %v807_v12  ;;  %v808_v46 = vadd.f32 %v747_v37, %v429_v10  ;;  %v767_v11 = vrot.slane %v707_v2, %v3737_v48 }
 0x15b   :  { %v2943_v17 = vpop.f32.mrf.mxu0  ;;  %909 = vadd.xlane.f32.xlu1 %v870_v15  ;;  %v3249_v44 = vpop.eup %3248  ;;  %3262 = vtanh.f32 %v810_v18 }
 0x15c   :  { %v811_v39 = vadd.f32 %v2943_v17, %v751_v13  ;;  %v3251_v49 = vpop.eup %3250  ;;  %v874_v55 = vmul.f32 %v3249_v44, %v3756_v41 }
 0x15d   :  { %v432_v35 = vpop.f32.mrf.mxu0  ;;  %907 = vadd.xlane.f32.xlu0 %v869_v21  ;;  %v3253_v56 = vpop.eup %3252  ;;  %v871_v59 = vmul.f32 %v3251_v49, %v3756_v41  ;;  %v763_v21 = vrot.slane %v693_v9, %v3737_v48 }
 0x15e   :  { %3264 = vtanh.f32 %v811_v39  ;;  %v809_v53 = vadd.f32 %v747_v37, %v432_v35  ;;  %v872_v1 = vmul.f32 %v3253_v56, %v3756_v41  ;;  %v709_v35 = vcombine.high %v693_v9, %v693_v9 }
 0x15f   :  { %v2946_v45 = vpop.f32.mrf.mxu0  ;;  %905 = vadd.xlane.f32.xlu1 %v868_v42  ;;  %3266 = vtanh.f32 %v808_v46  ;;  %v711_v46 = vcombine.high %v707_v2, %v707_v2 }
 0x160   :  { %v814_v58 = vadd.f32 %v2946_v45, %v759_v54  ;;  %3268 = vtanh.f32 %v809_v53 }
 0x161   :  { %v445_v50 = vpop.f32.mrf.mxu0  ;;  %915 = vadd.xlane.f32.xlu0 %v873_v47  ;;  %v3255_v60 = vpop.eup %3254 }
 0x162   :  { %3270 = vtanh.f32 %v814_v58  ;;  %v812_v5 = vadd.f32 %v755_v61, %v445_v50  ;;  %v875_v6 = vmul.f32 %v3255_v60, %v3756_v41  ;;  %v771_v50 = vrot.slane %v709_v35, %v3737_v48 }
 0x163   :  { %v2947_v57 = vpop.f32.mrf.mxu0  ;;  %917 = vadd.xlane.f32.xlu1 %v874_v55  ;;  %v775_v58 = vrot.slane %v711_v46, %v3737_v48  ;;  %v3809_v46 = vand.u32 127, %v618_v36 }
 0x164   :  { %v815_v63 = vadd.f32 %v2947_v57, %v759_v54 }
 0x165   :  { %v448_v62 = vpop.f32.mrf.mxu0  ;;  %911 = vadd.xlane.f32.xlu0 %v871_v59  ;;  %v3257_v3 = vpop.eup %3256  ;;  %vm961_vm9 = vcmp.lt.s32.totalorder %v3809_v46, 8 }
 0x166   :  { %v3259_v7 = vpop.eup %3258  ;;  %3272 = vtanh.f32 %v815_v63  ;;  %v813_v10 = vadd.f32 %v755_v61, %v448_v62  ;;  %v876_v12 = vmul.f32 %v3257_v3, %v3756_v41 }
 0x167   :  { %v2950_v4 = vpop.f32.mrf.mxu0  ;;  %913 = vadd.xlane.f32.xlu1 %v872_v1  ;;  %v3261_v13 = vpop.eup %3260  ;;  %3274 = vtanh.f32 %v812_v5  ;;  %v877_v17 = vmul.f32 %v3259_v7, %v3756_v41 }
 0x168   :  { %v818_v16 = vadd.f32 %v2950_v4, %v767_v11  ;;  %v3263_v18 = vpop.eup %3262  ;;  %3276 = vtanh.f32 %v813_v10  ;;  %v878_v37 = vmul.f32 %v3261_v13, %v3756_v41 }
 0x169   :  { %v461_v8 = vpop.f32.mrf.mxu0  ;;  %919 = vadd.xlane.f32.xlu0 %v875_v6  ;;  %v881_v44 = vmul.f32 %v3263_v18, %v3756_v41 }
 0x16a   :  { %3278 = vtanh.f32 %v818_v16  ;;  %v816_v43 = vadd.f32 %v763_v21, %v461_v8 }
 0x16b   :  { %v2951_v15 = vpop.f32.mrf.mxu0  ;;  %921 = vadd.xlane.f32.xlu1 %v876_v12  ;;  %v3265_v39 = vpop.eup %3264 }
 0x16c   :  { %v819_v14 = vadd.f32 %v2951_v15, %v767_v11  ;;  %v3267_v45 = vpop.eup %3266  ;;  %v882_v51 = vmul.f32 %v3265_v39, %v3756_v41 }
 0x16d   :  { %v464_v34 = vpop.f32.mrf.mxu0  ;;  %923 = vadd.xlane.f32.xlu0 %v877_v17  ;;  %v3269_v52 = vpop.eup %3268  ;;  %v879_v55 = vmul.f32 %v3267_v45, %v3756_v41 }
 0x16e   :  { %3280 = vtanh.f32 %v819_v14  ;;  %v817_v49 = vadd.f32 %v763_v21, %v464_v34  ;;  %v880_v60 = vmul.f32 %v3269_v52, %v3756_v41 }
 0x16f   :  { %v2954_v42 = vpop.f32.mrf.mxu0  ;;  %925 = vadd.xlane.f32.xlu1 %v878_v37  ;;  %3282 = vtanh.f32 %v816_v43  ;;  %v3271_v56 = vpop.eup %3270 }
 0x170   :  { %3284 = vtanh.f32 %v817_v49  ;;  %v822_v62 = vadd.f32 %v2954_v42, %v775_v58  ;;  %v885_v63 = vmul.f32 %v3271_v56, %v3756_v41  ;;  %v998_v49 = vadd.s32 4294967288, %v3809_v46 }
 0x171   :  { %v477_v47 = vpop.f32.mrf.mxu0  ;;  %931 = vadd.xlane.f32.xlu0 %v881_v44 }
 0x172   :  { %v820_v54 = vadd.f32 %v771_v50, %v477_v47  ;;  %v3813_v52 = vsub.s32 %v998_v49, %v3727_v38 }
 0x173   :  { %v2955_v53 = vpop.f32.mrf.mxu0  ;;  %933 = vadd.xlane.f32.xlu1 %v882_v51  ;;  %v3273_v61 = vpop.eup %3272 }
 0x174   :  { %3286 = vtanh.f32 %v820_v54  ;;  %v3275_v1 = vpop.eup %3274  ;;  %v823_v2 = vadd.f32 %v2955_v53, %v775_v58  ;;  %v886_v3 = vmul.f32 %v3273_v61, %v3756_v41 }
 0x175   :  { %v480_v57 = vpop.f32.mrf.mxu0  ;;  %927 = vadd.xlane.f32.xlu0 %v879_v55  ;;  %v3277_v4 = vpop.eup %3276  ;;  %v883_v5 = vmul.f32 %v3275_v1, %v3756_v41 }
 0x176   :  { %v821_v59 = vadd.f32 %v771_v50, %v480_v57  ;;  %v884_v7 = vmul.f32 %v3277_v4, %v3756_v41 }
 0x177   :  { %929 = vadd.xlane.f32.xlu1 %v880_v60  ;;  %v3279_v6 = vpop.eup %3278 }
 0x178   :  { %3288 = vtanh.f32 %v821_v59  ;;  %v889_v9 = vmul.f32 %v3279_v6, %v3756_v41 }
 0x179   :  { %939 = vadd.xlane.f32.xlu0 %v885_v63  ;;  %3290 = vtanh.f32 %v822_v62 }
 0x17a   :  { %3292 = vtanh.f32 %v823_v2 }
 0x17b   :  { %941 = vadd.xlane.f32.xlu1 %v886_v3  ;;  %v3281_v8 = vpop.eup %3280 }
 0x17c   :  { %v3283_v10 = vpop.eup %3282  ;;  %v890_v11 = vmul.f32 %v3281_v8, %v3756_v41 }
 0x17d   :  { %935 = vadd.xlane.f32.xlu0 %v883_v5  ;;  %v3285_v12 = vpop.eup %3284  ;;  %v887_v13 = vmul.f32 %v3283_v10, %v3756_v41 }
 0x17e   :  { %v888_v16 = vmul.f32 %v3285_v12, %v3756_v41 }
 0x17f   :  { %937 = vadd.xlane.f32.xlu1 %v884_v7 }
 0x181   :  { %947 = vadd.xlane.f32.xlu0 %v889_v9  ;;  %v3287_v15 = vpop.eup %3286 }
 0x182   :  { %v891_v18 = vmul.f32 %v3287_v15, %v3756_v41 }
 0x183   :  { %949 = vadd.xlane.f32.xlu1 %v890_v11 }
 0x185   :  { %943 = vadd.xlane.f32.xlu0 %v887_v13  ;;  %v3289_v17 = vpop.eup %3288 }
 0x186   :  { %v3291_v21 = vpop.eup %3290  ;;  %v892_v34 = vmul.f32 %v3289_v17, %v3756_v41 }
 0x187   :  { %945 = vadd.xlane.f32.xlu1 %v888_v16  ;;  %v3293_v14 = vpop.eup %3292  ;;  %v893_v37 = vmul.f32 %v3291_v21, %v3756_v41 }
 0x188   :  { %v894_v35 = vmul.f32 %v3293_v14, %v3756_v41  ;;  %v3817_v41 = vsub.s32 %v3809_v46, %v3727_v38 }
 0x189   :  { %951 = vadd.xlane.f32.xlu0 %v891_v18 }
 0x18b   :  { %953 = vadd.xlane.f32.xlu1 %v892_v34 }
 0x18d   :  { %955 = vadd.xlane.f32.xlu0 %v893_v37 }
 0x18f   :  { %957 = vadd.xlane.f32.xlu1 %v894_v35 }
 0x1da   :  { %v896_v39 = vpop.xlane.xlu0 %895 }
 0x1db   :  { %v997_v60 = vrot.slane %v896_v39, %v3817_v41 }
 0x1dc   :  { %v900_v42 = vpop.xlane.xlu1 %899 }
 0x1dd   :  { %v1008_v36 = vrot.slane %v900_v42, %v3817_v41 }
 0x1de   :  { %v898_v43 = vpop.xlane.xlu0 %897 }
 0x1df   :  { %v1002_v57 = vrot.slane %v898_v43, %v3813_v52 }
 0x1e0   :  { %v902_v44 = vpop.xlane.xlu1 %901 }
 0x1e1   :  { %v1012_v54 = vrot.slane %v902_v44, %v3813_v52  ;;  %v1004_v1 = vsel %vm1003_vm1, %v1002_v57, %v997_v60 }
 0x1e2   :  { %v904_v45 = vpop.xlane.xlu0 %903 }
 0x1e3   :  { %v1017_v58 = vrot.slane %v904_v45, %v3817_v41  ;;  %v1013_v61 = vsel %vm1003_vm1, %v1012_v54, %v1008_v36 }
 0x1e4   :  { %v910_v47 = vpop.xlane.xlu1 %909  ;;  %v1141_v4 = vsel %vm1140_vm2, %v1013_v61, %v1004_v1 }
 0x1e5   :  { %v1030_v7 = vrot.slane %v910_v47, %v3813_v52 }
 0x1e6   :  { %v908_v50 = vpop.xlane.xlu0 %907 }
 0x1e7   :  { %v1026_v2 = vrot.slane %v908_v50, %v3817_v41 }
 0x1e8   :  { %v906_v51 = vpop.xlane.xlu1 %905 }
 0x1e9   :  { %v1021_v55 = vrot.slane %v906_v51, %v3813_v52  ;;  %v1031_v11 = vsel %vm1003_vm1, %v1030_v7, %v1026_v2 }
 0x1ea   :  { %v916_v53 = vpop.xlane.xlu0 %915 }
 0x1eb   :  { %v1022_v62 = vsel %vm1003_vm1, %v1021_v55, %v1017_v58  ;;  %v1044_v18 = vrot.slane %v916_v53, %v3817_v41 }
 0x1ec   :  { %v918_v56 = vpop.xlane.xlu1 %917  ;;  %v1143_v8 = vsel %vm1142_vm3, %v1022_v62, %v1141_v4 }
 0x1ed   :  { %v1048_v12 = vrot.slane %v918_v56, %v3813_v52  ;;  %v1145_v15 = vsel %vm1144_vm4, %v1031_v11, %v1143_v8 }
 0x1ee   :  { %v912_v59 = vpop.xlane.xlu0 %911 }
 0x1ef   :  { %v1035_v5 = vrot.slane %v912_v59, %v3817_v41  ;;  %v1049_v37 = vsel %vm1003_vm1, %v1048_v12, %v1044_v18 }
 0x1f0   :  { %v914_v63 = vpop.xlane.xlu1 %913 }
 0x1f1   :  { %v1039_v3 = vrot.slane %v914_v63, %v3813_v52 }
 0x1f2   :  { %v920_v6 = vpop.xlane.xlu0 %919 }
 0x1f3   :  { %v1040_v9 = vsel %vm1003_vm1, %v1039_v3, %v1035_v5  ;;  %v1053_v16 = vrot.slane %v920_v6, %v3817_v41 }
 0x1f4   :  { %v922_v10 = vpop.xlane.xlu1 %921  ;;  %v1147_v21 = vsel %vm1146_vm5, %v1040_v9, %v1145_v15 }
 0x1f5   :  { %v1057_v13 = vrot.slane %v922_v10, %v3813_v52  ;;  %v1149_v43 = vsel %vm1148_vm6, %v1049_v37, %v1147_v21 }
 0x1f6   :  { %v924_v17 = vpop.xlane.xlu0 %923 }
 0x1f7   :  { %v1058_v34 = vsel %vm1003_vm1, %v1057_v13, %v1053_v16  ;;  %v1062_v35 = vrot.slane %v924_v17, %v3817_v41 }
 0x1f8   :  { %v926_v14 = vpop.xlane.xlu1 %925  ;;  %v1151_v45 = vsel %vm1150_vm7, %v1058_v34, %v1149_v43 }
 0x1f9   :  { %v1066_v39 = vrot.slane %v926_v14, %v3813_v52 }
 0x1fa   :  { %v932_v42 = vpop.xlane.xlu0 %931 }
 0x1fb   :  { %v1067_v44 = vsel %vm1003_vm1, %v1066_v39, %v1062_v35  ;;  %v1080_v3 = vrot.slane %v932_v42, %v3817_v41 }
 0x1fc   :  { %v934_v47 = vpop.xlane.xlu1 %933  ;;  %v1153_v49 = vsel %vm1152_vm8, %v1067_v44, %v1151_v45 }
 0x1fd   :  { %v1163_v50 = vsel %vm961_vm9, %v1153_v49, -inf  ;;  %v1084_v62 = vrot.slane %v934_v47, %v3813_v52 }
 0x1fe   :  { %v928_v51 = vpop.xlane.xlu0 %927  ;;  %v1166_v53 = vsel %vm1165_vm10, %v1163_v50, -inf }
 0x1ff   :  { %1167 = vmax.xlane.f32.xlu0 %v1166_v53  ;;  %v1071_v63 = vrot.slane %v928_v51, %v3817_v41  ;;  %v1085_v7 = vsel %vm1003_vm1, %v1084_v62, %v1080_v3 }
 0x200   :  { %v930_v54 = vpop.xlane.xlu1 %929 }
 0x201   :  { %v1075_v59 = vrot.slane %v930_v54, %v3813_v52 }
 0x202   :  { %v940_v55 = vpop.xlane.xlu0 %939 }
 0x203   :  { %v1076_v4 = vsel %vm1003_vm1, %v1075_v59, %v1071_v63  ;;  %v1098_v13 = vrot.slane %v940_v55, %v3817_v41 }
 0x204   :  { %v942_v56 = vpop.xlane.xlu1 %941  ;;  %v1154_v10 = vsel %vm1140_vm2, %v1085_v7, %v1076_v4 }
 0x205   :  { %v1102_v8 = vrot.slane %v942_v56, %v3813_v52 }
 0x206   :  { %v936_v36 = vpop.xlane.xlu0 %935 }
 0x207   :  { %v1089_v1 = vrot.slane %v936_v36, %v3817_v41  ;;  %v1103_v18 = vsel %vm1003_vm1, %v1102_v8, %v1098_v13 }
 0x208   :  { %v938_v57 = vpop.xlane.xlu1 %937 }
 0x209   :  { %v1093_v60 = vrot.slane %v938_v57, %v3813_v52 }
 0x20a   :  { %v948_v58 = vpop.xlane.xlu0 %947 }
 0x20b   :  { %v1094_v5 = vsel %vm1003_vm1, %v1093_v60, %v1089_v1  ;;  %v1116_v39 = vrot.slane %v948_v58, %v3817_v41 }
 0x20c   :  { %v950_v61 = vpop.xlane.xlu1 %949  ;;  %v1155_v15 = vsel %vm1142_vm3, %v1094_v5, %v1154_v10 }
 0x20d   :  { %v1120_v21 = vrot.slane %v950_v61, %v3813_v52  ;;  %v1156_v14 = vsel %vm1144_vm4, %v1103_v18, %v1155_v15 }
 0x20e   :  { %v944_v2 = vpop.xlane.xlu0 %943 }
 0x20f   :  { %v1107_v11 = vrot.slane %v944_v2, %v3817_v41  ;;  %v1121_v45 = vsel %vm1003_vm1, %v1120_v21, %v1116_v39 }
 0x210   :  { %v946_v6 = vpop.xlane.xlu1 %945 }
 0x211   :  { %v1111_v9 = vrot.slane %v946_v6, %v3813_v52 }
 0x212   :  { %v952_v12 = vpop.xlane.xlu0 %951 }
 0x213   :  { %v1112_v16 = vsel %vm1003_vm1, %v1111_v9, %v1107_v11  ;;  %v1125_v37 = vrot.slane %v952_v12, %v3817_v41 }
 0x214   :  { %v954_v17 = vpop.xlane.xlu1 %953  ;;  %v1157_v42 = vsel %vm1146_vm5, %v1112_v16, %v1156_v14 }
 0x215   :  { %v1129_v34 = vrot.slane %v954_v17, %v3813_v52  ;;  %v1158_v51 = vsel %vm1148_vm6, %v1121_v45, %v1157_v42 }
 0x216   :  { %v956_v35 = vpop.xlane.xlu0 %955 }
 0x217   :  { %v1130_v43 = vsel %vm1003_vm1, %v1129_v34, %v1125_v37  ;;  %v1134_v47 = vrot.slane %v956_v35, %v3817_v41 }
 0x218   :  { %v958_v44 = vpop.xlane.xlu1 %957  ;;  %v1159_v54 = vsel %vm1150_vm7, %v1130_v43, %v1158_v51 }
 0x219   :  { %v1138_v49 = vrot.slane %v958_v44, %v3813_v52 }
 0x21b   :  { %v1139_v53 = vsel %vm1003_vm1, %v1138_v49, %v1134_v47 }
 0x21c   :  { %v1160_v55 = vsel %vm1152_vm8, %v1139_v53, %v1159_v54 }
 0x21d   :  { %v1164_v56 = vsel %vm961_vm9, %v1160_v55, -inf }
 0x21e   :  { %v1169_v36 = vsel %vm1165_vm10, %v1164_v56, -inf }
 0x21f   :  { %1170 = vmax.xlane.f32.xlu1 %v1169_v36 }
 0x288   :  { %v1168_v57 = vpop.xlane.xlu0 %1167 }
 0x289   :  { %v1172_v58 = vsub.f32 %v1163_v50, %v1168_v57  ;;  %v3167_v57 = vld [vmem:[#allocation13 + $0xac] ss:$12 sps:$4 sm:$0xff]  }
 0x28b   :  { %v1174_v59 = vmul.f32 1.442695, %v1172_v58  ;;  %v3168_v58 = vld [vmem:[#allocation13 + $0x90] ss:$12 sps:$4 sm:$0xff]  }
 0x28d   :  { %3294 = vpow2.f32 %v1174_v59  ;;  %v3170_v59 = vld [vmem:[#allocation13 + $0x94] ss:$12 sps:$4 sm:$0xff]  }
 0x29a   :  { %v3295_v41 = vpop.eup %3294 }
 0x29b   :  { %v1178_v52 = vsel %vm1165_vm10, %v3295_v41, 0.0 }
 0x29c   :  { %1179 = vadd.xlane.f32.xlu0 %v1178_v52  ;;  %v3172_v52 = vld [vmem:[#allocation13 + $0x78] ss:$12 sps:$4 sm:$0xff]  }
 0x2a8   :  { %v1171_v60 = vpop.xlane.xlu1 %1170 }
 0x2a9   :  { %v1173_v61 = vsub.f32 %v1164_v56, %v1171_v60  ;;  %v3176_v60 = vld [vmem:[#allocation13 + $0x60] ss:$12 sps:$4 sm:$0xff]  }
 0x2ab   :  { %v1176_v62 = vmul.f32 1.442695, %v1173_v61  ;;  %v3178_v61 = vld [vmem:[#allocation13 + $0x64] ss:$12 sps:$4 sm:$0xff]  }
 0x2ad   :  { %3296 = vpow2.f32 %v1176_v62  ;;  %v3179_v62 = vld [vmem:[#allocation13 + $0x80] ss:$12 sps:$4 sm:$0xff]  }
 0x2ba   :  { %v3297_v63 = vpop.eup %3296 }
 0x2bb   :  { %v1181_v1 = vsel %vm1165_vm10, %v3297_v63, 0.0 }
 0x2bc   :  { %1182 = vadd.xlane.f32.xlu1 %v1181_v1  ;;  %v3180_v1 = vld [vmem:[#allocation13 + $0x48] ss:$12 sps:$4 sm:$0xff]  }
 0x325   :  { %v1180_v46 = vpop.xlane.xlu0 %1179 }
 0x326   :  { %3298 = vrcp.f32 %v1180_v46  ;;  %v3183_v46 = vld [vmem:[#allocation13 + $0x68] ss:$12 sps:$4 sm:$0xff]  }
 0x333   :  { %v3299_v2 = vpop.eup %3298 }
 0x334   :  { %v1185_v3 = vmul.f32 %v3299_v2, %v3295_v41  ;;  %v3171_v41 = vld [vmem:[#allocation13 + $0xb0] ss:$12 sps:$4 sm:$0xff]  }
 0x335   :  { %v3184_v2 = vld [vmem:[#allocation13 + $0x30] ss:$12 sps:$4 sm:$0xff]  }
 0x336   :  { %v1192_v4 = vcombine.high %v1185_v3, %v1185_v3  ;;  %1188 = vst.msk [vmem:[#allocation17] sm:$0xff] %vm1165_vm10, %v1185_v3  ;;  %v1199_v50 = vrot.slane %v1185_v3, %v3733_v40  ;;  %v3186_v3 = vld [vmem:[#allocation13 + $0x34] ss:$12 sps:$4 sm:$0xff]  }
 0x338   :  { %v1206_v5 = vrot.slane %v1192_v4, %v3733_v40  ;;  %v1215_v6 = vrot.slane %v1199_v50, %v3733_v40  ;;  %v1207_v9 = vcombine.high %v1199_v50, %v1199_v50  ;;  %v3187_v4 = vld [vmem:[#allocation13 + $0x50] ss:$12 sps:$4 sm:$0xff]  }
 0x339   :  { %v3190_v50 = vld [vmem:[#allocation13 + $0x1c] ss:$12 sps:$4 sm:$0xff]  }
 0x33a   :  { %v1306_v7 = vpack.c.bf16 %v1215_v6, %v1215_v6  ;;  %v1208_v8 = vcombine.high %v1206_v5, %v1206_v5  ;;  %v1229_v12 = vrot.slane %v1207_v9, %v3733_v40  ;;  %v1237_v16 = vcombine.high %v1215_v6, %v1215_v6  ;;  %v3191_v6 = vld [vmem:[#allocation13 + $0x38] ss:$12 sps:$4 sm:$0xff]   ;;  %v3195_v9 = vld [vmem:[#allocation13 + $0x20] ss:$12 sps:$4 sm:$0xff]  }
 0x33c   :  { %2979 = vmatmul.mubr.msk.bf16.vlgmr.msra.gmra.mxu1 %vm1165_vm10, %v1306_v7  ;;  %v1236_v10 = vrot.slane %v1208_v8, %v3733_v40  ;;  %v1307_v15 = vpack.c.bf16 %v1229_v12, %v1229_v12  ;;  %v1308_v17 = vpack.c.bf16 %v1237_v16, %v1237_v16  ;;  %v3194_v7 = vld [vmem:[#allocation13 + $0x4] ss:$12 sps:$4 sm:$0xff]   ;;  %v3192_v8 = vld [vmem:[#allocation13] ss:$12 sps:$4 sm:$0xff]  }
 0x33d   :  { %2983 = vmatpush3.bf16.msra.mxu1 %v3676_v19  ;;  %2984 = vmatprep.mubr.msk.bf16.mxu1 %vm3546_vm0, %v3545_v0  ;;  %v3204_v16 = vld [vmem:[#allocation11 + $0x94] ss:$12 sps:$4 sm:$0xff]  }
 0x33e   :  { %v1240_v11 = vcombine.high %v1236_v10, %v1236_v10  ;;  %2988 = vmatprep.subr.bf16.mxu1 %v3545_v0  ;;  %v1311_v44 = vpack.c.bf16 %v1236_v10, %v1236_v10  ;;  %v3548_v10 = vmov 0  }
 0x340   :  { %v1313_v13 = vpack.c.bf16 %v1240_v11, %v1240_v11  ;;  %v3196_v11 = vld [vmem:[#allocation7] sm:$0xff]  }
 0x342   :  { %3021 = vmatmul.mubr.msk.bf16.vlgmr.msra.gmra.mxu0 %vm1165_vm10, %v1313_v13  ;;  %v3198_v13 = vld [vmem:[#allocation11 + $0xa8] ss:$12 sps:$4 sm:$0xff]  }
 0x343   :  { %3031 = vmatpush3.bf16.msra.mxu0 %v3703_v27  ;;  %3032 = vmatprep.mubr.msk.bf16.mxu0 %vm3546_vm0, %v3545_v0  ;;  %v1239_v27 = vcombine.high %v1229_v12, %v1229_v12  ;;  %v3197_v12 = vld [vmem:[#allocation13 + $0x8] ss:$12 sps:$4 sm:$0xff]  }
 0x344   :  { %2985 = vmatmul.mubr.msk.bf16.vlgmr.msra.gmra.mxu1 %vm1165_vm10, %v1307_v15  ;;  %3042 = vmatprep.subr.bf16.mxu0 %v3545_v0  ;;  %v3200_v15 = vld [vmem:[#allocation11 + $0xac] ss:$12 sps:$4 sm:$0xff]  }
 0x345   :  { %2989 = vmatpush3.bf16.msra.mxu1 %v3678_v20  ;;  %v1183_v19 = vpop.xlane.xlu1 %1182  ;;  %2990 = vmatprep.mubr.msk.bf16.mxu1 %vm3546_vm0, %v3545_v0  ;;  %v1309_v20 = vpack.c.bf16 %v1239_v27, %v1239_v27  ;;  %v3205_v27 = vld [vmem:[#allocation11 + $0x98] ss:$12 sps:$4 sm:$0xff]  }
 0x346   :  { %3300 = vrcp.f32 %v1183_v19  ;;  %2994 = vmatprep.subr.bf16.mxu1 %v3545_v0  ;;  %v3201_v19 = vld [vmem:[#allocation11 + $0xb0] ss:$12 sps:$4 sm:$0xff]  }
 0x34c   :  { %2991 = vmatmul.mubr.msk.bf16.vlgmr.msra.gmra.mxu1 %vm1165_vm10, %v1308_v17  ;;  %v3202_v17 = vld [vmem:[#allocation11 + $0x90] ss:$12 sps:$4 sm:$0xff]  }
 0x34d   :  { %2995 = vmatpush3.bf16.msra.mxu1 %v3684_v22  ;;  %2996 = vmatprep.mubr.msk.bf16.mxu1 %vm3546_vm0, %v3545_v0  ;;  %v1222_v22 = vrot.slane %v1206_v5, %v3733_v40  ;;  %v3188_v5 = vld [vmem:[#allocation13 + $0x18] ss:$12 sps:$4 sm:$0xff]  }
 0x34e   :  { %3000 = vmatprep.subr.bf16.mxu1 %v3545_v0 }
 0x34f   :  { %v1310_v37 = vpack.c.bf16 %v1222_v22, %v1222_v22 }
 0x353   :  { %v3301_v18 = vpop.eup %3300 }
 0x354   :  { %v1187_v21 = vmul.f32 %v3301_v18, %v3297_v63  ;;  %2997 = vmatmul.mubr.msk.bf16.vlgmr.msra.gmra.mxu1 %vm1165_vm10, %v1309_v20  ;;  %v3182_v63 = vld [vmem:[#allocation13 + $0x4c] ss:$12 sps:$4 sm:$0xff]   ;;  %v3208_v18 = vld [vmem:[#allocation11 + $0x7c] ss:$12 sps:$4 sm:$0xff]  }
 0x355   :  { %3001 = vmatpush3.bf16.msra.mxu1 %v3688_v23  ;;  %3002 = vmatprep.mubr.msk.bf16.mxu1 %vm3546_vm0, %v3545_v0  ;;  %v3206_v20 = vld [vmem:[#allocation11 + $0x78] ss:$12 sps:$4 sm:$0xff]  }
 0x356   :  { %1189 = vst.msk [vmem:[#allocation17 + $0x8] sm:$0xff] %vm1165_vm10, %v1187_v21  ;;  %3006 = vmatprep.subr.bf16.mxu1 %v3545_v0  ;;  %v1248_v34 = vrot.slane %v1187_v21, %v3733_v40  ;;  %v1241_v39 = vcombine.high %v1187_v21, %v1187_v21  ;;  %v3209_v21 = vld [vmem:[#allocation11 + $0x80] ss:$12 sps:$4 sm:$0xff]  }
 0x358   :  { %v1256_v14 = vcombine.high %v1248_v34, %v1248_v34  ;;  %v1255_v43 = vrot.slane %v1241_v39, %v3733_v40  ;;  %v3217_v39 = vld [vmem:[#allocation11 + $0x50] ss:$12 sps:$4 sm:$0xff]  }
 0x35a   :  { %v1278_v35 = vrot.slane %v1256_v14, %v3733_v40  ;;  %v1257_v45 = vcombine.high %v1255_v43, %v1255_v43  ;;  %v3213_v14 = vld [vmem:[#allocation11 + $0x68] ss:$12 sps:$4 sm:$0xff]  }
 0x35c   :  { %3003 = vmatmul.mubr.msk.bf16.vlgmr.msra.gmra.mxu1 %vm1165_vm10, %v1310_v37  ;;  %v1315_v42 = vpack.c.bf16 %v1278_v35, %v1278_v35  ;;  %v1288_v23 = vcombine.high %v1278_v35, %v1278_v35  ;;  %v1285_v47 = vrot.slane %v1257_v45, %v3733_v40  ;;  %v3214_v37 = vld [vmem:[#allocation11 + $0x48] ss:$12 sps:$4 sm:$0xff]   ;;  %v3216_v35 = vld [vmem:[#allocation11 + $0x4c] ss:$12 sps:$4 sm:$0xff]  }
 0x35d   :  { %3007 = vmatpush3.bf16.msra.mxu1 %v3694_v24  ;;  %3008 = vmatprep.mubr.msk.bf16.mxu1 %vm3546_vm0, %v3545_v0  ;;  %v3225_v45 = vld [vmem:[#allocation11 + $0x20] ss:$12 sps:$4 sm:$0xff]  }
 0x35e   :  { %3033 = vmatmul.mubr.msk.bf16.vlgmr.msra.gmra.mxu0 %vm1165_vm10, %v1315_v42  ;;  %3012 = vmatprep.subr.bf16.mxu1 %v3545_v0  ;;  %v1317_v24 = vpack.c.bf16 %v1288_v23, %v1288_v23  ;;  %v1289_v51 = vcombine.high %v1285_v47, %v1285_v47  ;;  %v3220_v42 = vld [vmem:[#allocation11 + $0x34] ss:$12 sps:$4 sm:$0xff]   ;;  %v3218_v23 = vld [vmem:[#allocation11 + $0x30] ss:$12 sps:$4 sm:$0xff]  }
 0x35f   :  { %3043 = vmatpush3.bf16.msra.mxu0 %v3709_v29  ;;  %3044 = vmatprep.mubr.msk.bf16.mxu0 %vm3546_vm0, %v3545_v0  ;;  %v1238_v29 = vcombine.high %v1222_v22, %v1222_v22  ;;  %v3212_v22 = vld [vmem:[#allocation11 + $0x64] ss:$12 sps:$4 sm:$0xff]  }
 0x360   :  { %3054 = vmatprep.subr.bf16.mxu0 %v3545_v0 }
 0x361   :  { %v1312_v49 = vpack.c.bf16 %v1238_v29, %v1238_v29  ;;  %v3228_v29 = vld [vmem:[#allocation11 + $0x4] ss:$12 sps:$4 sm:$0xff]  }
 0x364   :  { %3009 = vmatmul.mubr.msk.bf16.vlgmr.msra.gmra.mxu1 %vm1165_vm10, %v1311_v44  ;;  %v3222_v44 = vld [vmem:[#allocation11 + $0x18] ss:$12 sps:$4 sm:$0xff]  }
 0x365   :  { %3013 = vmatpush3.bf16.msra.mxu1 %v3696_v25  ;;  %3014 = vmatprep.mubr.msk.bf16.mxu1 %vm3546_vm0, %v3545_v0  ;;  %v1319_v25 = vpack.c.bf16 %v1285_v47, %v1285_v47  ;;  %v3226_v47 = vld [vmem:[#allocation11] ss:$12 sps:$4 sm:$0xff]  }
 0x366   :  { %3045 = vmatmul.mubr.msk.bf16.vlgmr.msra.gmra.mxu0 %vm1165_vm10, %v1317_v24  ;;  %3024 = vmatprep.subr.bf16.mxu1 %v3545_v0  ;;  %v3224_v24 = vld [vmem:[#allocation11 + $0x1c] ss:$12 sps:$4 sm:$0xff]  }
 0x367   :  { %3055 = vmatpush3.bf16.msra.mxu0 %v3715_v31  ;;  %3056 = vmatprep.mubr.msk.bf16.mxu0 %vm3546_vm0, %v3545_v0  ;;  %v1264_v31 = vrot.slane %v1248_v34, %v3733_v40  ;;  %v3210_v34 = vld [vmem:[#allocation11 + $0x60] ss:$12 sps:$4 sm:$0xff]  }
 0x368   :  { %3066 = vmatprep.subr.bf16.mxu0 %v3545_v0 }
 0x369   :  { %v1314_v53 = vpack.c.bf16 %v1264_v31, %v1264_v31 }
 0x36c   :  { %3015 = vmatmul.mubr.msk.bf16.vlgmr.msra.gmra.mxu1 %vm1165_vm10, %v1312_v49  ;;  %v3229_v49 = vld [vmem:[#allocation11 + $0x8] ss:$12 sps:$4 sm:$0xff]  }
 0x36d   :  { %3025 = vmatpush3.bf16.msra.mxu1 %v3700_v26  ;;  %3026 = vmatprep.mubr.msk.bf16.mxu1 %vm3546_vm0, %v3545_v0  ;;  %v1321_v26 = vpack.c.bf16 %v1289_v51, %v1289_v51 }
 0x36e   :  { %3057 = vmatmul.mubr.msk.bf16.vlgmr.msra.gmra.mxu0 %vm1165_vm10, %v1319_v25  ;;  %3036 = vmatprep.subr.bf16.mxu1 %v3545_v0 }
 0x36f   :  { %3067 = vmatpush3.bf16.msra.mxu0 %v3721_v33  ;;  %3068 = vmatprep.mubr.msk.bf16.mxu0 %vm3546_vm0, %v3545_v0  ;;  %v1286_v33 = vcombine.high %v1264_v31, %v1264_v31 }
 0x370   :  { %3072 = vmatprep.subr.bf16.mxu0 %v3545_v0 }
 0x371   :  { %v1316_v54 = vpack.c.bf16 %v1286_v33, %v1286_v33 }
 0x374   :  { %3027 = vmatmul.mubr.msk.bf16.vlgmr.msra.gmra.mxu1 %vm1165_vm10, %v1314_v53 }
 0x375   :  { %3037 = vmatpush3.bf16.msra.mxu1 %v3705_v28  ;;  %3038 = vmatprep.mubr.msk.bf16.mxu1 %vm3546_vm0, %v3545_v0  ;;  %v1271_v28 = vrot.slane %v1255_v43, %v3733_v40  ;;  %v3174_v40 = vld [vmem:[#allocation13 + $0x7c] ss:$12 sps:$4 sm:$0xff]   ;;  %v3221_v43 = vld [vmem:[#allocation11 + $0x38] ss:$12 sps:$4 sm:$0xff]  }
 0x376   :  { %3069 = vmatmul.mubr.msk.bf16.vlgmr.msra.gmra.mxu0 %vm1165_vm10, %v1321_v26  ;;  %3048 = vmatprep.subr.bf16.mxu1 %v3545_v0 }
 0x377   :  { %3088 = vmatprep.mubr.msk.bf16.mxu0 %vm3546_vm0, %v3545_v0  ;;  %v1318_v55 = vpack.c.bf16 %v1271_v28, %v1271_v28  ;;  %v1287_v56 = vcombine.high %v1271_v28, %v1271_v28  ;;  %3073 = vmatpush3.bf16.msra.mxu0 %v3171_v41 }
 0x378   :  { %3074 = vmatprep.subr.bf16.mxu0 %v3545_v0 }
 0x379   :  { %v1320_v36 = vpack.c.bf16 %v1287_v56, %v1287_v56 }
 0x37c   :  { %3039 = vmatmul.mubr.msk.bf16.vlgmr.msra.gmra.mxu1 %vm1165_vm10, %v1316_v54 }
 0x37d   :  { %3049 = vmatpush3.bf16.msra.mxu1 %v3711_v30  ;;  %3050 = vmatprep.mubr.msk.bf16.mxu1 %vm3546_vm0, %v3545_v0  ;;  %v3165_v30 = vld [vmem:[#allocation13 + $0xa8] ss:$12 sps:$4 sm:$0xff]  }
 0x37e   :  { %3060 = vmatprep.subr.bf16.mxu1 %v3545_v0 }
 0x384   :  { %3051 = vmatmul.mubr.msk.bf16.vlgmr.msra.gmra.mxu1 %vm1165_vm10, %v1318_v55 }
 0x385   :  { %3061 = vmatpush3.bf16.msra.mxu1 %v3717_v32  ;;  %3062 = vmatprep.mubr.msk.bf16.mxu1 %vm3546_vm0, %v3545_v0  ;;  %v3175_v32 = vld [vmem:[#allocation13 + $0x98] ss:$12 sps:$4 sm:$0xff]  }
 0x386   :  { %2226 = vmatprep.subr.bf16.mxu1 %v3167_v57  ;;  %3075 = vmatpush3.bf16.msra.mxu0 %v3175_v32 }
 0x387   :  { %3076 = vmatprep.subr.bf16.mxu0 %v3545_v0 }
 0x38a   :  { %3077 = vmatpush3.bf16.msra.mxu0 %v3179_v62 }
 0x38b   :  { %3078 = vmatprep.subr.bf16.mxu0 %v3545_v0 }
 0x38c   :  { %3063 = vmatmul.mubr.msk.bf16.vlgmr.msra.gmra.mxu1 %vm1165_vm10, %v1320_v36 }
 0x38d   :  { %2227 = vmatpush1.bf16.msra.mxu1 %v3165_v30  ;;  %2258 = vmatprep.mubr.bf16.mxu1 %v3548_v10 }
 0x38e   :  { %2228 = vmatprep.subr.bf16.mxu1 %v3170_v59  ;;  %3079 = vmatpush3.bf16.msra.mxu0 %v3183_v46 }
 0x38f   :  { %3080 = vmatprep.subr.bf16.mxu0 %v3545_v0 }
 0x391   :  { %2229 = vmatpush1.bf16.msra.mxu1 %v3168_v58 }
 0x392   :  { %2230 = vmatprep.subr.bf16.mxu1 %v3174_v40  ;;  %3081 = vmatpush3.bf16.msra.mxu0 %v3187_v4 }
 0x393   :  { %3082 = vmatprep.subr.bf16.mxu0 %v3545_v0 }
 0x395   :  { %2231 = vmatpush1.bf16.msra.mxu1 %v3172_v52 }
 0x396   :  { %2232 = vmatprep.subr.bf16.mxu1 %v3178_v61  ;;  %3083 = vmatpush3.bf16.msra.mxu0 %v3191_v6 }
 0x397   :  { %3084 = vmatprep.subr.bf16.mxu0 %v3545_v0 }
 0x399   :  { %2233 = vmatpush1.bf16.msra.mxu1 %v3176_v60 }
 0x39a   :  { %2234 = vmatprep.subr.bf16.mxu1 %v3182_v63  ;;  %3085 = vmatpush3.bf16.msra.mxu0 %v3195_v9 }
 0x39b   :  { %3086 = vmatprep.subr.bf16.mxu0 %v3545_v0 }
 0x39d   :  { %2235 = vmatpush1.bf16.msra.mxu1 %v3180_v1 }
 0x39e   :  { %2236 = vmatprep.subr.bf16.mxu1 %v3186_v3  ;;  %3087 = vmatpush3.bf16.msra.mxu0 %v3197_v12 }
 0x39f   :  { %3092 = vmatprep.subr.bf16.mxu0 %v3545_v0 }
 0x3a1   :  { %2237 = vmatpush1.bf16.msra.mxu1 %v3184_v2  ;;  %3089 = vmatmul.mubr.bf16.vlgmr.msra.gmra.mxu0 %v3196_v11 }
 0x3a2   :  { %2238 = vmatprep.subr.bf16.mxu1 %v3190_v50  ;;  %3093 = vmatpush3.bf16.msra.mxu0 %v3201_v19 }
 0x3a3   :  { %3094 = vmatprep.subr.bf16.mxu0 %v3545_v0  ;;  %3108 = vmatprep.mubr.msk.bf16.mxu0 %vm3546_vm0, %v3545_v0 }
 0x3a5   :  { %2239 = vmatpush1.bf16.msra.mxu1 %v3188_v5 }
 0x3a6   :  { %2240 = vmatprep.subr.bf16.mxu1 %v3194_v7  ;;  %3095 = vmatpush3.bf16.msra.mxu0 %v3205_v27 }
 0x3a7   :  { %3096 = vmatprep.subr.bf16.mxu0 %v3545_v0 }
 0x3a9   :  { %2241 = vmatpush1.bf16.msra.mxu1 %v3192_v8 }
 0x3aa   :  { %2500 = vmatprep.subr.bf16.mxu1 %v3200_v15  ;;  %3097 = vmatpush3.bf16.msra.mxu0 %v3209_v21 }
 0x3ab   :  { %3098 = vmatprep.subr.bf16.mxu0 %v3545_v0 }
 0x3ac   :  { %2259 = vmatmul.mubr.bf16.vlgmr.msra.gmra.mxu1 %v3196_v11 }
 0x3ad   :  { %2532 = vmatprep.mubr.bf16.mxu1 %v3548_v10  ;;  %2501 = vmatpush1.bf16.msra.mxu1 %v3198_v13 }
 0x3ae   :  { %2502 = vmatprep.subr.bf16.mxu1 %v3204_v16  ;;  %3099 = vmatpush3.bf16.msra.mxu0 %v3213_v14 }
 0x3af   :  { %3100 = vmatprep.subr.bf16.mxu0 %v3545_v0 }
 0x3b1   :  { %2503 = vmatpush1.bf16.msra.mxu1 %v3202_v17 }
 0x3b2   :  { %2504 = vmatprep.subr.bf16.mxu1 %v3208_v18  ;;  %3101 = vmatpush3.bf16.msra.mxu0 %v3217_v39 }
 0x3b3   :  { %3102 = vmatprep.subr.bf16.mxu0 %v3545_v0 }
 0x3b5   :  { %2505 = vmatpush1.bf16.msra.mxu1 %v3206_v20 }
 0x3b6   :  { %2506 = vmatprep.subr.bf16.mxu1 %v3212_v22  ;;  %3103 = vmatpush3.bf16.msra.mxu0 %v3221_v43 }
 0x3b7   :  { %3104 = vmatprep.subr.bf16.mxu0 %v3545_v0 }
 0x3b9   :  { %2507 = vmatpush1.bf16.msra.mxu1 %v3210_v34 }
 0x3ba   :  { %2508 = vmatprep.subr.bf16.mxu1 %v3216_v35  ;;  %3105 = vmatpush3.bf16.msra.mxu0 %v3225_v45 }
 0x3bb   :  { %3106 = vmatprep.subr.bf16.mxu0 %v3545_v0 }
 0x3bd   :  { %2509 = vmatpush1.bf16.msra.mxu1 %v3214_v37 }
 0x3be   :  { %2510 = vmatprep.subr.bf16.mxu1 %v3220_v42  ;;  %3107 = vmatpush3.bf16.msra.mxu0 %v3229_v49 }
 0x3c1   :  { %2511 = vmatpush1.bf16.msra.mxu1 %v3218_v23 }
 0x3c2   :  { %2512 = vmatprep.subr.bf16.mxu1 %v3224_v24 }
 0x3c5   :  { %2513 = vmatpush1.bf16.msra.mxu1 %v3222_v44 }
 0x3c6   :  { %2514 = vmatprep.subr.bf16.mxu1 %v3228_v29 }
 0x3c9   :  { %2515 = vmatpush1.bf16.msra.mxu1 %v3226_v47 }
 0x3fc   :  { %v1359_v25 = vpop.f32.mrf.mxu1 }
 0x3fd   :  { %v2010_v28 = vpack.c.bf16 %v1359_v25, %v1359_v25 }
 0x3fe   :  { %v2980_v31 = vpop.f32.mrf.mxu1 }
 0x3ff   :  { %v2326_v59 = vunpack.c.l.b16 %v2010_v28 }
 0x400   :  { %v1362_v51 = vpop.f32.mrf.mxu1 }
 0x402   :  { %v2981_v53 = vpop.f32.mrf.mxu1  ;;  %v1660_v26 = vpop.f32.mrf.mxu0 }
 0x403   :  { %v2017_v21 = vpack.c.bf16 %v1660_v26, %v1660_v26 }
 0x404   :  { %v1402_v33 = vpop.f32.mrf.mxu1  ;;  %v3022_v54 = vpop.f32.mrf.mxu0 }
 0x405   :  { %v2011_v55 = vpack.c.bf16 %v1402_v33, %v1402_v33  ;;  %v2333_v44 = vunpack.c.l.b16 %v2017_v21 }
 0x406   :  { %v2986_v56 = vpop.f32.mrf.mxu1  ;;  %v1663_v36 = vpop.f32.mrf.mxu0 }
 0x407   :  { %v2327_v30 = vunpack.c.l.b16 %v2011_v55  ;;  %v2354_v33 = vrot.slane %v2333_v44, 1 }
 0x408   :  { %v1405_v57 = vpop.f32.mrf.mxu1  ;;  %v3023_v58 = vpop.f32.mrf.mxu0 }
 0x409   :  { %v2342_v41 = vrot.slane %v2327_v30, 7 }
 0x40a   :  { %v2987_v40 = vpop.f32.mrf.mxu1 }
 0x40b   :  { %v2343_v0 = vsel %vm1140_vm2, %v2342_v41, %v2326_v59 }
 0x40c   :  { %v1445_v52 = vpop.f32.mrf.mxu1 }
 0x40d   :  { %v2012_v8 = vpack.c.bf16 %v1445_v52, %v1445_v52 }
 0x40e   :  { %v2992_v32 = vpop.f32.mrf.mxu1 }
 0x40f   :  { %v2328_v16 = vunpack.c.l.b16 %v2012_v8 }
 0x410   :  { %v1448_v60 = vpop.f32.mrf.mxu1 }
 0x411   :  { %v2344_v37 = vrot.slane %v2328_v16, 6 }
 0x412   :  { %v2993_v61 = vpop.f32.mrf.mxu1 }
 0x413   :  { %v2345_v47 = vsel %vm1142_vm3, %v2344_v37, %v2343_v0 }
 0x414   :  { %v1488_v62 = vpop.f32.mrf.mxu1 }
 0x415   :  { %v2013_v9 = vpack.c.bf16 %v1488_v62, %v1488_v62 }
 0x416   :  { %v2998_v63 = vpop.f32.mrf.mxu1 }
 0x417   :  { %v2329_v17 = vunpack.c.l.b16 %v2013_v9 }
 0x418   :  { %v1491_v1 = vpop.f32.mrf.mxu1 }
 0x419   :  { %v2346_v35 = vrot.slane %v2329_v17, 5 }
 0x41a   :  { %v2999_v46 = vpop.f32.mrf.mxu1 }
 0x41b   :  { %v2347_v25 = vsel %vm1144_vm4, %v2346_v35, %v2345_v47 }
 0x41c   :  { %v1531_v2 = vpop.f32.mrf.mxu1 }
 0x41d   :  { %v2014_v12 = vpack.c.bf16 %v1531_v2, %v1531_v2 }
 0x41e   :  { %v3004_v3 = vpop.f32.mrf.mxu1  ;;  %v1746_v4 = vpop.f32.mrf.mxu0 }
 0x41f   :  { %v2330_v18 = vunpack.c.l.b16 %v2014_v12  ;;  %v2019_v63 = vpack.c.bf16 %v1746_v4, %v1746_v4 }
 0x420   :  { %v1534_v50 = vpop.f32.mrf.mxu1  ;;  %v3034_v5 = vpop.f32.mrf.mxu0 }
 0x421   :  { %v2348_v23 = vrot.slane %v2330_v18, 4  ;;  %v2335_v50 = vunpack.c.l.b16 %v2019_v63 }
 0x422   :  { %v3005_v6 = vpop.f32.mrf.mxu1  ;;  %v1749_v7 = vpop.f32.mrf.mxu0 }
 0x423   :  { %v2349_v53 = vsel %vm1146_vm5, %v2348_v23, %v2347_v25  ;;  %v2356_v12 = vrot.slane %v2335_v50, 7 }
 0x424   :  { %v1574_v10 = vpop.f32.mrf.mxu1  ;;  %v3035_v11 = vpop.f32.mrf.mxu0 }
 0x425   :  { %v2015_v13 = vpack.c.bf16 %v1574_v10, %v1574_v10 }
 0x426   :  { %v3010_v15 = vpop.f32.mrf.mxu1  ;;  %v1832_v19 = vpop.f32.mrf.mxu0 }
 0x427   :  { %v2331_v22 = vunpack.c.l.b16 %v2015_v13  ;;  %v2021_v5 = vpack.c.bf16 %v1832_v19, %v1832_v19 }
 0x428   :  { %v1577_v27 = vpop.f32.mrf.mxu1  ;;  %v3046_v20 = vpop.f32.mrf.mxu0 }
 0x429   :  { %v2350_v24 = vrot.slane %v2331_v22, 3  ;;  %v2337_v13 = vunpack.c.l.b16 %v2021_v5 }
 0x42a   :  { %v3011_v34 = vpop.f32.mrf.mxu1  ;;  %v1835_v14 = vpop.f32.mrf.mxu0 }
 0x42b   :  { %v2351_v54 = vsel %vm1148_vm6, %v2350_v24, %v2349_v53  ;;  %v2360_v21 = vrot.slane %v2337_v13, 5 }
 0x42c   :  { %v1617_v39 = vpop.f32.mrf.mxu1  ;;  %v3047_v42 = vpop.f32.mrf.mxu0 }
 0x42d   :  { %v2016_v43 = vpack.c.bf16 %v1617_v39, %v1617_v39 }
 0x42e   :  { %v3016_v45 = vpop.f32.mrf.mxu1  ;;  %v1918_v29 = vpop.f32.mrf.mxu0 }
 0x42f   :  { %v2332_v49 = vunpack.c.l.b16 %v2016_v43  ;;  %v2023_v15 = vpack.c.bf16 %v1918_v29, %v1918_v29 }
 0x430   :  { %v1620_v31 = vpop.f32.mrf.mxu1  ;;  %v3058_v51 = vpop.f32.mrf.mxu0 }
 0x431   :  { %v2352_v26 = vrot.slane %v2332_v49, 2  ;;  %v2339_v22 = vunpack.c.l.b16 %v2023_v15 }
 0x432   :  { %v3017_v28 = vpop.f32.mrf.mxu1  ;;  %v1921_v55 = vpop.f32.mrf.mxu0 }
 0x433   :  { %v2353_v56 = vsel %vm1150_vm7, %v2352_v26, %v2351_v54  ;;  %v2364_v23 = vrot.slane %v2339_v22, 3  ;;  %v2584_v55 = vld [vmem:[%s4045_s9] sm:$0x7] }
 0x434   :  { %v2355_v36 = vsel %vm1152_vm8, %v2354_v33, %v2353_v56  ;;  %v1703_v30 = vpop.f32.mrf.mxu1  ;;  %v3059_v57 = vpop.f32.mrf.mxu0 }
 0x435   :  { %v2018_v46 = vpack.c.bf16 %v1703_v30, %v1703_v30  ;;  %v2589_v30 = vrot.slane %v2584_v55, %v3737_v48 }
 0x436   :  { %v3028_v58 = vpop.f32.mrf.mxu1  ;;  %v2004_v59 = vpop.f32.mrf.mxu0 }
 0x437   :  { %v2334_v8 = vunpack.c.l.b16 %v2018_v46  ;;  %v2025_v27 = vpack.c.bf16 %v2004_v59, %v2004_v59 }
 0x438   :  { %v1706_v41 = vpop.f32.mrf.mxu1  ;;  %v3070_v40 = vpop.f32.mrf.mxu0 }
 0x439   :  { %v2357_v17 = vsel %vm1140_vm2, %v2356_v12, %v2334_v8  ;;  %v2341_v14 = vunpack.c.l.b16 %v2025_v27  ;;  %v2596_v12 = vsub.s32 2, %v3727_v38 }
 0x43a   :  { %v3029_v0 = vpop.f32.mrf.mxu1  ;;  %v2007_v52 = vpop.f32.mrf.mxu0 }
 0x43b   :  { %v2368_v24 = vrot.slane %v2341_v14, 1 }
 0x43c   :  { %v1789_v32 = vpop.f32.mrf.mxu1  ;;  %v3071_v60 = vpop.f32.mrf.mxu0 }
 0x43d   :  { %v2020_v62 = vpack.c.bf16 %v1789_v32, %v1789_v32 }
 0x43e   :  { %v3040_v61 = vpop.f32.mrf.mxu1 }
 0x43f   :  { %v2336_v3 = vunpack.c.l.b16 %v2020_v62 }
 0x440   :  { %v1792_v1 = vpop.f32.mrf.mxu1 }
 0x441   :  { %v2358_v10 = vrot.slane %v2336_v3, 6 }
 0x442   :  { %v3041_v2 = vpop.f32.mrf.mxu1 }
 0x443   :  { %v2359_v20 = vsel %vm1142_vm3, %v2358_v10, %v2357_v17  ;;  %v2597_v17 = vrot.slane %v2584_v55, %v2596_v12 }
 0x444   :  { %v1875_v6 = vpop.f32.mrf.mxu1  ;;  %v2361_v37 = vsel %vm1144_vm4, %v2360_v21, %v2359_v20 }
 0x445   :  { %v2022_v7 = vpack.c.bf16 %v1875_v6, %v1875_v6 }
 0x446   :  { %v3052_v9 = vpop.f32.mrf.mxu1 }
 0x447   :  { %v2338_v11 = vunpack.c.l.b16 %v2022_v7 }
 0x448   :  { %v1878_v16 = vpop.f32.mrf.mxu1 }
 0x449   :  { %v2362_v18 = vrot.slane %v2338_v11, 4 }
 0x44a   :  { %v3053_v4 = vpop.f32.mrf.mxu1 }
 0x44b   :  { %v2363_v39 = vsel %vm1146_vm5, %v2362_v18, %v2361_v37  ;;  %v2815_v4 = vld [vmem:[%s4046_s10] ss:$0 sm:$0xff]  ;;  %s3549_s10 = smov [#allocation14]  }
 0x44c   :  { %v1961_v19 = vpop.f32.mrf.mxu1  ;;  %v2365_v45 = vsel %vm1148_vm6, %v2364_v23, %v2363_v39  ;;  %s2665_s28 = sshll.u32 %s3549_s10, 4  ;;  %s2666_s28 = int_to_ptr.vmem [resolvable:$true] %s2665_s28 }
 0x44d   :  { %v2024_v34 = vpack.c.bf16 %v1961_v19, %v1961_v19  ;;  %s3462_s17 = scalar_lea.vmem %s2666_s28, 256  ;;  %p3467_p8 = scmp.lt.s32.totalorder %s2666_s28, %s2666_s28 }
 0x44e   :  { %v3064_v35 = vpop.f32.mrf.mxu1  ;;  %p3463_p7 = scmp.ne.s32.totalorder %s2666_s28, %s3462_s17  ;;  %p3468_p9 = scmp.lt.s32.totalorder %s3462_s17, %s3462_s17 }
 0x44f   :  { %v2340_v42 = vunpack.c.l.b16 %v2024_v34 }
 0x450   :  { %v1964_v43 = vpop.f32.mrf.mxu1  ;;  %p3469_p10 = por %p3468_p9, %p3467_p8 }
 0x451   :  { %v2366_v44 = vrot.slane %v2340_v42, 2 }
 0x452   :  { %v3065_v29 = vpop.f32.mrf.mxu1  ;;  %p3470_p11 = pnand %p3469_p10, %p3463_p7 }
 0x453   :  { %v2367_v47 = vsel %vm1150_vm7, %v2366_v44, %v2365_v45 }
 0x454   :  { %v2369_v49 = vsel %vm1152_vm8, %v2368_v24, %v2367_v47 }
 0x455   :  { %v2370_v25 = vpack.c.b16 %v2369_v49, %v2355_v36  ;;  %v2592_v36 = vsub.s32 1, %v3727_v38 }
 0x457   :  { %2533 = vmatmul.mubr.bf16.vlgmr.msra.gmra.mxu1 %v2370_v25  ;;  %3109 = vmatmul.mubr.bf16.vlgmr.msra.gmra.mxu0 %v2370_v25  ;;  %v2593_v62 = vrot.slane %v2584_v55, %v2592_v36 }
 0x461   :  { %v2303_v31 = vpop.f32.mrf.mxu0 }
 0x463   :  { %v3090_v51 = vpop.f32.mrf.mxu0 }
 0x465   :  { %v2306_v53 = vpop.f32.mrf.mxu0 }
 0x467   :  { %v3091_v26 = vpop.f32.mrf.mxu0 }
 0x46c   :  { %v2260_v33 = vpop.f32.mrf.mxu1 }
 0x46e   :  { %v2262_v54 = vpop.f32.mrf.mxu1 }
 0x470   :  { %v2264_v28 = vpop.f32.mrf.mxu1 }
 0x472   :  { %v2266_v56 = vpop.f32.mrf.mxu1 }
 0x517   :  { %v2534_v57 = vpop.f32.mrf.mxu1  ;;  %v2577_v58 = vpop.f32.mrf.mxu0 }
 0x518   :  { %v2535_v59 = vadd.f32 %v2534_v57, %v2260_v33  ;;  %v2578_v16 = vadd.f32 %v2577_v58, %v2303_v31 }
 0x519   :  { %v2536_v41 = vpop.f32.mrf.mxu1  ;;  %v3110_v40 = vpop.f32.mrf.mxu0 }
 0x51a   :  { %v2601_v0 = vadd.f32 %v2589_v30, %v2535_v59  ;;  %v2537_v61 = vadd.f32 %v2536_v41, %v2262_v54  ;;  %v2603_v21 = vadd.f32 %v2597_v17, %v2578_v16 }
 0x51b   :  { %v2538_v52 = vpop.f32.mrf.mxu1  ;;  %v2580_v32 = vpop.f32.mrf.mxu0 }
 0x51c   :  { %v2811_v60 = vmul.f32 -1.442695, %v2601_v0  ;;  %v2539_v63 = vadd.f32 %v2538_v52, %v2264_v28  ;;  %v2602_v48 = vadd.f32 %v2593_v62, %v2537_v61  ;;  %v2581_v19 = vadd.f32 %v2580_v32, %v2306_v53 }
 0x51d   :  { %v2540_v1 = vpop.f32.mrf.mxu1  ;;  %v3111_v46 = vpop.f32.mrf.mxu0 }
 0x51e   :  { %3302 = vpow2.f32 %v2811_v60  ;;  %v2604_v2 = vadd.f32 %v2589_v30, %v2539_v63  ;;  %v2541_v3 = vadd.f32 %v2540_v1, %v2266_v56  ;;  %v2813_v6 = vmul.f32 -1.442695, %v2602_v48 }
 0x51f   :  { %v2606_v38 = vadd.f32 %v2597_v17, %v2581_v19 }
 0x520   :  { %v2812_v50 = vmul.f32 -1.442695, %v2604_v2  ;;  %v2605_v5 = vadd.f32 %v2593_v62, %v2541_v3 }
 0x522   :  { %3304 = vpow2.f32 %v2812_v50  ;;  %v2814_v7 = vmul.f32 -1.442695, %v2605_v5 }
 0x523   :  { %3306 = vpow2.f32 %v2813_v6 }
 0x524   :  { %3308 = vpow2.f32 %v2814_v7 }
 0x52b   :  { %v3303_v8 = vpop.eup %3302 }
 0x52c   :  { %v2613_v9 = vadd.f32 1.0, %v3303_v8 }
 0x52e   :  { %3310 = vrcp.f32 %v2613_v9 }
 0x52f   :  { %v3305_v10 = vpop.eup %3304 }
 0x530   :  { %v2614_v11 = vadd.f32 1.0, %v3305_v10  ;;  %v3307_v13 = vpop.eup %3306 }
 0x531   :  { %v3309_v15 = vpop.eup %3308  ;;  %v2625_v27 = vadd.f32 1.0, %v3307_v13 }
 0x532   :  { %3312 = vrcp.f32 %v2614_v11  ;;  %v2626_v18 = vadd.f32 1.0, %v3309_v15 }
 0x533   :  { %3314 = vrcp.f32 %v2625_v27 }
 0x534   :  { %3316 = vrcp.f32 %v2626_v18 }
 0x53b   :  { %v3311_v20 = vpop.eup %3310 }
 0x53c   :  { %v2638_v22 = vmul.f32 %v3311_v20, %v2815_v4 }
 0x53e   :  { %v2640_v34 = vadd.f32 %v2638_v22, %v2603_v21 }
 0x53f   :  { %v3313_v14 = vpop.eup %3312 }
 0x540   :  { %3318 = vtanh.f32 %v2640_v34  ;;  %v2639_v37 = vmul.f32 %v3313_v14, %v2815_v4  ;;  %v3315_v39 = vpop.eup %3314 }
 0x541   :  { %v3317_v42 = vpop.eup %3316  ;;  %v2644_v23 = vsub.f32 1.0, %v3315_v39 }
 0x542   :  { %v2641_v35 = vadd.f32 %v2639_v37, %v2606_v38  ;;  %v2645_v24 = vsub.f32 1.0, %v3317_v42 }
 0x544   :  { %3320 = vtanh.f32 %v2641_v35 }
 0x54d   :  { %v3319_v43 = vpop.eup %3318 }
 0x54e   :  { %v2646_v44 = vmul.f32 %v3319_v43, %v2644_v23 }
 0x550   :  { %2648 = vst [vmem:[#allocation14] sm:$0xff] %v2646_v44 }
 0x551   :  { %v3321_v45 = vpop.eup %3320 }
 0x552   :  { %v2647_v29 = vmul.f32 %v3321_v45, %v2645_v24 }
 0x554   :  { %2649 = vst [vmem:[#allocation14 + $0x8] sm:$0xff] %v2647_v29  ;;  %v2823_v47 = vpack.c.bf16 %v2647_v29, %v2646_v44 }
 0x555   :  { %3473 = shalt.err (!%p3470_p11)
}
 0x556   :  { %s3552_s18 = smov 128   ;;  %s3553_s19 = smov 8   ;;  %2824 = vst [vmem:[#allocation15] sm:$0xff] %v2823_v47  }
 0x557   :  { %2671 = dma.vmem_to_hbm [thread:$0]  %s2666_s28, 256, %s4047_s11, [#allocation4], %s3552_s18, %s3552_s18, %s3553_s19  }
 0x558   :  { %s3482_s0 = scalar_lea.vmem %s2678_s15, 128  ;;  %p3487_p13 = scmp.lt.s32.totalorder %s2678_s15, %s2678_s15 }
 0x559   :  { %p3483_p12 = scmp.ne.s32.totalorder %s2678_s15, %s3482_s0  ;;  %p3488_p0 = scmp.lt.s32.totalorder %s3482_s0, %s3482_s0 }
 0x55b   :  { %p3489_p1 = por %p3488_p0, %p3487_p13 }
 0x55d   :  { %p3490_p2 = pnand %p3489_p1, %p3483_p12 }
 0x55f   :  { %3493 = shalt.err (!%p3490_p2)
}
 0x560   :  { %2683 = dma.vmem_to_hbm [thread:$0]  %s2678_s15, 128, %s4048_s12, [#allocation16], %s3536_s30, %s3536_s30, %s3537_s14  }
 0x561   :  { %s3502_s25 = scalar_lea.vmem %s4017_s7, 256  ;;  %p3507_p4 = scmp.lt.s32.totalorder %s4017_s7, %s4017_s7 }
 0x562   :  { %p3503_p3 = scmp.ne.s32.totalorder %s4017_s7, %s3502_s25  ;;  %p3508_p5 = scmp.lt.s32.totalorder %s3502_s25, %s3502_s25 }
 0x564   :  { %p3509_p6 = por %p3508_p5, %p3507_p4 }
 0x566   :  { %p3510_p7 = pnand %p3509_p6, %p3503_p3 }
 0x568   :  { %3513 = shalt.err (!%p3510_p7)
}
 0x569   :  { %2695 = dma.vmem_to_hbm [thread:$0]  %s4017_s7, 256, %s4049_s13, [#allocation16], %s3552_s18, %s3552_s18, %s3553_s19  }
 0x56a   :  { %3530 = dma.done.wait [#allocation4], 256  }
 0x56b   :  { %3531 = vsyncadd [#allocation4], 4294967040 }
 0x56c   :  { %3532 = dma.done.wait [#allocation16], 384  }
 0x56d   :  { %3533 = vsyncadd [#allocation16], 4294966912 }
 0x56e   :  { %2705 = vsyncpa [#allocation3], 1 }
 0x56f   :  { %2706 = vsyncpa [#allocation6], 1 }
 0x570   :  { %2707 = vsyncpa [#allocation9], 1 }
 0x571   :  { %2708 = vsyncpa [#allocation12], 1 }
 0x572   :  { %2709 = vsyncpa [#allocation4], 1 }
 0x573   :  { %2710 = vsyncpa [#allocation16], 1 }

// kernel: tpu_custom_call.1
= control target key start
LH: loop header
LB: loop body
LE: loop exit
PB: predicated region body
PF: predicated region fallthrough
CT: control target
= control target key end

     0   :  { %19 = vsyncpa [#allocation3], 0  ;;  %s4036_s0 = inlined_call_operand.hbm [shape: bf16[16,16,128], index: 0, kind: input, shape index: {}]   ;;  %s4037_s1 = inlined_call_operand.hbm [shape: bf16[16,128], index: 1, kind: input, shape index: {}]   ;;  %s4038_s2 = inlined_call_operand.hbm [shape: bf16[16,128], index: 2, kind: input, shape index: {}]   ;;  %s4039_s3 = inlined_call_operand.hbm [shape: bf16[128,128], index: 3, kind: input, shape index: {}]   ;;  %s4040_s4 = inlined_call_operand.hbm [shape: bf16[128,128], index: 4, kind: input, shape index: {}]   ;;  %s4041_s5 = inlined_call_operand.vmem [shape: f32[1,128], index: 5, kind: input, shape index: {}]   ;;  %s4042_s6 = inlined_call_operand.vmem [shape: f32[1,128], index: 6, kind: input, shape index: {}]   ;;  %s4043_s7 = inlined_call_operand.hbm [shape: bf16[128,384], index: 7, kind: input, shape index: {}]   ;;  %s4044_s8 = inlined_call_operand.hbm [shape: bf16[128,384], index: 8, kind: input, shape index: {}]   ;;  %s4045_s9 = inlined_call_operand.vmem [shape: f32[1,384], index: 9, kind: input, shape index: {}]   ;;  %s4046_s10 = inlined_call_operand.vmem [shape: f32[1,128], index: 10, kind: input, shape index: {}]   ;;  %s4047_s11 = inlined_call_operand.hbm [shape: f32[16,128], index: 11, kind: output, shape index: {0}]   ;;  %s4048_s12 = inlined_call_operand.hbm [shape: bf16[16,128], index: 12, kind: output, shape index: {1}]   ;;  %s4049_s13 = inlined_call_operand.hbm [shape: f32[16,16], index: 13, kind: output, shape index: {2}]  }
   0x1   :  { %20 = vsyncpa [#allocation6], 0 }
   0x2   :  { %21 = vsyncpa [#allocation9], 0 }
   0x3   :  { %22 = vsyncpa [#allocation12], 0 }
   0x4   :  { %23 = vsyncpa [#allocation4], 0 }
   0x5   :  { %24 = vsyncpa [#allocation16], 0  ;;  %s3534_s25 = smov [#allocation5]   ;;  %s3535_s27 = smov [#allocation8]  }
   0x6   :  { %s42_s26 = sshll.u32 %s3534_s25, 4  ;;  %s66_s28 = sshll.u32 %s3535_s27, 4  ;;  %s43_s26 = int_to_ptr.vmem [resolvable:$true] %s42_s26  ;;  %s67_s28 = int_to_ptr.vmem [resolvable:$true] %s66_s28 }
   0x7   :  { %s3330_s29 = scalar_lea.vmem %s43_s26, 128  ;;  %p3335_p1 = scmp.lt.s32.totalorder %s43_s26, %s43_s26 }
   0x8   :  { %p3331_p0 = scmp.ne.s32.totalorder %s43_s26, %s3330_s29  ;;  %p3336_p2 = scmp.lt.s32.totalorder %s3330_s29, %s3330_s29 }
   0xa   :  { %p3337_p3 = por %p3336_p2, %p3335_p1 }
   0xc   :  { %p3338_p4 = pnand %p3337_p3, %p3331_p0 }
   0xe   :  { %3341 = shalt.err (!%p3338_p4)
}
   0xf   :  { %s3536_s30 = smov 64   ;;  %s3537_s14 = smov 4  }
  0x10   :  { %48 = dma.hbm_to_vmem [thread:$0]  %s4037_s1, 128, %s43_s26, [#allocation6], %s3536_s30, %s3536_s30, %s3537_s14  }
  0x11   :  { %s3350_s17 = scalar_lea.vmem %s67_s28, 1024  ;;  %p3355_p6 = scmp.lt.s32.totalorder %s67_s28, %s67_s28 }
  0x12   :  { %p3351_p5 = scmp.ne.s32.totalorder %s67_s28, %s3350_s17  ;;  %p3356_p7 = scmp.lt.s32.totalorder %s3350_s17, %s3350_s17 }
  0x14   :  { %p3357_p8 = por %p3356_p7, %p3355_p6 }
  0x16   :  { %p3358_p9 = pnand %p3357_p8, %p3351_p5 }
  0x18   :  { %3361 = shalt.err (!%p3358_p9)
}
  0x19   :  { %72 = dma.hbm_to_vmem [thread:$0]  %s4039_s3, 1024, %s67_s28, [#allocation9], %s3536_s30, %s3536_s30, %s3537_s14  }
  0x1a   :  { %s3538_s20 = smov [#allocation11]  }
  0x1b   :  { %s94_s21 = sshll.u32 %s3538_s20, 4  ;;  %s95_s21 = int_to_ptr.vmem [resolvable:$true] %s94_s21 }
  0x1c   :  { %s3370_s22 = scalar_lea.vmem %s95_s21, 3072  ;;  %p3375_p11 = scmp.lt.s32.totalorder %s95_s21, %s95_s21 }
  0x1d   :  { %p3371_p10 = scmp.ne.s32.totalorder %s95_s21, %s3370_s22  ;;  %p3376_p12 = scmp.lt.s32.totalorder %s3370_s22, %s3370_s22 }
  0x1f   :  { %p3377_p13 = por %p3376_p12, %p3375_p11 }
  0x21   :  { %p3378_p0 = pnand %p3377_p13, %p3371_p10 }
  0x23   :  { %3381 = shalt.err (!%p3378_p0)
}
  0x24   :  { %s3539_s1 = smov 192   ;;  %s3540_s23 = smov 12  }
  0x25   :  { %100 = dma.hbm_to_vmem [thread:$0]  %s4043_s7, 3072, %s95_s21, [#allocation12], %s3539_s1, %s3539_s1, %s3540_s23  }
  0x26   :  { %s3541_s3 = smov [#allocation2]   ;;  %s3542_s27 = smov [#allocation7]  }
  0x27   :  { %s30_s26 = sshll.u32 %s3541_s3, 4  ;;  %s54_s28 = sshll.u32 %s3542_s27, 4  ;;  %s31_s26 = int_to_ptr.vmem [resolvable:$true] %s30_s26  ;;  %s55_s28 = int_to_ptr.vmem [resolvable:$true] %s54_s28 }
  0x28   :  { %s3390_s29 = scalar_lea.vmem %s31_s26, 2048  ;;  %p3395_p2 = scmp.lt.s32.totalorder %s31_s26, %s31_s26 }
  0x29   :  { %p3391_p1 = scmp.ne.s32.totalorder %s31_s26, %s3390_s29  ;;  %p3396_p3 = scmp.lt.s32.totalorder %s3390_s29, %s3390_s29 }
  0x2b   :  { %p3397_p4 = por %p3396_p3, %p3395_p2 }
  0x2d   :  { %p3398_p5 = pnand %p3397_p4, %p3391_p1 }
  0x2f   :  { %3401 = shalt.err (!%p3398_p5)
}
  0x30   :  { %36 = dma.hbm_to_vmem [thread:$0]  %s4036_s0, 2048, %s31_s26, [#allocation3], %s3536_s30, %s3536_s30, %s3537_s14  }
  0x31   :  { %s3410_s7 = scalar_lea.vmem %s55_s28, 128  ;;  %p3415_p7 = scmp.lt.s32.totalorder %s55_s28, %s55_s28 }
  0x32   :  { %p3411_p6 = scmp.ne.s32.totalorder %s55_s28, %s3410_s7  ;;  %p3416_p8 = scmp.lt.s32.totalorder %s3410_s7, %s3410_s7 }
  0x34   :  { %p3417_p9 = por %p3416_p8, %p3415_p7 }
  0x36   :  { %p3418_p10 = pnand %p3417_p9, %p3411_p6 }
  0x38   :  { %3421 = shalt.err (!%p3418_p10)
}
  0x39   :  { %60 = dma.hbm_to_vmem [thread:$0]  %s4038_s2, 128, %s55_s28, [#allocation6], %s3536_s30, %s3536_s30, %s3537_s14  }
  0x3a   :  { %s3543_s19 = smov [#allocation10]   ;;  %s3544_s21 = smov [#allocation13]  }
  0x3b   :  { %s78_s20 = sshll.u32 %s3543_s19, 4  ;;  %s106_s0 = sshll.u32 %s3544_s21, 4  ;;  %s79_s20 = int_to_ptr.vmem [resolvable:$true] %s78_s20  ;;  %s107_s0 = int_to_ptr.vmem [resolvable:$true] %s106_s0 }
  0x3c   :  { %s3430_s22 = scalar_lea.vmem %s79_s20, 1024  ;;  %p3435_p12 = scmp.lt.s32.totalorder %s79_s20, %s79_s20 }
  0x3d   :  { %p3431_p11 = scmp.ne.s32.totalorder %s79_s20, %s3430_s22  ;;  %p3436_p13 = scmp.lt.s32.totalorder %s3430_s22, %s3430_s22 }
  0x3f   :  { %p3437_p0 = por %p3436_p13, %p3435_p12 }
  0x41   :  { %p3438_p1 = pnand %p3437_p0, %p3431_p11 }
  0x43   :  { %3441 = shalt.err (!%p3438_p1)
}
  0x44   :  { %84 = dma.hbm_to_vmem [thread:$0]  %s4040_s4, 1024, %s79_s20, [#allocation9], %s3536_s30, %s3536_s30, %s3537_s14  }
  0x45   :  { %s3450_s2 = scalar_lea.vmem %s107_s0, 3072  ;;  %p3455_p3 = scmp.lt.s32.totalorder %s107_s0, %s107_s0 }
  0x46   :  { %p3451_p2 = scmp.ne.s32.totalorder %s107_s0, %s3450_s2  ;;  %p3456_p4 = scmp.lt.s32.totalorder %s3450_s2, %s3450_s2 }
  0x48   :  { %p3457_p5 = por %p3456_p4, %p3455_p3 }
  0x4a   :  { %p3458_p6 = pnand %p3457_p5, %p3451_p2 }
  0x4c   :  { %3461 = shalt.err (!%p3458_p6)
}
  0x4d   :  { %112 = dma.hbm_to_vmem [thread:$0]  %s4044_s8, 3072, %s107_s0, [#allocation12], %s3539_s1, %s3539_s1, %s3540_s23  }
  0x4e   :  { %3522 = dma.done.wait [#allocation3], 2048  }
  0x4f   :  { %3523 = vsyncadd [#allocation3], 4294965248 }
  0x50   :  { %3524 = dma.done.wait [#allocation6], 256  }
  0x51   :  { %3525 = vsyncadd [#allocation6], 4294967040 }
  0x52   :  { %3526 = dma.done.wait [#allocation9], 2048  }
  0x53   :  { %3527 = vsyncadd [#allocation9], 4294965248 }
  0x54   :  { %3528 = dma.done.wait [#allocation12], 6144  }
  0x55   :  { %3529 = vsyncadd [#allocation12], 4294961152  ;;  %v3545_v0 = vmov 0.0   ;;  %vm3546_vm0 = vmmov 0   ;;  %v3132_v1 = vld [vmem:[#allocation8 + $0x38] sm:$0xff]   ;;  %v3134_v3 = vld [vmem:[#allocation8 + $0x30] sm:$0xff]   ;;  %v618_v36 = vlaneseq }
  0x56   :  { %2956 = vmatprep.subr.bf16.mxu1 %v3545_v0  ;;  %2972 = vmatprep.mubr.msk.bf16.mxu1 %vm3546_vm0, %v3545_v0  ;;  %v3133_v2 = vld [vmem:[#allocation10 + $0x38] sm:$0xff]   ;;  %v3135_v4 = vld [vmem:[#allocation10 + $0x30] sm:$0xff]   ;;  %v3136_v5 = vld [vmem:[#allocation8 + $0x28] sm:$0xff]   ;;  %v3547_v34 = vmov 1966171168   ;;  %vm1003_vm1 = vcmask 130112  }
  0x57   :  { %2908 = vmatprep.subr.bf16.mxu0 %v3132_v1  ;;  %2957 = vmatpush3.bf16.msra.mxu1 %v3133_v2  ;;  %v3137_v6 = vld [vmem:[#allocation10 + $0x28] sm:$0xff]   ;;  %v3138_v7 = vld [vmem:[#allocation8 + $0x20] sm:$0xff]   ;;  %v3140_v9 = vld [vmem:[#allocation8 + $0x18] sm:$0xff]   ;;  %v616_v35 = vunpack.c.l.s4 %v3547_v34  ;;  %v3727_v38 = vshrl.u32 %v618_v36, 7  ;;  %vm1140_vm2 = vcmask 1041409   ;;  %vm1142_vm3 = vcmask 1042434  }
  0x58   :  { %2909 = vmatpush3.bf16.msra.mxu0 %v3132_v1  ;;  %2958 = vmatprep.subr.bf16.mxu1 %v3545_v0  ;;  %v3139_v8 = vld [vmem:[#allocation10 + $0x20] sm:$0xff]   ;;  %v3141_v10 = vld [vmem:[#allocation10 + $0x18] sm:$0xff]   ;;  %v3142_v11 = vld [vmem:[#allocation8 + $0x10] sm:$0xff]   ;;  %vm1144_vm4 = vcmask 1043459   ;;  %vm1146_vm5 = vcmask 1044484   ;;  %vm1148_vm6 = vcmask 1045509  }
  0x59   :  { %2910 = vmatprep.subr.bf16.mxu0 %v3134_v3  ;;  %v3148_v12 = vld [vmem:[#allocation2] sm:$0xff]   ;;  %v3144_v14 = vld [vmem:[#allocation8 + $0x8] sm:$0xff]   ;;  %v3146_v16 = vld [vmem:[#allocation8] sm:$0xff]   ;;  %v617_v37 = vunpack.c.0.s8 %v616_v35  ;;  %v3737_v48 = vsub.s32 0, %v3727_v38  ;;  %vm1150_vm7 = vcmask 1046534   ;;  %vm1152_vm8 = vcmask 1047559  }
  0x5a   :  { %2924 = vmatprep.mubr.bf16.mxu0 %v3148_v12  ;;  %v3143_v13 = vld [vmem:[#allocation10 + $0x10] sm:$0xff]   ;;  %v3145_v15 = vld [vmem:[#allocation10 + $0x8] sm:$0xff]   ;;  %v3147_v17 = vld [vmem:[#allocation10] sm:$0xff]   ;;  %vm1165_vm10 = vcmask 130048   ;;  %s3550_s29 = smov [#allocation15]   ;;  %s3551_s16 = smov [#allocation17]  }
  0x5b   :  { %2959 = vmatpush3.bf16.msra.mxu1 %v3135_v4  ;;  %v3149_v18 = vld [vmem:[#allocation5] sm:$0xff]   ;;  %v3676_v19 = vld [vmem:[#allocation2 + $0x8] sm:$0xff]   ;;  %v3678_v20 = vld [vmem:[#allocation2 + $0x10] sm:$0xff]   ;;  %v3733_v40 = vsub.s32 %v617_v37, %v3727_v38  ;;  %s2677_s15 = sshll.u32 %s3550_s29, 4  ;;  %s2689_s7 = sshll.u32 %s3551_s16, 4  ;;  %s2678_s15 = int_to_ptr.vmem [resolvable:$true] %s2677_s15  ;;  %s4017_s7 = int_to_ptr.vmem [resolvable:$true] %s2689_s7 }
  0x5c   :  { %2911 = vmatpush3.bf16.msra.mxu0 %v3134_v3  ;;  %2960 = vmatprep.subr.bf16.mxu1 %v3545_v0  ;;  %v3156_v21 = vld [vmem:[#allocation2 + $0x38] sm:$0xff]   ;;  %v3688_v23 = vld [vmem:[#allocation2 + $0x20] sm:$0xff]   ;;  %v3694_v24 = vld [vmem:[#allocation2 + $0x28] sm:$0xff]  }
  0x5d   :  { %2912 = vmatprep.subr.bf16.mxu0 %v3136_v5  ;;  %v3684_v22 = vld [vmem:[#allocation2 + $0x18] sm:$0xff]   ;;  %v3696_v25 = vld [vmem:[#allocation2 + $0x30] sm:$0xff]   ;;  %v3700_v26 = vld [vmem:[#allocation2 + $0x40] sm:$0xff]  }
  0x5e   :  { %v3703_v27 = vld [vmem:[#allocation2 + $0x48] sm:$0xff]   ;;  %v3705_v28 = vld [vmem:[#allocation2 + $0x50] sm:$0xff]   ;;  %v3709_v29 = vld [vmem:[#allocation2 + $0x58] sm:$0xff]  }
  0x5f   :  { %2961 = vmatpush3.bf16.msra.mxu1 %v3137_v6  ;;  %v3711_v30 = vld [vmem:[#allocation2 + $0x60] sm:$0xff]   ;;  %v3715_v31 = vld [vmem:[#allocation2 + $0x68] sm:$0xff]   ;;  %v3717_v32 = vld [vmem:[#allocation2 + $0x70] sm:$0xff]  }
  0x60   :  { %2913 = vmatpush3.bf16.msra.mxu0 %v3136_v5  ;;  %2962 = vmatprep.subr.bf16.mxu1 %v3545_v0  ;;  %v3721_v33 = vld [vmem:[#allocation2 + $0x78] sm:$0xff]   ;;  %v2735_v39 = vld [vmem:[%s4041_s5] ss:$0 sm:$0xff] }
  0x61   :  { %2914 = vmatprep.subr.bf16.mxu0 %v3138_v7 }
  0x63   :  { %2963 = vmatpush3.bf16.msra.mxu1 %v3139_v8 }
  0x64   :  { %2915 = vmatpush3.bf16.msra.mxu0 %v3138_v7  ;;  %2964 = vmatprep.subr.bf16.mxu1 %v3545_v0 }
  0x65   :  { %2916 = vmatprep.subr.bf16.mxu0 %v3140_v9 }
  0x67   :  { %2965 = vmatpush3.bf16.msra.mxu1 %v3141_v10 }
  0x68   :  { %2917 = vmatpush3.bf16.msra.mxu0 %v3140_v9  ;;  %2966 = vmatprep.subr.bf16.mxu1 %v3545_v0 }
  0x69   :  { %2918 = vmatprep.subr.bf16.mxu0 %v3142_v11 }
  0x6b   :  { %2967 = vmatpush3.bf16.msra.mxu1 %v3143_v13 }
  0x6c   :  { %2919 = vmatpush3.bf16.msra.mxu0 %v3142_v11  ;;  %2968 = vmatprep.subr.bf16.mxu1 %v3545_v0 }
  0x6d   :  { %2920 = vmatprep.subr.bf16.mxu0 %v3144_v14 }
  0x6f   :  { %2969 = vmatpush3.bf16.msra.mxu1 %v3145_v15 }
  0x70   :  { %2921 = vmatpush3.bf16.msra.mxu0 %v3144_v14  ;;  %2970 = vmatprep.subr.bf16.mxu1 %v3545_v0 }
  0x71   :  { %2922 = vmatprep.subr.bf16.mxu0 %v3146_v16 }
  0x73   :  { %2971 = vmatpush3.bf16.msra.mxu1 %v3147_v17 }
  0x74   :  { %2923 = vmatpush3.bf16.msra.mxu0 %v3146_v16  ;;  %2976 = vmatprep.subr.bf16.mxu1 %v3545_v0 }
  0x75   :  { %3018 = vmatprep.subr.bf16.mxu0 %v3545_v0 }
  0x76   :  { %2973 = vmatmul.mubr.bf16.vlgmr.msra.gmra.mxu1 %v3149_v18 }
  0x77   :  { %2925 = vmatmul.mubr.bf16.vlgmr.msra.gmra.mxu0 %v3676_v19  ;;  %2977 = vmatpush3.bf16.msra.mxu1 %v3148_v12 }
  0x78   :  { %2928 = vmatprep.mubr.bf16.mxu0 %v3678_v20  ;;  %3019 = vmatpush3.bf16.msra.mxu0 %v3156_v21 }
  0x79   :  { %2978 = vmatprep.mubr.msk.bf16.mxu1 %vm3546_vm0, %v3545_v0  ;;  %2982 = vmatprep.subr.bf16.mxu1 %v3545_v0 }
  0x7a   :  { %3030 = vmatprep.subr.bf16.mxu0 %v3545_v0 }
  0x7f   :  { %2929 = vmatmul.mubr.bf16.gmra.mxu0 %v3684_v22 }
  0x80   :  { %2932 = vmatprep.mubr.bf16.mxu0 %v3688_v23 }
  0x87   :  { %2933 = vmatmul.mubr.bf16.gmra.mxu0 %v3694_v24 }
  0x88   :  { %2936 = vmatprep.mubr.bf16.mxu0 %v3696_v25 }
  0x8f   :  { %2937 = vmatmul.mubr.bf16.gmra.mxu0 %v3156_v21 }
  0x90   :  { %2940 = vmatprep.mubr.bf16.mxu0 %v3700_v26 }
  0x97   :  { %2941 = vmatmul.mubr.bf16.gmra.mxu0 %v3703_v27 }
  0x98   :  { %2944 = vmatprep.mubr.bf16.mxu0 %v3705_v28 }
  0x9f   :  { %2945 = vmatmul.mubr.bf16.gmra.mxu0 %v3709_v29 }
  0xa0   :  { %2948 = vmatprep.mubr.bf16.mxu0 %v3711_v30 }
  0xa7   :  { %2949 = vmatmul.mubr.bf16.gmra.mxu0 %v3715_v31 }
  0xa8   :  { %2952 = vmatprep.mubr.bf16.mxu0 %v3717_v32 }
  0xaf   :  { %2953 = vmatmul.mubr.bf16.gmra.mxu0 %v3721_v33 }
  0xb0   :  { %3020 = vmatprep.mubr.msk.bf16.mxu0 %vm3546_vm0, %v3545_v0 }
 0x136   :  { %v605_v41 = vpop.f32.mrf.mxu1 }
 0x137   :  { %v2926_v42 = vpop.f32.mrf.mxu0  ;;  %v606_v43 = vadd.f32 %v2735_v39, %v605_v41  ;;  %v3756_v41 = vld [vmem:[%s4042_s6] ss:$0 sm:$0xff] }
 0x138   :  { %v2974_v44 = vpop.f32.mrf.mxu1 }
 0x139   :  { %v365_v45 = vpop.f32.mrf.mxu0  ;;  %v614_v46 = vcombine.high %v606_v43, %v606_v43  ;;  %v621_v47 = vrot.slane %v606_v43, %v3733_v40 }
 0x13a   :  { %v608_v49 = vpop.f32.mrf.mxu1 }
 0x13b   :  { %v2927_v50 = vpop.f32.mrf.mxu0  ;;  %v629_v51 = vcombine.high %v621_v47, %v621_v47  ;;  %v637_v52 = vrot.slane %v621_v47, %v3733_v40  ;;  %v628_v55 = vrot.slane %v614_v46, %v3733_v40  ;;  %v3747_v14 = vadd.f32 %v2735_v39, %v608_v49 }
 0x13c   :  { %v2975_v53 = vpop.f32.mrf.mxu1 }
 0x13d   :  { %v368_v54 = vpop.f32.mrf.mxu0  ;;  %v651_v56 = vrot.slane %v629_v51, %v3733_v40  ;;  %v715_v57 = vrot.slane %v637_v52, %v3737_v48  ;;  %v659_v59 = vcombine.high %v637_v52, %v637_v52  ;;  %v630_v5 = vcombine.high %v628_v55, %v628_v55 }
 0x13e   :  { %v644_v18 = vrot.slane %v628_v55, %v3733_v40  ;;  %v670_v35 = vrot.slane %v3747_v14, %v3733_v40 }
 0x13f   :  { %v2930_v58 = vpop.f32.mrf.mxu0  ;;  %v719_v60 = vrot.slane %v651_v56, %v3737_v48  ;;  %v792_v61 = vadd.f32 %v715_v57, %v365_v45  ;;  %v793_v62 = vadd.f32 %v715_v57, %v368_v54  ;;  %v661_v63 = vcombine.high %v651_v56, %v651_v56 }
 0x140   :  { %v723_v2 = vrot.slane %v659_v59, %v3737_v48  ;;  %v658_v11 = vrot.slane %v630_v5, %v3733_v40  ;;  %v731_v39 = vrot.slane %v644_v18, %v3737_v48  ;;  %v660_v43 = vcombine.high %v644_v18, %v644_v18 }
 0x141   :  { %v381_v1 = vpop.f32.mrf.mxu0  ;;  %v794_v3 = vadd.f32 %v2926_v42, %v719_v60  ;;  %3230 = vtanh.f32 %v792_v61  ;;  %v795_v4 = vadd.f32 %v2927_v50, %v719_v60  ;;  %v727_v6 = vrot.slane %v661_v63, %v3737_v48 }
 0x142   :  { %3232 = vtanh.f32 %v793_v62  ;;  %v796_v8 = vadd.f32 %v723_v2, %v381_v1  ;;  %v735_v17 = vrot.slane %v658_v11, %v3737_v48  ;;  %v678_v51 = vcombine.high %v670_v35, %v670_v35 }
 0x143   :  { %v2931_v7 = vpop.f32.mrf.mxu0  ;;  %3234 = vtanh.f32 %v794_v3  ;;  %v798_v13 = vadd.f32 %v2930_v58, %v727_v6  ;;  %v662_v52 = vcombine.high %v658_v11, %v658_v11  ;;  %v739_v55 = vrot.slane %v660_v43, %v3737_v48 }
 0x144   :  { %3236 = vtanh.f32 %v795_v4  ;;  %v799_v10 = vadd.f32 %v2931_v7, %v727_v6  ;;  %v700_v63 = vrot.slane %v678_v51, %v3733_v40  ;;  %v686_v11 = vrot.slane %v670_v35, %v3733_v40 }
 0x145   :  { %v384_v9 = vpop.f32.mrf.mxu0  ;;  %3238 = vtanh.f32 %v796_v8  ;;  %v743_v1 = vrot.slane %v662_v52, %v3737_v48 }
 0x146   :  { %3240 = vtanh.f32 %v799_v10  ;;  %v797_v16 = vadd.f32 %v723_v2, %v384_v9  ;;  %v663_v9 = vcombine.high %v3747_v14, %v3747_v14  ;;  %v710_v43 = vcombine.high %v700_v63, %v700_v63 }
 0x147   :  { %v2934_v12 = vpop.f32.mrf.mxu0  ;;  %3242 = vtanh.f32 %v798_v13  ;;  %v751_v13 = vrot.slane %v700_v63, %v3737_v48  ;;  %v708_v51 = vcombine.high %v686_v11, %v686_v11 }
 0x148   :  { %v802_v34 = vadd.f32 %v2934_v12, %v735_v17  ;;  %3244 = vtanh.f32 %v797_v16  ;;  %v677_v14 = vrot.slane %v663_v9, %v3733_v40 }
 0x149   :  { %v397_v15 = vpop.f32.mrf.mxu0 }
 0x14a   :  { %3246 = vtanh.f32 %v802_v34  ;;  %v800_v47 = vadd.f32 %v731_v39, %v397_v15  ;;  %v679_v52 = vcombine.high %v677_v14, %v677_v14  ;;  %v693_v9 = vrot.slane %v677_v14, %v3733_v40 }
 0x14b   :  { %v2935_v21 = vpop.f32.mrf.mxu0 }
 0x14c   :  { %v803_v42 = vadd.f32 %v2935_v21, %v735_v17 }
 0x14d   :  { %v400_v37 = vpop.f32.mrf.mxu0 }
 0x14e   :  { %v3231_v44 = vpop.eup %3230  ;;  %3248 = vtanh.f32 %v803_v42  ;;  %v801_v54 = vadd.f32 %v731_v39, %v400_v37  ;;  %v747_v37 = vrot.slane %v686_v11, %v3737_v48 }
 0x14f   :  { %v2938_v45 = vpop.f32.mrf.mxu0  ;;  %v3233_v46 = vpop.eup %3232  ;;  %v863_v49 = vmul.f32 %v3231_v44, %v3756_v41  ;;  %3250 = vtanh.f32 %v800_v47 }
 0x150   :  { %v3235_v50 = vpop.eup %3234  ;;  %v864_v60 = vmul.f32 %v3233_v46, %v3756_v41  ;;  %3252 = vtanh.f32 %v801_v54  ;;  %v806_v6 = vadd.f32 %v2938_v45, %v743_v1  ;;  %v759_v54 = vrot.slane %v710_v43, %v3737_v48 }
 0x151   :  { %v413_v53 = vpop.f32.mrf.mxu0  ;;  %895 = vadd.xlane.f32.xlu0 %v863_v49  ;;  %v865_v56 = vmul.f32 %v3235_v50, %v3756_v41  ;;  %v3237_v57 = vpop.eup %3236 }
 0x152   :  { %v804_v59 = vadd.f32 %v739_v55, %v413_v53  ;;  %v3239_v61 = vpop.eup %3238  ;;  %v866_v3 = vmul.f32 %v3237_v57, %v3756_v41 }
 0x153   :  { %v2939_v58 = vpop.f32.mrf.mxu0  ;;  %899 = vadd.xlane.f32.xlu1 %v865_v56  ;;  %v3241_v4 = vpop.eup %3240  ;;  %v867_v7 = vmul.f32 %v3239_v61, %v3756_v41  ;;  %v755_v61 = vrot.slane %v708_v51, %v3737_v48 }
 0x154   :  { %3254 = vtanh.f32 %v804_v59  ;;  %v3243_v8 = vpop.eup %3242  ;;  %v807_v12 = vadd.f32 %v2939_v58, %v743_v1  ;;  %v870_v15 = vmul.f32 %v3241_v4, %v3756_v41 }
 0x155   :  { %v416_v62 = vpop.f32.mrf.mxu0  ;;  %897 = vadd.xlane.f32.xlu0 %v864_v60  ;;  %v3245_v16 = vpop.eup %3244  ;;  %v869_v21 = vmul.f32 %v3243_v8, %v3756_v41 }
 0x156   :  { %v805_v2 = vadd.f32 %v739_v55, %v416_v62  ;;  %v868_v42 = vmul.f32 %v3245_v16, %v3756_v41 }
 0x157   :  { %v2942_v5 = vpop.f32.mrf.mxu0  ;;  %901 = vadd.xlane.f32.xlu1 %v866_v3  ;;  %v3247_v34 = vpop.eup %3246 }
 0x158   :  { %3256 = vtanh.f32 %v805_v2  ;;  %v810_v18 = vadd.f32 %v2942_v5, %v751_v13  ;;  %v873_v47 = vmul.f32 %v3247_v34, %v3756_v41  ;;  %v707_v2 = vrot.slane %v679_v52, %v3733_v40 }
 0x159   :  { %v429_v10 = vpop.f32.mrf.mxu0  ;;  %903 = vadd.xlane.f32.xlu0 %v867_v7  ;;  %3258 = vtanh.f32 %v806_v6 }
 0x15a   :  { %3260 = vtanh.f32 %v807_v12  ;;  %v808_v46 = vadd.f32 %v747_v37, %v429_v10  ;;  %v767_v11 = vrot.slane %v707_v2, %v3737_v48 }
 0x15b   :  { %v2943_v17 = vpop.f32.mrf.mxu0  ;;  %909 = vadd.xlane.f32.xlu1 %v870_v15  ;;  %v3249_v44 = vpop.eup %3248  ;;  %3262 = vtanh.f32 %v810_v18 }
 0x15c   :  { %v811_v39 = vadd.f32 %v2943_v17, %v751_v13  ;;  %v3251_v49 = vpop.eup %3250  ;;  %v874_v55 = vmul.f32 %v3249_v44, %v3756_v41 }
 0x15d   :  { %v432_v35 = vpop.f32.mrf.mxu0  ;;  %907 = vadd.xlane.f32.xlu0 %v869_v21  ;;  %v3253_v56 = vpop.eup %3252  ;;  %v871_v59 = vmul.f32 %v3251_v49, %v3756_v41  ;;  %v763_v21 = vrot.slane %v693_v9, %v3737_v48 }
 0x15e   :  { %3264 = vtanh.f32 %v811_v39  ;;  %v809_v53 = vadd.f32 %v747_v37, %v432_v35  ;;  %v872_v1 = vmul.f32 %v3253_v56, %v3756_v41  ;;  %v709_v35 = vcombine.high %v693_v9, %v693_v9 }
 0x15f   :  { %v2946_v45 = vpop.f32.mrf.mxu0  ;;  %905 = vadd.xlane.f32.xlu1 %v868_v42  ;;  %3266 = vtanh.f32 %v808_v46  ;;  %v711_v46 = vcombine.high %v707_v2, %v707_v2 }
 0x160   :  { %v814_v58 = vadd.f32 %v2946_v45, %v759_v54  ;;  %3268 = vtanh.f32 %v809_v53 }
 0x161   :  { %v445_v50 = vpop.f32.mrf.mxu0  ;;  %915 = vadd.xlane.f32.xlu0 %v873_v47  ;;  %v3255_v60 = vpop.eup %3254 }
 0x162   :  { %3270 = vtanh.f32 %v814_v58  ;;  %v812_v5 = vadd.f32 %v755_v61, %v445_v50  ;;  %v875_v6 = vmul.f32 %v3255_v60, %v3756_v41  ;;  %v771_v50 = vrot.slane %v709_v35, %v3737_v48 }
 0x163   :  { %v2947_v57 = vpop.f32.mrf.mxu0  ;;  %917 = vadd.xlane.f32.xlu1 %v874_v55  ;;  %v775_v58 = vrot.slane %v711_v46, %v3737_v48  ;;  %v3809_v46 = vand.u32 127, %v618_v36 }
 0x164   :  { %v815_v63 = vadd.f32 %v2947_v57, %v759_v54 }
 0x165   :  { %v448_v62 = vpop.f32.mrf.mxu0  ;;  %911 = vadd.xlane.f32.xlu0 %v871_v59  ;;  %v3257_v3 = vpop.eup %3256  ;;  %vm961_vm9 = vcmp.lt.s32.totalorder %v3809_v46, 8 }
 0x166   :  { %v3259_v7 = vpop.eup %3258  ;;  %3272 = vtanh.f32 %v815_v63  ;;  %v813_v10 = vadd.f32 %v755_v61, %v448_v62  ;;  %v876_v12 = vmul.f32 %v3257_v3, %v3756_v41 }
 0x167   :  { %v2950_v4 = vpop.f32.mrf.mxu0  ;;  %913 = vadd.xlane.f32.xlu1 %v872_v1  ;;  %v3261_v13 = vpop.eup %3260  ;;  %3274 = vtanh.f32 %v812_v5  ;;  %v877_v17 = vmul.f32 %v3259_v7, %v3756_v41 }
 0x168   :  { %v818_v16 = vadd.f32 %v2950_v4, %v767_v11  ;;  %v3263_v18 = vpop.eup %3262  ;;  %3276 = vtanh.f32 %v813_v10  ;;  %v878_v37 = vmul.f32 %v3261_v13, %v3756_v41 }
 0x169   :  { %v461_v8 = vpop.f32.mrf.mxu0  ;;  %919 = vadd.xlane.f32.xlu0 %v875_v6  ;;  %v881_v44 = vmul.f32 %v3263_v18, %v3756_v41 }
 0x16a   :  { %3278 = vtanh.f32 %v818_v16  ;;  %v816_v43 = vadd.f32 %v763_v21, %v461_v8 }
 0x16b   :  { %v2951_v15 = vpop.f32.mrf.mxu0  ;;  %921 = vadd.xlane.f32.xlu1 %v876_v12  ;;  %v3265_v39 = vpop.eup %3264 }
 0x16c   :  { %v819_v14 = vadd.f32 %v2951_v15, %v767_v11  ;;  %v3267_v45 = vpop.eup %3266  ;;  %v882_v51 = vmul.f32 %v3265_v39, %v3756_v41 }
 0x16d   :  { %v464_v34 = vpop.f32.mrf.mxu0  ;;  %923 = vadd.xlane.f32.xlu0 %v877_v17  ;;  %v3269_v52 = vpop.eup %3268  ;;  %v879_v55 = vmul.f32 %v3267_v45, %v3756_v41 }
 0x16e   :  { %3280 = vtanh.f32 %v819_v14  ;;  %v817_v49 = vadd.f32 %v763_v21, %v464_v34  ;;  %v880_v60 = vmul.f32 %v3269_v52, %v3756_v41 }
 0x16f   :  { %v2954_v42 = vpop.f32.mrf.mxu0  ;;  %925 = vadd.xlane.f32.xlu1 %v878_v37  ;;  %3282 = vtanh.f32 %v816_v43  ;;  %v3271_v56 = vpop.eup %3270 }
 0x170   :  { %3284 = vtanh.f32 %v817_v49  ;;  %v822_v62 = vadd.f32 %v2954_v42, %v775_v58  ;;  %v885_v63 = vmul.f32 %v3271_v56, %v3756_v41  ;;  %v998_v49 = vadd.s32 4294967288, %v3809_v46 }
 0x171   :  { %v477_v47 = vpop.f32.mrf.mxu0  ;;  %931 = vadd.xlane.f32.xlu0 %v881_v44 }
 0x172   :  { %v820_v54 = vadd.f32 %v771_v50, %v477_v47  ;;  %v3813_v52 = vsub.s32 %v998_v49, %v3727_v38 }
 0x173   :  { %v2955_v53 = vpop.f32.mrf.mxu0  ;;  %933 = vadd.xlane.f32.xlu1 %v882_v51  ;;  %v3273_v61 = vpop.eup %3272 }
 0x174   :  { %3286 = vtanh.f32 %v820_v54  ;;  %v3275_v1 = vpop.eup %3274  ;;  %v823_v2 = vadd.f32 %v2955_v53, %v775_v58  ;;  %v886_v3 = vmul.f32 %v3273_v61, %v3756_v41 }
 0x175   :  { %v480_v57 = vpop.f32.mrf.mxu0  ;;  %927 = vadd.xlane.f32.xlu0 %v879_v55  ;;  %v3277_v4 = vpop.eup %3276  ;;  %v883_v5 = vmul.f32 %v3275_v1, %v3756_v41 }
 0x176   :  { %v821_v59 = vadd.f32 %v771_v50, %v480_v57  ;;  %v884_v7 = vmul.f32 %v3277_v4, %v3756_v41 }
 0x177   :  { %929 = vadd.xlane.f32.xlu1 %v880_v60  ;;  %v3279_v6 = vpop.eup %3278 }
 0x178   :  { %3288 = vtanh.f32 %v821_v59  ;;  %v889_v9 = vmul.f32 %v3279_v6, %v3756_v41 }
 0x179   :  { %939 = vadd.xlane.f32.xlu0 %v885_v63  ;;  %3290 = vtanh.f32 %v822_v62 }
 0x17a   :  { %3292 = vtanh.f32 %v823_v2 }
 0x17b   :  { %941 = vadd.xlane.f32.xlu1 %v886_v3  ;;  %v3281_v8 = vpop.eup %3280 }
 0x17c   :  { %v3283_v10 = vpop.eup %3282  ;;  %v890_v11 = vmul.f32 %v3281_v8, %v3756_v41 }
 0x17d   :  { %935 = vadd.xlane.f32.xlu0 %v883_v5  ;;  %v3285_v12 = vpop.eup %3284  ;;  %v887_v13 = vmul.f32 %v3283_v10, %v3756_v41 }
 0x17e   :  { %v888_v16 = vmul.f32 %v3285_v12, %v3756_v41 }
 0x17f   :  { %937 = vadd.xlane.f32.xlu1 %v884_v7 }
 0x181   :  { %947 = vadd.xlane.f32.xlu0 %v889_v9  ;;  %v3287_v15 = vpop.eup %3286 }
 0x182   :  { %v891_v18 = vmul.f32 %v3287_v15, %v3756_v41 }
 0x183   :  { %949 = vadd.xlane.f32.xlu1 %v890_v11 }
 0x185   :  { %943 = vadd.xlane.f32.xlu0 %v887_v13  ;;  %v3289_v17 = vpop.eup %3288 }
 0x186   :  { %v3291_v21 = vpop.eup %3290  ;;  %v892_v34 = vmul.f32 %v3289_v17, %v3756_v41 }
 0x187   :  { %945 = vadd.xlane.f32.xlu1 %v888_v16  ;;  %v3293_v14 = vpop.eup %3292  ;;  %v893_v37 = vmul.f32 %v3291_v21, %v3756_v41 }
 0x188   :  { %v894_v35 = vmul.f32 %v3293_v14, %v3756_v41  ;;  %v3817_v41 = vsub.s32 %v3809_v46, %v3727_v38 }
 0x189   :  { %951 = vadd.xlane.f32.xlu0 %v891_v18 }
 0x18b   :  { %953 = vadd.xlane.f32.xlu1 %v892_v34 }
 0x18d   :  { %955 = vadd.xlane.f32.xlu0 %v893_v37 }
 0x18f   :  { %957 = vadd.xlane.f32.xlu1 %v894_v35 }
 0x1da   :  { %v896_v39 = vpop.xlane.xlu0 %895 }
 0x1db   :  { %v997_v60 = vrot.slane %v896_v39, %v3817_v41 }
 0x1dc   :  { %v900_v42 = vpop.xlane.xlu1 %899 }
 0x1dd   :  { %v1008_v36 = vrot.slane %v900_v42, %v3817_v41 }
 0x1de   :  { %v898_v43 = vpop.xlane.xlu0 %897 }
 0x1df   :  { %v1002_v57 = vrot.slane %v898_v43, %v3813_v52 }
 0x1e0   :  { %v902_v44 = vpop.xlane.xlu1 %901 }
 0x1e1   :  { %v1012_v54 = vrot.slane %v902_v44, %v3813_v52  ;;  %v1004_v1 = vsel %vm1003_vm1, %v1002_v57, %v997_v60 }
 0x1e2   :  { %v904_v45 = vpop.xlane.xlu0 %903 }
 0x1e3   :  { %v1017_v58 = vrot.slane %v904_v45, %v3817_v41  ;;  %v1013_v61 = vsel %vm1003_vm1, %v1012_v54, %v1008_v36 }
 0x1e4   :  { %v910_v47 = vpop.xlane.xlu1 %909  ;;  %v1141_v4 = vsel %vm1140_vm2, %v1013_v61, %v1004_v1 }
 0x1e5   :  { %v1030_v7 = vrot.slane %v910_v47, %v3813_v52 }
 0x1e6   :  { %v908_v50 = vpop.xlane.xlu0 %907 }
 0x1e7   :  { %v1026_v2 = vrot.slane %v908_v50, %v3817_v41 }
 0x1e8   :  { %v906_v51 = vpop.xlane.xlu1 %905 }
 0x1e9   :  { %v1021_v55 = vrot.slane %v906_v51, %v3813_v52  ;;  %v1031_v11 = vsel %vm1003_vm1, %v1030_v7, %v1026_v2 }
 0x1ea   :  { %v916_v53 = vpop.xlane.xlu0 %915 }
 0x1eb   :  { %v1022_v62 = vsel %vm1003_vm1, %v1021_v55, %v1017_v58  ;;  %v1044_v18 = vrot.slane %v916_v53, %v3817_v41 }
 0x1ec   :  { %v918_v56 = vpop.xlane.xlu1 %917  ;;  %v1143_v8 = vsel %vm1142_vm3, %v1022_v62, %v1141_v4 }
 0x1ed   :  { %v1048_v12 = vrot.slane %v918_v56, %v3813_v52  ;;  %v1145_v15 = vsel %vm1144_vm4, %v1031_v11, %v1143_v8 }
 0x1ee   :  { %v912_v59 = vpop.xlane.xlu0 %911 }
 0x1ef   :  { %v1035_v5 = vrot.slane %v912_v59, %v3817_v41  ;;  %v1049_v37 = vsel %vm1003_vm1, %v1048_v12, %v1044_v18 }
 0x1f0   :  { %v914_v63 = vpop.xlane.xlu1 %913 }
 0x1f1   :  { %v1039_v3 = vrot.slane %v914_v63, %v3813_v52 }
 0x1f2   :  { %v920_v6 = vpop.xlane.xlu0 %919 }
 0x1f3   :  { %v1040_v9 = vsel %vm1003_vm1, %v1039_v3, %v1035_v5  ;;  %v1053_v16 = vrot.slane %v920_v6, %v3817_v41 }
 0x1f4   :  { %v922_v10 = vpop.xlane.xlu1 %921  ;;  %v1147_v21 = vsel %vm1146_vm5, %v1040_v9, %v1145_v15 }
 0x1f5   :  { %v1057_v13 = vrot.slane %v922_v10, %v3813_v52  ;;  %v1149_v43 = vsel %vm1148_vm6, %v1049_v37, %v1147_v21 }
 0x1f6   :  { %v924_v17 = vpop.xlane.xlu0 %923 }
 0x1f7   :  { %v1058_v34 = vsel %vm1003_vm1, %v1057_v13, %v1053_v16  ;;  %v1062_v35 = vrot.slane %v924_v17, %v3817_v41 }
 0x1f8   :  { %v926_v14 = vpop.xlane.xlu1 %925  ;;  %v1151_v45 = vsel %vm1150_vm7, %v1058_v34, %v1149_v43 }
 0x1f9   :  { %v1066_v39 = vrot.slane %v926_v14, %v3813_v52 }
 0x1fa   :  { %v932_v42 = vpop.xlane.xlu0 %931 }
 0x1fb   :  { %v1067_v44 = vsel %vm1003_vm1, %v1066_v39, %v1062_v35  ;;  %v1080_v3 = vrot.slane %v932_v42, %v3817_v41 }
 0x1fc   :  { %v934_v47 = vpop.xlane.xlu1 %933  ;;  %v1153_v49 = vsel %vm1152_vm8, %v1067_v44, %v1151_v45 }
 0x1fd   :  { %v1163_v50 = vsel %vm961_vm9, %v1153_v49, -inf  ;;  %v1084_v62 = vrot.slane %v934_v47, %v3813_v52 }
 0x1fe   :  { %v928_v51 = vpop.xlane.xlu0 %927  ;;  %v1166_v53 = vsel %vm1165_vm10, %v1163_v50, -inf }
 0x1ff   :  { %1167 = vmax.xlane.f32.xlu0 %v1166_v53  ;;  %v1071_v63 = vrot.slane %v928_v51, %v3817_v41  ;;  %v1085_v7 = vsel %vm1003_vm1, %v1084_v62, %v1080_v3 }
 0x200   :  { %v930_v54 = vpop.xlane.xlu1 %929 }
 0x201   :  { %v1075_v59 = vrot.slane %v930_v54, %v3813_v52 }
 0x202   :  { %v940_v55 = vpop.xlane.xlu0 %939 }
 0x203   :  { %v1076_v4 = vsel %vm1003_vm1, %v1075_v59, %v1071_v63  ;;  %v1098_v13 = vrot.slane %v940_v55, %v3817_v41 }
 0x204   :  { %v942_v56 = vpop.xlane.xlu1 %941  ;;  %v1154_v10 = vsel %vm1140_vm2, %v1085_v7, %v1076_v4 }
 0x205   :  { %v1102_v8 = vrot.slane %v942_v56, %v3813_v52 }
 0x206   :  { %v936_v36 = vpop.xlane.xlu0 %935 }
 0x207   :  { %v1089_v1 = vrot.slane %v936_v36, %v3817_v41  ;;  %v1103_v18 = vsel %vm1003_vm1, %v1102_v8, %v1098_v13 }
 0x208   :  { %v938_v57 = vpop.xlane.xlu1 %937 }
 0x209   :  { %v1093_v60 = vrot.slane %v938_v57, %v3813_v52 }
 0x20a   :  { %v948_v58 = vpop.xlane.xlu0 %947 }
 0x20b   :  { %v1094_v5 = vsel %vm1003_vm1, %v1093_v60, %v1089_v1  ;;  %v1116_v39 = vrot.slane %v948_v58, %v3817_v41 }
 0x20c   :  { %v950_v61 = vpop.xlane.xlu1 %949  ;;  %v1155_v15 = vsel %vm1142_vm3, %v1094_v5, %v1154_v10 }
 0x20d   :  { %v1120_v21 = vrot.slane %v950_v61, %v3813_v52  ;;  %v1156_v14 = vsel %vm1144_vm4, %v1103_v18, %v1155_v15 }
 0x20e   :  { %v944_v2 = vpop.xlane.xlu0 %943 }
 0x20f   :  { %v1107_v11 = vrot.slane %v944_v2, %v3817_v41  ;;  %v1121_v45 = vsel %vm1003_vm1, %v1120_v21, %v1116_v39 }
 0x210   :  { %v946_v6 = vpop.xlane.xlu1 %945 }
 0x211   :  { %v1111_v9 = vrot.slane %v946_v6, %v3813_v52 }
 0x212   :  { %v952_v12 = vpop.xlane.xlu0 %951 }
 0x213   :  { %v1112_v16 = vsel %vm1003_vm1, %v1111_v9, %v1107_v11  ;;  %v1125_v37 = vrot.slane %v952_v12, %v3817_v41 }
 0x214   :  { %v954_v17 = vpop.xlane.xlu1 %953  ;;  %v1157_v42 = vsel %vm1146_vm5, %v1112_v16, %v1156_v14 }
 0x215   :  { %v1129_v34 = vrot.slane %v954_v17, %v3813_v52  ;;  %v1158_v51 = vsel %vm1148_vm6, %v1121_v45, %v1157_v42 }
 0x216   :  { %v956_v35 = vpop.xlane.xlu0 %955 }
 0x217   :  { %v1130_v43 = vsel %vm1003_vm1, %v1129_v34, %v1125_v37  ;;  %v1134_v47 = vrot.slane %v956_v35, %v3817_v41 }
 0x218   :  { %v958_v44 = vpop.xlane.xlu1 %957  ;;  %v1159_v54 = vsel %vm1150_vm7, %v1130_v43, %v1158_v51 }
 0x219   :  { %v1138_v49 = vrot.slane %v958_v44, %v3813_v52 }
 0x21b   :  { %v1139_v53 = vsel %vm1003_vm1, %v1138_v49, %v1134_v47 }
 0x21c   :  { %v1160_v55 = vsel %vm1152_vm8, %v1139_v53, %v1159_v54 }
 0x21d   :  { %v1164_v56 = vsel %vm961_vm9, %v1160_v55, -inf }
 0x21e   :  { %v1169_v36 = vsel %vm1165_vm10, %v1164_v56, -inf }
 0x21f   :  { %1170 = vmax.xlane.f32.xlu1 %v1169_v36 }
 0x288   :  { %v1168_v57 = vpop.xlane.xlu0 %1167 }
 0x289   :  { %v1172_v58 = vsub.f32 %v1163_v50, %v1168_v57  ;;  %v3167_v57 = vld [vmem:[#allocation13 + $0xac] ss:$12 sps:$4 sm:$0xff]  }
 0x28b   :  { %v1174_v59 = vmul.f32 1.442695, %v1172_v58  ;;  %v3168_v58 = vld [vmem:[#allocation13 + $0x90] ss:$12 sps:$4 sm:$0xff]  }
 0x28d   :  { %3294 = vpow2.f32 %v1174_v59  ;;  %v3170_v59 = vld [vmem:[#allocation13 + $0x94] ss:$12 sps:$4 sm:$0xff]  }
 0x29a   :  { %v3295_v41 = vpop.eup %3294 }
 0x29b   :  { %v1178_v52 = vsel %vm1165_vm10, %v3295_v41, 0.0 }
 0x29c   :  { %1179 = vadd.xlane.f32.xlu0 %v1178_v52  ;;  %v3172_v52 = vld [vmem:[#allocation13 + $0x78] ss:$12 sps:$4 sm:$0xff]  }
 0x2a8   :  { %v1171_v60 = vpop.xlane.xlu1 %1170 }
 0x2a9   :  { %v1173_v61 = vsub.f32 %v1164_v56, %v1171_v60  ;;  %v3176_v60 = vld [vmem:[#allocation13 + $0x60] ss:$12 sps:$4 sm:$0xff]  }
 0x2ab   :  { %v1176_v62 = vmul.f32 1.442695, %v1173_v61  ;;  %v3178_v61 = vld [vmem:[#allocation13 + $0x64] ss:$12 sps:$4 sm:$0xff]  }
 0x2ad   :  { %3296 = vpow2.f32 %v1176_v62  ;;  %v3179_v62 = vld [vmem:[#allocation13 + $0x80] ss:$12 sps:$4 sm:$0xff]  }
 0x2ba   :  { %v3297_v63 = vpop.eup %3296 }
 0x2bb   :  { %v1181_v1 = vsel %vm1165_vm10, %v3297_v63, 0.0 }
 0x2bc   :  { %1182 = vadd.xlane.f32.xlu1 %v1181_v1  ;;  %v3180_v1 = vld [vmem:[#allocation13 + $0x48] ss:$12 sps:$4 sm:$0xff]  }
 0x325   :  { %v1180_v46 = vpop.xlane.xlu0 %1179 }
 0x326   :  { %3298 = vrcp.f32 %v1180_v46  ;;  %v3183_v46 = vld [vmem:[#allocation13 + $0x68] ss:$12 sps:$4 sm:$0xff]  }
 0x333   :  { %v3299_v2 = vpop.eup %3298 }
 0x334   :  { %v1185_v3 = vmul.f32 %v3299_v2, %v3295_v41  ;;  %v3171_v41 = vld [vmem:[#allocation13 + $0xb0] ss:$12 sps:$4 sm:$0xff]  }
 0x335   :  { %v3184_v2 = vld [vmem:[#allocation13 + $0x30] ss:$12 sps:$4 sm:$0xff]  }
 0x336   :  { %v1192_v4 = vcombine.high %v1185_v3, %v1185_v3  ;;  %1188 = vst.msk [vmem:[#allocation17] sm:$0xff] %vm1165_vm10, %v1185_v3  ;;  %v1199_v50 = vrot.slane %v1185_v3, %v3733_v40  ;;  %v3186_v3 = vld [vmem:[#allocation13 + $0x34] ss:$12 sps:$4 sm:$0xff]  }
 0x338   :  { %v1206_v5 = vrot.slane %v1192_v4, %v3733_v40  ;;  %v1215_v6 = vrot.slane %v1199_v50, %v3733_v40  ;;  %v1207_v9 = vcombine.high %v1199_v50, %v1199_v50  ;;  %v3187_v4 = vld [vmem:[#allocation13 + $0x50] ss:$12 sps:$4 sm:$0xff]  }
 0x339   :  { %v3190_v50 = vld [vmem:[#allocation13 + $0x1c] ss:$12 sps:$4 sm:$0xff]  }
 0x33a   :  { %v1306_v7 = vpack.c.bf16 %v1215_v6, %v1215_v6  ;;  %v1208_v8 = vcombine.high %v1206_v5, %v1206_v5  ;;  %v1229_v12 = vrot.slane %v1207_v9, %v3733_v40  ;;  %v1237_v16 = vcombine.high %v1215_v6, %v1215_v6  ;;  %v3191_v6 = vld [vmem:[#allocation13 + $0x38] ss:$12 sps:$4 sm:$0xff]   ;;  %v3195_v9 = vld [vmem:[#allocation13 + $0x20] ss:$12 sps:$4 sm:$0xff]  }
 0x33c   :  { %2979 = vmatmul.mubr.msk.bf16.vlgmr.msra.gmra.mxu1 %vm1165_vm10, %v1306_v7  ;;  %v1236_v10 = vrot.slane %v1208_v8, %v3733_v40  ;;  %v1307_v15 = vpack.c.bf16 %v1229_v12, %v1229_v12  ;;  %v1308_v17 = vpack.c.bf16 %v1237_v16, %v1237_v16  ;;  %v3194_v7 = vld [vmem:[#allocation13 + $0x4] ss:$12 sps:$4 sm:$0xff]   ;;  %v3192_v8 = vld [vmem:[#allocation13] ss:$12 sps:$4 sm:$0xff]  }
 0x33d   :  { %2983 = vmatpush3.bf16.msra.mxu1 %v3676_v19  ;;  %2984 = vmatprep.mubr.msk.bf16.mxu1 %vm3546_vm0, %v3545_v0  ;;  %v3204_v16 = vld [vmem:[#allocation11 + $0x94] ss:$12 sps:$4 sm:$0xff]  }
 0x33e   :  { %v1240_v11 = vcombine.high %v1236_v10, %v1236_v10  ;;  %2988 = vmatprep.subr.bf16.mxu1 %v3545_v0  ;;  %v1311_v44 = vpack.c.bf16 %v1236_v10, %v1236_v10  ;;  %v3548_v10 = vmov 0  }
 0x340   :  { %v1313_v13 = vpack.c.bf16 %v1240_v11, %v1240_v11  ;;  %v3196_v11 = vld [vmem:[#allocation7] sm:$0xff]  }
 0x342   :  { %3021 = vmatmul.mubr.msk.bf16.vlgmr.msra.gmra.mxu0 %vm1165_vm10, %v1313_v13  ;;  %v3198_v13 = vld [vmem:[#allocation11 + $0xa8] ss:$12 sps:$4 sm:$0xff]  }
 0x343   :  { %3031 = vmatpush3.bf16.msra.mxu0 %v3703_v27  ;;  %3032 = vmatprep.mubr.msk.bf16.mxu0 %vm3546_vm0, %v3545_v0  ;;  %v1239_v27 = vcombine.high %v1229_v12, %v1229_v12  ;;  %v3197_v12 = vld [vmem:[#allocation13 + $0x8] ss:$12 sps:$4 sm:$0xff]  }
 0x344   :  { %2985 = vmatmul.mubr.msk.bf16.vlgmr.msra.gmra.mxu1 %vm1165_vm10, %v1307_v15  ;;  %3042 = vmatprep.subr.bf16.mxu0 %v3545_v0  ;;  %v3200_v15 = vld [vmem:[#allocation11 + $0xac] ss:$12 sps:$4 sm:$0xff]  }
 0x345   :  { %2989 = vmatpush3.bf16.msra.mxu1 %v3678_v20  ;;  %v1183_v19 = vpop.xlane.xlu1 %1182  ;;  %2990 = vmatprep.mubr.msk.bf16.mxu1 %vm3546_vm0, %v3545_v0  ;;  %v1309_v20 = vpack.c.bf16 %v1239_v27, %v1239_v27  ;;  %v3205_v27 = vld [vmem:[#allocation11 + $0x98] ss:$12 sps:$4 sm:$0xff]  }
 0x346   :  { %3300 = vrcp.f32 %v1183_v19  ;;  %2994 = vmatprep.subr.bf16.mxu1 %v3545_v0  ;;  %v3201_v19 = vld [vmem:[#allocation11 + $0xb0] ss:$12 sps:$4 sm:$0xff]  }
 0x34c   :  { %2991 = vmatmul.mubr.msk.bf16.vlgmr.msra.gmra.mxu1 %vm1165_vm10, %v1308_v17  ;;  %v3202_v17 = vld [vmem:[#allocation11 + $0x90] ss:$12 sps:$4 sm:$0xff]  }
 0x34d   :  { %2995 = vmatpush3.bf16.msra.mxu1 %v3684_v22  ;;  %2996 = vmatprep.mubr.msk.bf16.mxu1 %vm3546_vm0, %v3545_v0  ;;  %v1222_v22 = vrot.slane %v1206_v5, %v3733_v40  ;;  %v3188_v5 = vld [vmem:[#allocation13 + $0x18] ss:$12 sps:$4 sm:$0xff]  }
 0x34e   :  { %3000 = vmatprep.subr.bf16.mxu1 %v3545_v0 }
 0x34f   :  { %v1310_v37 = vpack.c.bf16 %v1222_v22, %v1222_v22 }
 0x353   :  { %v3301_v18 = vpop.eup %3300 }
 0x354   :  { %v1187_v21 = vmul.f32 %v3301_v18, %v3297_v63  ;;  %2997 = vmatmul.mubr.msk.bf16.vlgmr.msra.gmra.mxu1 %vm1165_vm10, %v1309_v20  ;;  %v3182_v63 = vld [vmem:[#allocation13 + $0x4c] ss:$12 sps:$4 sm:$0xff]   ;;  %v3208_v18 = vld [vmem:[#allocation11 + $0x7c] ss:$12 sps:$4 sm:$0xff]  }
 0x355   :  { %3001 = vmatpush3.bf16.msra.mxu1 %v3688_v23  ;;  %3002 = vmatprep.mubr.msk.bf16.mxu1 %vm3546_vm0, %v3545_v0  ;;  %v3206_v20 = vld [vmem:[#allocation11 + $0x78] ss:$12 sps:$4 sm:$0xff]  }
 0x356   :  { %1189 = vst.msk [vmem:[#allocation17 + $0x8] sm:$0xff] %vm1165_vm10, %v1187_v21  ;;  %3006 = vmatprep.subr.bf16.mxu1 %v3545_v0  ;;  %v1248_v34 = vrot.slane %v1187_v21, %v3733_v40  ;;  %v1241_v39 = vcombine.high %v1187_v21, %v1187_v21  ;;  %v3209_v21 = vld [vmem:[#allocation11 + $0x80] ss:$12 sps:$4 sm:$0xff]  }
 0x358   :  { %v1256_v14 = vcombine.high %v1248_v34, %v1248_v34  ;;  %v1255_v43 = vrot.slane %v1241_v39, %v3733_v40  ;;  %v3217_v39 = vld [vmem:[#allocation11 + $0x50] ss:$12 sps:$4 sm:$0xff]  }
 0x35a   :  { %v1278_v35 = vrot.slane %v1256_v14, %v3733_v40  ;;  %v1257_v45 = vcombine.high %v1255_v43, %v1255_v43  ;;  %v3213_v14 = vld [vmem:[#allocation11 + $0x68] ss:$12 sps:$4 sm:$0xff]  }
 0x35c   :  { %3003 = vmatmul.mubr.msk.bf16.vlgmr.msra.gmra.mxu1 %vm1165_vm10, %v1310_v37  ;;  %v1315_v42 = vpack.c.bf16 %v1278_v35, %v1278_v35  ;;  %v1288_v23 = vcombine.high %v1278_v35, %v1278_v35  ;;  %v1285_v47 = vrot.slane %v1257_v45, %v3733_v40  ;;  %v3214_v37 = vld [vmem:[#allocation11 + $0x48] ss:$12 sps:$4 sm:$0xff]   ;;  %v3216_v35 = vld [vmem:[#allocation11 + $0x4c] ss:$12 sps:$4 sm:$0xff]  }
 0x35d   :  { %3007 = vmatpush3.bf16.msra.mxu1 %v3694_v24  ;;  %3008 = vmatprep.mubr.msk.bf16.mxu1 %vm3546_vm0, %v3545_v0  ;;  %v3225_v45 = vld [vmem:[#allocation11 + $0x20] ss:$12 sps:$4 sm:$0xff]  }
 0x35e   :  { %3033 = vmatmul.mubr.msk.bf16.vlgmr.msra.gmra.mxu0 %vm1165_vm10, %v1315_v42  ;;  %3012 = vmatprep.subr.bf16.mxu1 %v3545_v0  ;;  %v1317_v24 = vpack.c.bf16 %v1288_v23, %v1288_v23  ;;  %v1289_v51 = vcombine.high %v1285_v47, %v1285_v47  ;;  %v3220_v42 = vld [vmem:[#allocation11 + $0x34] ss:$12 sps:$4 sm:$0xff]   ;;  %v3218_v23 = vld [vmem:[#allocation11 + $0x30] ss:$12 sps:$4 sm:$0xff]  }
 0x35f   :  { %3043 = vmatpush3.bf16.msra.mxu0 %v3709_v29  ;;  %3044 = vmatprep.mubr.msk.bf16.mxu0 %vm3546_vm0, %v3545_v0  ;;  %v1238_v29 = vcombine.high %v1222_v22, %v1222_v22  ;;  %v3212_v22 = vld [vmem:[#allocation11 + $0x64] ss:$12 sps:$4 sm:$0xff]  }
 0x360   :  { %3054 = vmatprep.subr.bf16.mxu0 %v3545_v0 }
 0x361   :  { %v1312_v49 = vpack.c.bf16 %v1238_v29, %v1238_v29  ;;  %v3228_v29 = vld [vmem:[#allocation11 + $0x4] ss:$12 sps:$4 sm:$0xff]  }
 0x364   :  { %3009 = vmatmul.mubr.msk.bf16.vlgmr.msra.gmra.mxu1 %vm1165_vm10, %v1311_v44  ;;  %v3222_v44 = vld [vmem:[#allocation11 + $0x18] ss:$12 sps:$4 sm:$0xff]  }
 0x365   :  { %3013 = vmatpush3.bf16.msra.mxu1 %v3696_v25  ;;  %3014 = vmatprep.mubr.msk.bf16.mxu1 %vm3546_vm0, %v3545_v0  ;;  %v1319_v25 = vpack.c.bf16 %v1285_v47, %v1285_v47  ;;  %v3226_v47 = vld [vmem:[#allocation11] ss:$12 sps:$4 sm:$0xff]  }
 0x366   :  { %3045 = vmatmul.mubr.msk.bf16.vlgmr.msra.gmra.mxu0 %vm1165_vm10, %v1317_v24  ;;  %3024 = vmatprep.subr.bf16.mxu1 %v3545_v0  ;;  %v3224_v24 = vld [vmem:[#allocation11 + $0x1c] ss:$12 sps:$4 sm:$0xff]  }
 0x367   :  { %3055 = vmatpush3.bf16.msra.mxu0 %v3715_v31  ;;  %3056 = vmatprep.mubr.msk.bf16.mxu0 %vm3546_vm0, %v3545_v0  ;;  %v1264_v31 = vrot.slane %v1248_v34, %v3733_v40  ;;  %v3210_v34 = vld [vmem:[#allocation11 + $0x60] ss:$12 sps:$4 sm:$0xff]  }
 0x368   :  { %3066 = vmatprep.subr.bf16.mxu0 %v3545_v0 }
 0x369   :  { %v1314_v53 = vpack.c.bf16 %v1264_v31, %v1264_v31 }
 0x36c   :  { %3015 = vmatmul.mubr.msk.bf16.vlgmr.msra.gmra.mxu1 %vm1165_vm10, %v1312_v49  ;;  %v3229_v49 = vld [vmem:[#allocation11 + $0x8] ss:$12 sps:$4 sm:$0xff]  }
 0x36d   :  { %3025 = vmatpush3.bf16.msra.mxu1 %v3700_v26  ;;  %3026 = vmatprep.mubr.msk.bf16.mxu1 %vm3546_vm0, %v3545_v0  ;;  %v1321_v26 = vpack.c.bf16 %v1289_v51, %v1289_v51 }
 0x36e   :  { %3057 = vmatmul.mubr.msk.bf16.vlgmr.msra.gmra.mxu0 %vm1165_vm10, %v1319_v25  ;;  %3036 = vmatprep.subr.bf16.mxu1 %v3545_v0 }
 0x36f   :  { %3067 = vmatpush3.bf16.msra.mxu0 %v3721_v33  ;;  %3068 = vmatprep.mubr.msk.bf16.mxu0 %vm3546_vm0, %v3545_v0  ;;  %v1286_v33 = vcombine.high %v1264_v31, %v1264_v31 }
 0x370   :  { %3072 = vmatprep.subr.bf16.mxu0 %v3545_v0 }
 0x371   :  { %v1316_v54 = vpack.c.bf16 %v1286_v33, %v1286_v33 }
 0x374   :  { %3027 = vmatmul.mubr.msk.bf16.vlgmr.msra.gmra.mxu1 %vm1165_vm10, %v1314_v53 }
 0x375   :  { %3037 = vmatpush3.bf16.msra.mxu1 %v3705_v28  ;;  %3038 = vmatprep.mubr.msk.bf16.mxu1 %vm3546_vm0, %v3545_v0  ;;  %v1271_v28 = vrot.slane %v1255_v43, %v3733_v40  ;;  %v3174_v40 = vld [vmem:[#allocation13 + $0x7c] ss:$12 sps:$4 sm:$0xff]   ;;  %v3221_v43 = vld [vmem:[#allocation11 + $0x38] ss:$12 sps:$4 sm:$0xff]  }
 0x376   :  { %3069 = vmatmul.mubr.msk.bf16.vlgmr.msra.gmra.mxu0 %vm1165_vm10, %v1321_v26  ;;  %3048 = vmatprep.subr.bf16.mxu1 %v3545_v0 }
 0x377   :  { %3088 = vmatprep.mubr.msk.bf16.mxu0 %vm3546_vm0, %v3545_v0  ;;  %v1318_v55 = vpack.c.bf16 %v1271_v28, %v1271_v28  ;;  %v1287_v56 = vcombine.high %v1271_v28, %v1271_v28  ;;  %3073 = vmatpush3.bf16.msra.mxu0 %v3171_v41 }
 0x378   :  { %3074 = vmatprep.subr.bf16.mxu0 %v3545_v0 }
 0x379   :  { %v1320_v36 = vpack.c.bf16 %v1287_v56, %v1287_v56 }
 0x37c   :  { %3039 = vmatmul.mubr.msk.bf16.vlgmr.msra.gmra.mxu1 %vm1165_vm10, %v1316_v54 }
 0x37d   :  { %3049 = vmatpush3.bf16.msra.mxu1 %v3711_v30  ;;  %3050 = vmatprep.mubr.msk.bf16.mxu1 %vm3546_vm0, %v3545_v0  ;;  %v3165_v30 = vld [vmem:[#allocation13 + $0xa8] ss:$12 sps:$4 sm:$0xff]  }
 0x37e   :  { %3060 = vmatprep.subr.bf16.mxu1 %v3545_v0 }
 0x384   :  { %3051 = vmatmul.mubr.msk.bf16.vlgmr.msra.gmra.mxu1 %vm1165_vm10, %v1318_v55 }
 0x385   :  { %3061 = vmatpush3.bf16.msra.mxu1 %v3717_v32  ;;  %3062 = vmatprep.mubr.msk.bf16.mxu1 %vm3546_vm0, %v3545_v0  ;;  %v3175_v32 = vld [vmem:[#allocation13 + $0x98] ss:$12 sps:$4 sm:$0xff]  }
 0x386   :  { %2226 = vmatprep.subr.bf16.mxu1 %v3167_v57  ;;  %3075 = vmatpush3.bf16.msra.mxu0 %v3175_v32 }
 0x387   :  { %3076 = vmatprep.subr.bf16.mxu0 %v3545_v0 }
 0x38a   :  { %3077 = vmatpush3.bf16.msra.mxu0 %v3179_v62 }
 0x38b   :  { %3078 = vmatprep.subr.bf16.mxu0 %v3545_v0 }
 0x38c   :  { %3063 = vmatmul.mubr.msk.bf16.vlgmr.msra.gmra.mxu1 %vm1165_vm10, %v1320_v36 }
 0x38d   :  { %2227 = vmatpush1.bf16.msra.mxu1 %v3165_v30  ;;  %2258 = vmatprep.mubr.bf16.mxu1 %v3548_v10 }
 0x38e   :  { %2228 = vmatprep.subr.bf16.mxu1 %v3170_v59  ;;  %3079 = vmatpush3.bf16.msra.mxu0 %v3183_v46 }
 0x38f   :  { %3080 = vmatprep.subr.bf16.mxu0 %v3545_v0 }
 0x391   :  { %2229 = vmatpush1.bf16.msra.mxu1 %v3168_v58 }
 0x392   :  { %2230 = vmatprep.subr.bf16.mxu1 %v3174_v40  ;;  %3081 = vmatpush3.bf16.msra.mxu0 %v3187_v4 }
 0x393   :  { %3082 = vmatprep.subr.bf16.mxu0 %v3545_v0 }
 0x395   :  { %2231 = vmatpush1.bf16.msra.mxu1 %v3172_v52 }
 0x396   :  { %2232 = vmatprep.subr.bf16.mxu1 %v3178_v61  ;;  %3083 = vmatpush3.bf16.msra.mxu0 %v3191_v6 }
 0x397   :  { %3084 = vmatprep.subr.bf16.mxu0 %v3545_v0 }
 0x399   :  { %2233 = vmatpush1.bf16.msra.mxu1 %v3176_v60 }
 0x39a   :  { %2234 = vmatprep.subr.bf16.mxu1 %v3182_v63  ;;  %3085 = vmatpush3.bf16.msra.mxu0 %v3195_v9 }
 0x39b   :  { %3086 = vmatprep.subr.bf16.mxu0 %v3545_v0 }
 0x39d   :  { %2235 = vmatpush1.bf16.msra.mxu1 %v3180_v1 }
 0x39e   :  { %2236 = vmatprep.subr.bf16.mxu1 %v3186_v3  ;;  %3087 = vmatpush3.bf16.msra.mxu0 %v3197_v12 }
 0x39f   :  { %3092 = vmatprep.subr.bf16.mxu0 %v3545_v0 }
 0x3a1   :  { %2237 = vmatpush1.bf16.msra.mxu1 %v3184_v2  ;;  %3089 = vmatmul.mubr.bf16.vlgmr.msra.gmra.mxu0 %v3196_v11 }
 0x3a2   :  { %2238 = vmatprep.subr.bf16.mxu1 %v3190_v50  ;;  %3093 = vmatpush3.bf16.msra.mxu0 %v3201_v19 }
 0x3a3   :  { %3094 = vmatprep.subr.bf16.mxu0 %v3545_v0  ;;  %3108 = vmatprep.mubr.msk.bf16.mxu0 %vm3546_vm0, %v3545_v0 }
 0x3a5   :  { %2239 = vmatpush1.bf16.msra.mxu1 %v3188_v5 }
 0x3a6   :  { %2240 = vmatprep.subr.bf16.mxu1 %v3194_v7  ;;  %3095 = vmatpush3.bf16.msra.mxu0 %v3205_v27 }
 0x3a7   :  { %3096 = vmatprep.subr.bf16.mxu0 %v3545_v0 }
 0x3a9   :  { %2241 = vmatpush1.bf16.msra.mxu1 %v3192_v8 }
 0x3aa   :  { %2500 = vmatprep.subr.bf16.mxu1 %v3200_v15  ;;  %3097 = vmatpush3.bf16.msra.mxu0 %v3209_v21 }
 0x3ab   :  { %3098 = vmatprep.subr.bf16.mxu0 %v3545_v0 }
 0x3ac   :  { %2259 = vmatmul.mubr.bf16.vlgmr.msra.gmra.mxu1 %v3196_v11 }
 0x3ad   :  { %2532 = vmatprep.mubr.bf16.mxu1 %v3548_v10  ;;  %2501 = vmatpush1.bf16.msra.mxu1 %v3198_v13 }
 0x3ae   :  { %2502 = vmatprep.subr.bf16.mxu1 %v3204_v16  ;;  %3099 = vmatpush3.bf16.msra.mxu0 %v3213_v14 }
 0x3af   :  { %3100 = vmatprep.subr.bf16.mxu0 %v3545_v0 }
 0x3b1   :  { %2503 = vmatpush1.bf16.msra.mxu1 %v3202_v17 }
 0x3b2   :  { %2504 = vmatprep.subr.bf16.mxu1 %v3208_v18  ;;  %3101 = vmatpush3.bf16.msra.mxu0 %v3217_v39 }
 0x3b3   :  { %3102 = vmatprep.subr.bf16.mxu0 %v3545_v0 }
 0x3b5   :  { %2505 = vmatpush1.bf16.msra.mxu1 %v3206_v20 }
 0x3b6   :  { %2506 = vmatprep.subr.bf16.mxu1 %v3212_v22  ;;  %3103 = vmatpush3.bf16.msra.mxu0 %v3221_v43 }
 0x3b7   :  { %3104 = vmatprep.subr.bf16.mxu0 %v3545_v0 }
 0x3b9   :  { %2507 = vmatpush1.bf16.msra.mxu1 %v3210_v34 }
 0x3ba   :  { %2508 = vmatprep.subr.bf16.mxu1 %v3216_v35  ;;  %3105 = vmatpush3.bf16.msra.mxu0 %v3225_v45 }
 0x3bb   :  { %3106 = vmatprep.subr.bf16.mxu0 %v3545_v0 }
 0x3bd   :  { %2509 = vmatpush1.bf16.msra.mxu1 %v3214_v37 }
 0x3be   :  { %2510 = vmatprep.subr.bf16.mxu1 %v3220_v42  ;;  %3107 = vmatpush3.bf16.msra.mxu0 %v3229_v49 }
 0x3c1   :  { %2511 = vmatpush1.bf16.msra.mxu1 %v3218_v23 }
 0x3c2   :  { %2512 = vmatprep.subr.bf16.mxu1 %v3224_v24 }
 0x3c5   :  { %2513 = vmatpush1.bf16.msra.mxu1 %v3222_v44 }
 0x3c6   :  { %2514 = vmatprep.subr.bf16.mxu1 %v3228_v29 }
 0x3c9   :  { %2515 = vmatpush1.bf16.msra.mxu1 %v3226_v47 }
 0x3fc   :  { %v1359_v25 = vpop.f32.mrf.mxu1 }
 0x3fd   :  { %v2010_v28 = vpack.c.bf16 %v1359_v25, %v1359_v25 }
 0x3fe   :  { %v2980_v31 = vpop.f32.mrf.mxu1 }
 0x3ff   :  { %v2326_v59 = vunpack.c.l.b16 %v2010_v28 }
 0x400   :  { %v1362_v51 = vpop.f32.mrf.mxu1 }
 0x402   :  { %v2981_v53 = vpop.f32.mrf.mxu1  ;;  %v1660_v26 = vpop.f32.mrf.mxu0 }
 0x403   :  { %v2017_v21 = vpack.c.bf16 %v1660_v26, %v1660_v26 }
 0x404   :  { %v1402_v33 = vpop.f32.mrf.mxu1  ;;  %v3022_v54 = vpop.f32.mrf.mxu0 }
 0x405   :  { %v2011_v55 = vpack.c.bf16 %v1402_v33, %v1402_v33  ;;  %v2333_v44 = vunpack.c.l.b16 %v2017_v21 }
 0x406   :  { %v2986_v56 = vpop.f32.mrf.mxu1  ;;  %v1663_v36 = vpop.f32.mrf.mxu0 }
 0x407   :  { %v2327_v30 = vunpack.c.l.b16 %v2011_v55  ;;  %v2354_v33 = vrot.slane %v2333_v44, 1 }
 0x408   :  { %v1405_v57 = vpop.f32.mrf.mxu1  ;;  %v3023_v58 = vpop.f32.mrf.mxu0 }
 0x409   :  { %v2342_v41 = vrot.slane %v2327_v30, 7 }
 0x40a   :  { %v2987_v40 = vpop.f32.mrf.mxu1 }
 0x40b   :  { %v2343_v0 = vsel %vm1140_vm2, %v2342_v41, %v2326_v59 }
 0x40c   :  { %v1445_v52 = vpop.f32.mrf.mxu1 }
 0x40d   :  { %v2012_v8 = vpack.c.bf16 %v1445_v52, %v1445_v52 }
 0x40e   :  { %v2992_v32 = vpop.f32.mrf.mxu1 }
 0x40f   :  { %v2328_v16 = vunpack.c.l.b16 %v2012_v8 }
 0x410   :  { %v1448_v60 = vpop.f32.mrf.mxu1 }
 0x411   :  { %v2344_v37 = vrot.slane %v2328_v16, 6 }
 0x412   :  { %v2993_v61 = vpop.f32.mrf.mxu1 }
 0x413   :  { %v2345_v47 = vsel %vm1142_vm3, %v2344_v37, %v2343_v0 }
 0x414   :  { %v1488_v62 = vpop.f32.mrf.mxu1 }
 0x415   :  { %v2013_v9 = vpack.c.bf16 %v1488_v62, %v1488_v62 }
 0x416   :  { %v2998_v63 = vpop.f32.mrf.mxu1 }
 0x417   :  { %v2329_v17 = vunpack.c.l.b16 %v2013_v9 }
 0x418   :  { %v1491_v1 = vpop.f32.mrf.mxu1 }
 0x419   :  { %v2346_v35 = vrot.slane %v2329_v17, 5 }
 0x41a   :  { %v2999_v46 = vpop.f32.mrf.mxu1 }
 0x41b   :  { %v2347_v25 = vsel %vm1144_vm4, %v2346_v35, %v2345_v47 }
 0x41c   :  { %v1531_v2 = vpop.f32.mrf.mxu1 }
 0x41d   :  { %v2014_v12 = vpack.c.bf16 %v1531_v2, %v1531_v2 }
 0x41e   :  { %v3004_v3 = vpop.f32.mrf.mxu1  ;;  %v1746_v4 = vpop.f32.mrf.mxu0 }
 0x41f   :  { %v2330_v18 = vunpack.c.l.b16 %v2014_v12  ;;  %v2019_v63 = vpack.c.bf16 %v1746_v4, %v1746_v4 }
 0x420   :  { %v1534_v50 = vpop.f32.mrf.mxu1  ;;  %v3034_v5 = vpop.f32.mrf.mxu0 }
 0x421   :  { %v2348_v23 = vrot.slane %v2330_v18, 4  ;;  %v2335_v50 = vunpack.c.l.b16 %v2019_v63 }
 0x422   :  { %v3005_v6 = vpop.f32.mrf.mxu1  ;;  %v1749_v7 = vpop.f32.mrf.mxu0 }
 0x423   :  { %v2349_v53 = vsel %vm1146_vm5, %v2348_v23, %v2347_v25  ;;  %v2356_v12 = vrot.slane %v2335_v50, 7 }
 0x424   :  { %v1574_v10 = vpop.f32.mrf.mxu1  ;;  %v3035_v11 = vpop.f32.mrf.mxu0 }
 0x425   :  { %v2015_v13 = vpack.c.bf16 %v1574_v10, %v1574_v10 }
 0x426   :  { %v3010_v15 = vpop.f32.mrf.mxu1  ;;  %v1832_v19 = vpop.f32.mrf.mxu0 }
 0x427   :  { %v2331_v22 = vunpack.c.l.b16 %v2015_v13  ;;  %v2021_v5 = vpack.c.bf16 %v1832_v19, %v1832_v19 }
 0x428   :  { %v1577_v27 = vpop.f32.mrf.mxu1  ;;  %v3046_v20 = vpop.f32.mrf.mxu0 }
 0x429   :  { %v2350_v24 = vrot.slane %v2331_v22, 3  ;;  %v2337_v13 = vunpack.c.l.b16 %v2021_v5 }
 0x42a   :  { %v3011_v34 = vpop.f32.mrf.mxu1  ;;  %v1835_v14 = vpop.f32.mrf.mxu0 }
 0x42b   :  { %v2351_v54 = vsel %vm1148_vm6, %v2350_v24, %v2349_v53  ;;  %v2360_v21 = vrot.slane %v2337_v13, 5 }
 0x42c   :  { %v1617_v39 = vpop.f32.mrf.mxu1  ;;  %v3047_v42 = vpop.f32.mrf.mxu0 }
 0x42d   :  { %v2016_v43 = vpack.c.bf16 %v1617_v39, %v1617_v39 }
 0x42e   :  { %v3016_v45 = vpop.f32.mrf.mxu1  ;;  %v1918_v29 = vpop.f32.mrf.mxu0 }
 0x42f   :  { %v2332_v49 = vunpack.c.l.b16 %v2016_v43  ;;  %v2023_v15 = vpack.c.bf16 %v1918_v29, %v1918_v29 }
 0x430   :  { %v1620_v31 = vpop.f32.mrf.mxu1  ;;  %v3058_v51 = vpop.f32.mrf.mxu0 }
 0x431   :  { %v2352_v26 = vrot.slane %v2332_v49, 2  ;;  %v2339_v22 = vunpack.c.l.b16 %v2023_v15 }
 0x432   :  { %v3017_v28 = vpop.f32.mrf.mxu1  ;;  %v1921_v55 = vpop.f32.mrf.mxu0 }
 0x433   :  { %v2353_v56 = vsel %vm1150_vm7, %v2352_v26, %v2351_v54  ;;  %v2364_v23 = vrot.slane %v2339_v22, 3  ;;  %v2584_v55 = vld [vmem:[%s4045_s9] sm:$0x7] }
 0x434   :  { %v2355_v36 = vsel %vm1152_vm8, %v2354_v33, %v2353_v56  ;;  %v1703_v30 = vpop.f32.mrf.mxu1  ;;  %v3059_v57 = vpop.f32.mrf.mxu0 }
 0x435   :  { %v2018_v46 = vpack.c.bf16 %v1703_v30, %v1703_v30  ;;  %v2589_v30 = vrot.slane %v2584_v55, %v3737_v48 }
 0x436   :  { %v3028_v58 = vpop.f32.mrf.mxu1  ;;  %v2004_v59 = vpop.f32.mrf.mxu0 }
 0x437   :  { %v2334_v8 = vunpack.c.l.b16 %v2018_v46  ;;  %v2025_v27 = vpack.c.bf16 %v2004_v59, %v2004_v59 }
 0x438   :  { %v1706_v41 = vpop.f32.mrf.mxu1  ;;  %v3070_v40 = vpop.f32.mrf.mxu0 }
 0x439   :  { %v2357_v17 = vsel %vm1140_vm2, %v2356_v12, %v2334_v8  ;;  %v2341_v14 = vunpack.c.l.b16 %v2025_v27  ;;  %v2596_v12 = vsub.s32 2, %v3727_v38 }
 0x43a   :  { %v3029_v0 = vpop.f32.mrf.mxu1  ;;  %v2007_v52 = vpop.f32.mrf.mxu0 }
 0x43b   :  { %v2368_v24 = vrot.slane %v2341_v14, 1 }
 0x43c   :  { %v1789_v32 = vpop.f32.mrf.mxu1  ;;  %v3071_v60 = vpop.f32.mrf.mxu0 }
 0x43d   :  { %v2020_v62 = vpack.c.bf16 %v1789_v32, %v1789_v32 }
 0x43e   :  { %v3040_v61 = vpop.f32.mrf.mxu1 }
 0x43f   :  { %v2336_v3 = vunpack.c.l.b16 %v2020_v62 }
 0x440   :  { %v1792_v1 = vpop.f32.mrf.mxu1 }
 0x441   :  { %v2358_v10 = vrot.slane %v2336_v3, 6 }
 0x442   :  { %v3041_v2 = vpop.f32.mrf.mxu1 }
 0x443   :  { %v2359_v20 = vsel %vm1142_vm3, %v2358_v10, %v2357_v17  ;;  %v2597_v17 = vrot.slane %v2584_v55, %v2596_v12 }
 0x444   :  { %v1875_v6 = vpop.f32.mrf.mxu1  ;;  %v2361_v37 = vsel %vm1144_vm4, %v2360_v21, %v2359_v20 }
 0x445   :  { %v2022_v7 = vpack.c.bf16 %v1875_v6, %v1875_v6 }
 0x446   :  { %v3052_v9 = vpop.f32.mrf.mxu1 }
 0x447   :  { %v2338_v11 = vunpack.c.l.b16 %v2022_v7 }
 0x448   :  { %v1878_v16 = vpop.f32.mrf.mxu1 }
 0x449   :  { %v2362_v18 = vrot.slane %v2338_v11, 4 }
 0x44a   :  { %v3053_v4 = vpop.f32.mrf.mxu1 }
 0x44b   :  { %v2363_v39 = vsel %vm1146_vm5, %v2362_v18, %v2361_v37  ;;  %v2815_v4 = vld [vmem:[%s4046_s10] ss:$0 sm:$0xff]  ;;  %s3549_s10 = smov [#allocation14]  }
 0x44c   :  { %v1961_v19 = vpop.f32.mrf.mxu1  ;;  %v2365_v45 = vsel %vm1148_vm6, %v2364_v23, %v2363_v39  ;;  %s2665_s28 = sshll.u32 %s3549_s10, 4  ;;  %s2666_s28 = int_to_ptr.vmem [resolvable:$true] %s2665_s28 }
 0x44d   :  { %v2024_v34 = vpack.c.bf16 %v1961_v19, %v1961_v19  ;;  %s3462_s17 = scalar_lea.vmem %s2666_s28, 256  ;;  %p3467_p8 = scmp.lt.s32.totalorder %s2666_s28, %s2666_s28 }
 0x44e   :  { %v3064_v35 = vpop.f32.mrf.mxu1  ;;  %p3463_p7 = scmp.ne.s32.totalorder %s2666_s28, %s3462_s17  ;;  %p3468_p9 = scmp.lt.s32.totalorder %s3462_s17, %s3462_s17 }
 0x44f   :  { %v2340_v42 = vunpack.c.l.b16 %v2024_v34 }
 0x450   :  { %v1964_v43 = vpop.f32.mrf.mxu1  ;;  %p3469_p10 = por %p3468_p9, %p3467_p8 }
 0x451   :  { %v2366_v44 = vrot.slane %v2340_v42, 2 }
 0x452   :  { %v3065_v29 = vpop.f32.mrf.mxu1  ;;  %p3470_p11 = pnand %p3469_p10, %p3463_p7 }
 0x453   :  { %v2367_v47 = vsel %vm1150_vm7, %v2366_v44, %v2365_v45 }
 0x454   :  { %v2369_v49 = vsel %vm1152_vm8, %v2368_v24, %v2367_v47 }
 0x455   :  { %v2370_v25 = vpack.c.b16 %v2369_v49, %v2355_v36  ;;  %v2592_v36 = vsub.s32 1, %v3727_v38 }
 0x457   :  { %2533 = vmatmul.mubr.bf16.vlgmr.msra.gmra.mxu1 %v2370_v25  ;;  %3109 = vmatmul.mubr.bf16.vlgmr.msra.gmra.mxu0 %v2370_v25  ;;  %v2593_v62 = vrot.slane %v2584_v55, %v2592_v36 }
 0x461   :  { %v2303_v31 = vpop.f32.mrf.mxu0 }
 0x463   :  { %v3090_v51 = vpop.f32.mrf.mxu0 }
 0x465   :  { %v2306_v53 = vpop.f32.mrf.mxu0 }
 0x467   :  { %v3091_v26 = vpop.f32.mrf.mxu0 }
 0x46c   :  { %v2260_v33 = vpop.f32.mrf.mxu1 }
 0x46e   :  { %v2262_v54 = vpop.f32.mrf.mxu1 }
 0x470   :  { %v2264_v28 = vpop.f32.mrf.mxu1 }
 0x472   :  { %v2266_v56 = vpop.f32.mrf.mxu1 }
 0x517   :  { %v2534_v57 = vpop.f32.mrf.mxu1  ;;  %v2577_v58 = vpop.f32.mrf.mxu0 }
 0x518   :  { %v2535_v59 = vadd.f32 %v2534_v57, %v2260_v33  ;;  %v2578_v16 = vadd.f32 %v2577_v58, %v2303_v31 }
 0x519   :  { %v2536_v41 = vpop.f32.mrf.mxu1  ;;  %v3110_v40 = vpop.f32.mrf.mxu0 }
 0x51a   :  { %v2601_v0 = vadd.f32 %v2589_v30, %v2535_v59  ;;  %v2537_v61 = vadd.f32 %v2536_v41, %v2262_v54  ;;  %v2603_v21 = vadd.f32 %v2597_v17, %v2578_v16 }
 0x51b   :  { %v2538_v52 = vpop.f32.mrf.mxu1  ;;  %v2580_v32 = vpop.f32.mrf.mxu0 }
 0x51c   :  { %v2811_v60 = vmul.f32 -1.442695, %v2601_v0  ;;  %v2539_v63 = vadd.f32 %v2538_v52, %v2264_v28  ;;  %v2602_v48 = vadd.f32 %v2593_v62, %v2537_v61  ;;  %v2581_v19 = vadd.f32 %v2580_v32, %v2306_v53 }
 0x51d   :  { %v2540_v1 = vpop.f32.mrf.mxu1  ;;  %v3111_v46 = vpop.f32.mrf.mxu0 }
 0x51e   :  { %3302 = vpow2.f32 %v2811_v60  ;;  %v2604_v2 = vadd.f32 %v2589_v30, %v2539_v63  ;;  %v2541_v3 = vadd.f32 %v2540_v1, %v2266_v56  ;;  %v2813_v6 = vmul.f32 -1.442695, %v2602_v48 }
 0x51f   :  { %v2606_v38 = vadd.f32 %v2597_v17, %v2581_v19 }
 0x520   :  { %v2812_v50 = vmul.f32 -1.442695, %v2604_v2  ;;  %v2605_v5 = vadd.f32 %v2593_v62, %v2541_v3 }
 0x522   :  { %3304 = vpow2.f32 %v2812_v50  ;;  %v2814_v7 = vmul.f32 -1.442695, %v2605_v5 }
 0x523   :  { %3306 = vpow2.f32 %v2813_v6 }
 0x524   :  { %3308 = vpow2.f32 %v2814_v7 }
 0x52b   :  { %v3303_v8 = vpop.eup %3302 }
 0x52c   :  { %v2613_v9 = vadd.f32 1.0, %v3303_v8 }
 0x52e   :  { %3310 = vrcp.f32 %v2613_v9 }
 0x52f   :  { %v3305_v10 = vpop.eup %3304 }
 0x530   :  { %v2614_v11 = vadd.f32 1.0, %v3305_v10  ;;  %v3307_v13 = vpop.eup %3306 }
 0x531   :  { %v3309_v15 = vpop.eup %3308  ;;  %v2625_v27 = vadd.f32 1.0, %v3307_v13 }
 0x532   :  { %3312 = vrcp.f32 %v2614_v11  ;;  %v2626_v18 = vadd.f32 1.0, %v3309_v15 }
 0x533   :  { %3314 = vrcp.f32 %v2625_v27 }
 0x534   :  { %3316 = vrcp.f32 %v2626_v18 }
 0x53b   :  { %v3311_v20 = vpop.eup %3310 }
 0x53c   :  { %v2638_v22 = vmul.f32 %v3311_v20, %v2815_v4 }
 0x53e   :  { %v2640_v34 = vadd.f32 %v2638_v22, %v2603_v21 }
 0x53f   :  { %v3313_v14 = vpop.eup %3312 }
 0x540   :  { %3318 = vtanh.f32 %v2640_v34  ;;  %v2639_v37 = vmul.f32 %v3313_v14, %v2815_v4  ;;  %v3315_v39 = vpop.eup %3314 }
 0x541   :  { %v3317_v42 = vpop.eup %3316  ;;  %v2644_v23 = vsub.f32 1.0, %v3315_v39 }
 0x542   :  { %v2641_v35 = vadd.f32 %v2639_v37, %v2606_v38  ;;  %v2645_v24 = vsub.f32 1.0, %v3317_v42 }
 0x544   :  { %3320 = vtanh.f32 %v2641_v35 }
 0x54d   :  { %v3319_v43 = vpop.eup %3318 }
 0x54e   :  { %v2646_v44 = vmul.f32 %v3319_v43, %v2644_v23 }
 0x550   :  { %2648 = vst [vmem:[#allocation14] sm:$0xff] %v2646_v44 }
 0x551   :  { %v3321_v45 = vpop.eup %3320 }
 0x552   :  { %v2647_v29 = vmul.f32 %v3321_v45, %v2645_v24 }
 0x554   :  { %2649 = vst [vmem:[#allocation14 + $0x8] sm:$0xff] %v2647_v29  ;;  %v2823_v47 = vpack.c.bf16 %v2647_v29, %v2646_v44 }
 0x555   :  { %3473 = shalt.err (!%p3470_p11)
}
 0x556   :  { %s3552_s18 = smov 128   ;;  %s3553_s19 = smov 8   ;;  %2824 = vst [vmem:[#allocation15] sm:$0xff] %v2823_v47  }
 0x557   :  { %2671 = dma.vmem_to_hbm [thread:$0]  %s2666_s28, 256, %s4047_s11, [#allocation4], %s3552_s18, %s3552_s18, %s3553_s19  }
 0x558   :  { %s3482_s0 = scalar_lea.vmem %s2678_s15, 128  ;;  %p3487_p13 = scmp.lt.s32.totalorder %s2678_s15, %s2678_s15 }
 0x559   :  { %p3483_p12 = scmp.ne.s32.totalorder %s2678_s15, %s3482_s0  ;;  %p3488_p0 = scmp.lt.s32.totalorder %s3482_s0, %s3482_s0 }
 0x55b   :  { %p3489_p1 = por %p3488_p0, %p3487_p13 }
 0x55d   :  { %p3490_p2 = pnand %p3489_p1, %p3483_p12 }
 0x55f   :  { %3493 = shalt.err (!%p3490_p2)
}
 0x560   :  { %2683 = dma.vmem_to_hbm [thread:$0]  %s2678_s15, 128, %s4048_s12, [#allocation16], %s3536_s30, %s3536_s30, %s3537_s14  }
 0x561   :  { %s3502_s25 = scalar_lea.vmem %s4017_s7, 256  ;;  %p3507_p4 = scmp.lt.s32.totalorder %s4017_s7, %s4017_s7 }
 0x562   :  { %p3503_p3 = scmp.ne.s32.totalorder %s4017_s7, %s3502_s25  ;;  %p3508_p5 = scmp.lt.s32.totalorder %s3502_s25, %s3502_s25 }
 0x564   :  { %p3509_p6 = por %p3508_p5, %p3507_p4 }
 0x566   :  { %p3510_p7 = pnand %p3509_p6, %p3503_p3 }
 0x568   :  { %3513 = shalt.err (!%p3510_p7)
}
 0x569   :  { %2695 = dma.vmem_to_hbm [thread:$0]  %s4017_s7, 256, %s4049_s13, [#allocation16], %s3552_s18, %s3552_s18, %s3553_s19  }
 0x56a   :  { %3530 = dma.done.wait [#allocation4], 256  }
 0x56b   :  { %3531 = vsyncadd [#allocation4], 4294967040 }
 0x56c   :  { %3532 = dma.done.wait [#allocation16], 384  }
 0x56d   :  { %3533 = vsyncadd [#allocation16], 4294966912 }
 0x56e   :  { %2705 = vsyncpa [#allocation3], 1 }
 0x56f   :  { %2706 = vsyncpa [#allocation6], 1 }
 0x570   :  { %2707 = vsyncpa [#allocation9], 1 }
 0x571   :  { %2708 = vsyncpa [#allocation12], 1 }
 0x572   :  { %2709 = vsyncpa [#allocation4], 1 }
 0x573   :  { %2710 = vsyncpa [#allocation16], 1 }

</bundles_post_ra>
